<compile_context>
chip_gen: v5e
topology: v5e:2x2
jax: 0.10.0
libtpu: 0.0.40
codegen_flags: <defaults>
</compile_context>

<pallas_src>
import jax
import jax.numpy as jnp
from jax import lax
from jax.experimental import pallas as pl
from jax.experimental.pallas import tpu as pltpu


# ----------------------------------------------------------------------------
# Kernel 1: conv1 as a lane-dense GEMM   relu(W[16,K] @ P[K,M] + b)
# ----------------------------------------------------------------------------
def _conv1_kernel(w_ref, p_ref, b_ref, o_ref):
    acc = jnp.dot(w_ref[...], p_ref[...], preferred_element_type=jnp.float32)
    acc = jnp.maximum(acc + b_ref[...], 0.0)          # f32 bias + ReLU (v5e-safe)
    o_ref[...] = acc.astype(o_ref.dtype)


def conv1_gemm(w, pT, b, *, tile_m=512):
    """w [Cout,K] bf16, pT [K,M] bf16, b [Cout,1] f32 -> relu(w@pT+b) [Cout,Mpad] bf16.

    The big M axis (B*oh*ow) sits on the lane dimension (unmasked stores, full
    MXU output columns).  M is zero-padded up to a multiple of tile_m, so the
    tiled 'parallel' grid (megacore-shardable on v7x) and the bounded per-step
    VMEM footprint (~2 * K*tile_m bf16 for the double-buffered patch block)
    hold at any batch size; padded columns are dropped by the caller.
    """
    assert tile_m % 128 == 0
    Cout, K = w.shape
    M = pT.shape[1]
    m_pad = pl.cdiv(M, tile_m) * tile_m
    if m_pad != M:
        pT = jnp.pad(pT, ((0, 0), (0, m_pad - M)))
    grid = (m_pad // tile_m,)
    return pl.pallas_call(
        _conv1_kernel,
        out_shape=jax.ShapeDtypeStruct((Cout, m_pad), jnp.bfloat16),
        grid=grid,
        in_specs=[
            pl.BlockSpec((Cout, K), lambda i: (0, 0)),       # weights stay resident
            pl.BlockSpec((K, tile_m), lambda i: (0, i)),
            pl.BlockSpec((Cout, 1), lambda i: (0, 0)),
        ],
        out_specs=pl.BlockSpec((Cout, tile_m), lambda i: (0, i)),
        compiler_params=pltpu.CompilerParams(
            dimension_semantics=("parallel",)),
    )(w, pT, b)


# ----------------------------------------------------------------------------
# Kernel 2: conv2 + flatten + fc1 + ReLU + fc2, fully fused.
#           conv2 output and the FC hidden activation never leave VMEM.
# ----------------------------------------------------------------------------
def conv2_fc_fused(p2T, w2, b2, w1fc, b1fc, w2fc, b2fc, *, batch):
    """p2T [256, B*81] bf16: conv2 patches, features (ci,ky,kx), cols (b,oy,ox).

    In-kernel:
        h2T  = relu(W2[32,256] @ p2T + b2)            [32, B*81]  (lane-dense)
        flat[b, c*81 + s] = h2T[c, b*81 + s]          (torch channel-major
                                                       flatten, VMEM scatter)
        q    = relu(flat @ fc1_w.T + b1) @ fc2_w.T + b2
    """
    C2, K2 = w2.shape                       # 32, 256
    cols = p2T.shape[1]                     # B * 81
    n_pix = cols // batch                   # 81
    Kfc, H = w1fc.shape                     # 2592, 256
    A = w2fc.shape[1]
    assert cols == batch * n_pix and Kfc == C2 * n_pix

    def kernel(p2_ref, w2_ref, b2_ref, w1_ref, b1_ref, wq_ref, bq_ref,
               o_ref, h2_ref, flat_ref):
        # conv2 as one lane-dense GEMM, f32 accumulate + bias + ReLU.
        h2 = jnp.dot(w2_ref[...], p2_ref[...],
                     preferred_element_type=jnp.float32)
        h2_ref[...] = jnp.maximum(h2 + b2_ref[...], 0.0).astype(h2_ref.dtype)

        # Torch's x.view(B, -1) (channel-major) flatten as a tiny static
        # VMEM->VMEM scatter:  flat[b, c*81 + s] = h2T[c, b*81 + s].
        for b in range(batch):
            for c in range(C2):
                flat_ref[pl.ds(b, 1), pl.ds(c * n_pix, n_pix)] = \
                    h2_ref[pl.ds(c, 1), pl.ds(b * n_pix, n_pix)]

        # fc1 + ReLU + fc2 on the VMEM-resident hidden activation.
        h = jnp.dot(flat_ref[...], w1_ref[...],
                    preferred_element_type=jnp.float32)
        h = jnp.maximum(h + b1_ref[...], 0.0)
        q = jnp.dot(h.astype(wq_ref.dtype), wq_ref[...],
                    preferred_element_type=jnp.float32)
        o_ref[...] = (q + bq_ref[...]).astype(o_ref.dtype)

    # TODO(synk): for large batch, tile this call over B (grid=(B//bt,),
    # 'parallel', constant index_map on the weights) so both v7x TensorCores
    # work and the patch DMA pipelines against the matmuls.
    return pl.pallas_call(
        kernel,
        out_shape=jax.ShapeDtypeStruct((batch, A), jnp.float32),
        in_specs=[
            pl.BlockSpec((K2, cols), lambda: (0, 0)),
            pl.BlockSpec((C2, K2), lambda: (0, 0)),
            pl.BlockSpec((C2, 1), lambda: (0, 0)),
            pl.BlockSpec((Kfc, H), lambda: (0, 0)),
            pl.BlockSpec((1, H), lambda: (0, 0)),
            pl.BlockSpec((H, A), lambda: (0, 0)),
            pl.BlockSpec((1, A), lambda: (0, 0)),
        ],
        out_specs=pl.BlockSpec((batch, A), lambda: (0, 0)),
        scratch_shapes=[
            pltpu.VMEM((C2, cols), jnp.bfloat16),    # conv2 output (lane-dense)
            pltpu.VMEM((batch, Kfc), jnp.bfloat16),  # torch-order flatten
        ],
    )(p2T, w2, b2, w1fc, b1fc, w2fc, b2fc)


# ----------------------------------------------------------------------------
# Host-side im2col (pure static XLA slicing).  The NCHW handling is folded into
# the slice / feature ordering so no input transpose op is emitted.
# TODO(synk): move im2col into the kernels (strided in-kernel slicing / manual
#             DMA) so the patch slabs never materialize in HBM.
# ----------------------------------------------------------------------------
def _im2col1_T(x, kh, kw, stride):
    """x [B,C,H,W] -> patches.T [(c,ky,kx), (b,oy,ox)]."""
    B, C, H, W = x.shape
    oh = (H - kh) // stride + 1
    ow = (W - kw) // stride + 1
    slabs = [x[:, :, ky:ky + stride * oh:stride, kx:kx + stride * ow:stride]
             for ky in range(kh) for kx in range(kw)]
    p = jnp.stack(slabs, axis=0).reshape(kh, kw, B, C, oh, ow)
    p = p.transpose(3, 0, 1, 2, 4, 5).reshape(C * kh * kw, B * oh * ow)
    return p, oh, ow


def _im2col2_T(h1r, kh, kw, stride):
    """h1r [C,B,H,W] -> patches.T [(c,ky,kx), (b,oy,ox)]."""
    C, B, H, W = h1r.shape
    oh = (H - kh) // stride + 1
    ow = (W - kw) // stride + 1
    slabs = [h1r[:, :, ky:ky + stride * oh:stride, kx:kx + stride * ow:stride]
             for ky in range(kh) for kx in range(kw)]
    p = jnp.stack(slabs, axis=0).reshape(kh, kw, C, B, oh, ow)
    p = p.transpose(2, 0, 1, 3, 4, 5).reshape(C * kh * kw, B * oh * ow)
    return p, oh, ow


# ----------------------------------------------------------------------------
# Full forward pass (matches DQN_CNN_Model.forward semantics).
# ----------------------------------------------------------------------------
def dqn_forward(x, params):
    """x: [B, Cin, 84, 84] f32 (PyTorch NCHW) -> [B, n_actions] f32."""
    B = x.shape[0]
    xb = x.astype(jnp.bfloat16)

    # conv1 (8x8 / stride 4): lane-dense GEMM  W[16,256] @ patches.T[256, B*400]
    p1T, oh1, ow1 = _im2col1_T(xb, 8, 8, 4)                  # [Cin*64, B*400]
    h1T = conv1_gemm(params["w1c"], p1T, params["b1c"])      # [16, Mpad] bf16
    h1r = h1T[:, :B * oh1 * ow1].reshape(16, B, oh1, ow1)    # drop M padding

    # conv2 (4x4 / stride 2) + flatten + fc1 + ReLU + fc2 in ONE kernel.
    p2T, _, _ = _im2col2_T(h1r, 4, 4, 2)                     # [256, B*81]
    return conv2_fc_fused(p2T, params["w2m"], params["b2c"],
                          params["fc1_wt"], params["fc1_br"],
                          params["fc2_wt"], params["fc2_br"],
                          batch=B)                            # [B, A] f32


# ----------------------------------------------------------------------------
# Parameters: PyTorch layout -> one-time kernel-ready layout.
# ----------------------------------------------------------------------------
def init_torch_params(key, in_channels, n_actions):
    """Parameters in the PyTorch shapes of DQN_CNN_Model."""
    ks = jax.random.split(key, 8)
    s = 0.05
    return {
        "conv1_w": s * jax.random.normal(ks[0], (16, in_channels, 8, 8), jnp.float32),
        "conv1_b": s * jax.random.normal(ks[1], (16,), jnp.float32),
        "conv2_w": s * jax.random.normal(ks[2], (32, 16, 4, 4), jnp.float32),
        "conv2_b": s * jax.random.normal(ks[3], (32,), jnp.float32),
        "fc1_w":  s * jax.random.normal(ks[4], (256, 32 * 9 * 9), jnp.float32),
        "fc1_b":  s * jax.random.normal(ks[5], (256,), jnp.float32),
        "fc2_w":  s * jax.random.normal(ks[6], (n_actions, 256), jnp.float32),
        "fc2_b":  s * jax.random.normal(ks[7], (n_actions,), jnp.float32),
    }


def prepare_params(tp):
    """One-time layout prep (outside the jit): reshape / transpose / cast so the
    forward does zero per-call weight reshapes.  Conv weights only need a plain
    reshape (im2col emits features in torch's (c, ky, kx) order) and fc1 needs
    no row permutation (the in-kernel flatten reproduces torch's channel-major
    view(B, -1) order exactly)."""
    cin = tp["conv1_w"].shape[1]
    return {
        "w1c":    tp["conv1_w"].reshape(16, cin * 8 * 8).astype(jnp.bfloat16),
        "b1c":    tp["conv1_b"].reshape(16, 1).astype(jnp.float32),
        "w2m":    tp["conv2_w"].reshape(32, 16 * 4 * 4).astype(jnp.bfloat16),
        "b2c":    tp["conv2_b"].reshape(32, 1).astype(jnp.float32),
        "fc1_wt": tp["fc1_w"].T.astype(jnp.bfloat16),         # [2592, 256]
        "fc1_br": tp["fc1_b"].reshape(1, 256).astype(jnp.float32),
        "fc2_wt": tp["fc2_w"].T.astype(jnp.bfloat16),         # [256, A]
        "fc2_br": tp["fc2_b"].reshape(1, -1).astype(jnp.float32),
    }


# Pure-XLA f32 reference (PyTorch semantics) for a numerical sanity check.
def reference_forward(x, tp):
    dn = ("NCHW", "OIHW", "NCHW")
    h = lax.conv_general_dilated(x, tp["conv1_w"], (4, 4), "VALID",
                                 dimension_numbers=dn)
    h = jnp.maximum(h + tp["conv1_b"][None, :, None, None], 0.0)
    h = lax.conv_general_dilated(h, tp["conv2_w"], (2, 2), "VALID",
                                 dimension_numbers=dn)
    h = jnp.maximum(h + tp["conv2_b"][None, :, None, None], 0.0)
    flat = h.reshape(h.shape[0], -1)
    h = jnp.maximum(flat @ tp["fc1_w"].T + tp["fc1_b"], 0.0)
    return h @ tp["fc2_w"].T + tp["fc2_b"]


if __name__ == "__main__":
    key = jax.random.PRNGKey(0)
    k_params, k_x = jax.random.split(key)

    batch, in_channels, n_actions = 2, 4, 6
    # 84x84 is pinned by the module's hardcoded 32*9*9 flatten size.
    x = jax.random.normal(k_x, (batch, in_channels, 84, 84), jnp.float32)

    torch_params = init_torch_params(k_params, in_channels, n_actions)
    params = prepare_params(torch_params)        # one-time, outside the jit

    q_values = jax.jit(dqn_forward)(x, params)
    q_values = jax.block_until_ready(q_values)

    assert q_values.shape == (batch, n_actions)
    assert q_values.dtype == jnp.float32

    # Sanity check vs. f32 reference (tolerance covers bf16 MXU rounding across
    # the 2592-deep fc1 contraction).
    q_ref = jax.block_until_ready(jax.jit(reference_forward)(x, torch_params))
    assert jnp.allclose(q_values, q_ref, atol=7.5e-2)

    print("KERNEL_OK")
</pallas_src>

<mosaic_0001>
module attributes {stable_mosaic.version = 11 : i64} {
  func.func @_conv1_kernel(%arg0: i32, %arg1: memref<16x256xbf16, #tpu.memory_space<vmem>>, %arg2: memref<256x512xbf16, #tpu.memory_space<vmem>>, %arg3: memref<16x1xf32, #tpu.memory_space<vmem>>, %arg4: memref<16x512xbf16, #tpu.memory_space<vmem>>) attributes {dimension_semantics = [#tpu.dimension_semantics<parallel>], iteration_bounds = array<i64: 2>, scalar_prefetch = 0 : i64, scratch_operands = 0 : i64, tpu.core_type = #tpu.core_type<tc>, window_params = [{pipeline_mode = #tpu.pipeline_mode<synchronous>, transform_indices = @transform_0, window_bounds = array<i64: 16, 256>}, {transform_indices = @transform_1, window_bounds = array<i64: 256, 512>}, {pipeline_mode = #tpu.pipeline_mode<synchronous>, transform_indices = @transform_2, window_bounds = array<i64: 16, 1>}, {transform_indices = @transform_3, window_bounds = array<i64: 16, 512>}]} {
    %c0 = arith.constant 0 : index
    %c0_0 = arith.constant 0 : index
    %0 = vector.load %arg1[%c0, %c0_0] : memref<16x256xbf16, #tpu.memory_space<vmem>>, vector<16x256xbf16>
    %c0_1 = arith.constant 0 : index
    %c0_2 = arith.constant 0 : index
    %1 = vector.load %arg2[%c0_1, %c0_2] : memref<256x512xbf16, #tpu.memory_space<vmem>>, vector<256x512xbf16>
    %cst = arith.constant dense<0.000000e+00> : vector<16x512xf32>
    %2 = tpu.matmul %0, %1, %cst {dimension_numbers = #tpu.dot_dimension_numbers<[1], [0], [0], [1], [0, 0, 1, 1], [], []>} : vector<16x256xbf16>, vector<256x512xbf16>, vector<16x512xf32> -> vector<16x512xf32>
    %c0_3 = arith.constant 0 : index
    %c0_4 = arith.constant 0 : index
    %3 = vector.load %arg3[%c0_3, %c0_4] : memref<16x1xf32, #tpu.memory_space<vmem>>, vector<16x1xf32>
    %4 = vector.broadcast %3 : vector<16x1xf32> to vector<16x512xf32>
    %5 = arith.addf %2, %4 : vector<16x512xf32>
    %cst_5 = arith.constant 0.000000e+00 : f32
    %6 = vector.broadcast %cst_5 : f32 to vector<16x512xf32>
    %7 = arith.maximumf %5, %6 : vector<16x512xf32>
    %8 = arith.truncf %7 : vector<16x512xf32> to vector<16x512xbf16>
    %c0_6 = arith.constant 0 : index
    %c0_7 = arith.constant 0 : index
    %9 = vector.load %arg4[%c0_6, %c0_7] : memref<16x512xbf16, #tpu.memory_space<vmem>>, vector<16x512xbf16>
    tpu.vector_store %arg4[%c0_6, %c0_7], %8 {strides = array<i32>} : memref<16x512xbf16, #tpu.memory_space<vmem>>, vector<16x512xbf16>,
    return
  }
  func.func @transform_0(%arg0: i32) -> (i32, i32) {
    %c0_i32 = arith.constant 0 : i32
    %c0_i32_0 = arith.constant 0 : i32
    %c0_i32_1 = arith.constant 0 : i32
    return %c0_i32, %c0_i32_0 : i32, i32
  }
  func.func @transform_1(%arg0: i32) -> (i32, i32) {
    %c0_i32 = arith.constant 0 : i32
    %c0_i32_0 = arith.constant 0 : i32
    return %c0_i32, %arg0 : i32, i32
  }
  func.func @transform_2(%arg0: i32) -> (i32, i32) {
    %c0_i32 = arith.constant 0 : i32
    %c0_i32_0 = arith.constant 0 : i32
    %c0_i32_1 = arith.constant 0 : i32
    return %c0_i32, %c0_i32_0 : i32, i32
  }
  func.func @transform_3(%arg0: i32) -> (i32, i32) {
    %c0_i32 = arith.constant 0 : i32
    %c0_i32_0 = arith.constant 0 : i32
    return %c0_i32, %arg0 : i32, i32
  }
}

module attributes {stable_mosaic.version = 11 : i64} {
  func.func @kernel(%arg0: memref<256x162xbf16, #tpu.memory_space<vmem>>, %arg1: memref<32x256xbf16, #tpu.memory_space<vmem>>, %arg2: memref<32x1xf32, #tpu.memory_space<vmem>>, %arg3: memref<2592x256xbf16, #tpu.memory_space<vmem>>, %arg4: memref<1x256xf32, #tpu.memory_space<vmem>>, %arg5: memref<256x6xbf16, #tpu.memory_space<vmem>>, %arg6: memref<1x6xf32, #tpu.memory_space<vmem>>, %arg7: memref<2x6xf32, #tpu.memory_space<vmem>>, %arg8: memref<32x162xbf16, #tpu.memory_space<vmem>>, %arg9: memref<2x2592xbf16, #tpu.memory_space<vmem>>) attributes {dimension_semantics = [], scalar_prefetch = 0 : i64, scratch_operands = 2 : i64, tpu.core_type = #tpu.core_type<tc>} {
    %c0 = arith.constant 0 : index
    %c0_0 = arith.constant 0 : index
    %0 = vector.load %arg1[%c0, %c0_0] : memref<32x256xbf16, #tpu.memory_space<vmem>>, vector<32x256xbf16>
    %c0_1 = arith.constant 0 : index
    %c0_2 = arith.constant 0 : index
    %1 = vector.load %arg0[%c0_1, %c0_2] : memref<256x162xbf16, #tpu.memory_space<vmem>>, vector<256x162xbf16>
    %cst = arith.constant dense<0.000000e+00> : vector<32x162xf32>
    %2 = tpu.matmul %0, %1, %cst {dimension_numbers = #tpu.dot_dimension_numbers<[1], [0], [0], [1], [0, 0, 1, 1], [], []>} : vector<32x256xbf16>, vector<256x162xbf16>, vector<32x162xf32> -> vector<32x162xf32>
    %c0_3 = arith.constant 0 : index
    %c0_4 = arith.constant 0 : index
    %3 = vector.load %arg2[%c0_3, %c0_4] : memref<32x1xf32, #tpu.memory_space<vmem>>, vector<32x1xf32>
    %4 = vector.broadcast %3 : vector<32x1xf32> to vector<32x162xf32>
    %5 = arith.addf %2, %4 : vector<32x162xf32>
    %cst_5 = arith.constant 0.000000e+00 : f32
    %6 = vector.broadcast %cst_5 : f32 to vector<32x162xf32>
    %7 = arith.maximumf %5, %6 : vector<32x162xf32>
    %8 = arith.truncf %7 : vector<32x162xf32> to vector<32x162xbf16>
    %c0_6 = arith.constant 0 : index
    %c0_7 = arith.constant 0 : index
    %9 = vector.load %arg8[%c0_6, %c0_7] : memref<32x162xbf16, #tpu.memory_space<vmem>>, vector<32x162xbf16>
    tpu.vector_store %arg8[%c0_6, %c0_7], %8 {strides = array<i32>} : memref<32x162xbf16, #tpu.memory_space<vmem>>, vector<32x162xbf16>,
    %c0_8 = arith.constant 0 : index
    %c0_9 = arith.constant 0 : index
    %10 = vector.load %arg8[%c0_8, %c0_9] : memref<32x162xbf16, #tpu.memory_space<vmem>>, vector<1x81xbf16>
    %c0_10 = arith.constant 0 : index
    %c0_11 = arith.constant 0 : index
    %11 = vector.load %arg9[%c0_10, %c0_11] : memref<2x2592xbf16, #tpu.memory_space<vmem>>, vector<1x81xbf16>
    tpu.vector_store %arg9[%c0_10, %c0_11], %10 {strides = array<i32>} : memref<2x2592xbf16, #tpu.memory_space<vmem>>, vector<1x81xbf16>,
    %c1 = arith.constant 1 : index
    %c0_12 = arith.constant 0 : index
    %12 = vector.load %arg8[%c1, %c0_12] : memref<32x162xbf16, #tpu.memory_space<vmem>>, vector<1x81xbf16>
    %c0_13 = arith.constant 0 : index
    %c81 = arith.constant 81 : index
    %13 = vector.load %arg9[%c0_13, %c81] : memref<2x2592xbf16, #tpu.memory_space<vmem>>, vector<1x81xbf16>
    tpu.vector_store %arg9[%c0_13, %c81], %12 {strides = array<i32>} : memref<2x2592xbf16, #tpu.memory_space<vmem>>, vector<1x81xbf16>,
    %c2 = arith.constant 2 : index
    %c0_14 = arith.constant 0 : index
    %14 = vector.load %arg8[%c2, %c0_14] : memref<32x162xbf16, #tpu.memory_space<vmem>>, vector<1x81xbf16>
    %c0_15 = arith.constant 0 : index
    %c162 = arith.constant 162 : index
    %15 = vector.load %arg9[%c0_15, %c162] : memref<2x2592xbf16, #tpu.memory_space<vmem>>, vector<1x81xbf16>
    tpu.vector_store %arg9[%c0_15, %c162], %14 {strides = array<i32>} : memref<2x2592xbf16, #tpu.memory_space<vmem>>, vector<1x81xbf16>,
    %c3 = arith.constant 3 : index
    %c0_16 = arith.constant 0 : index
    %16 = vector.load %arg8[%c3, %c0_16] : memref<32x162xbf16, #tpu.memory_space<vmem>>, vector<1x81xbf16>
    %c0_17 = arith.constant 0 : index
    %c243 = arith.constant 243 : index
    %17 = vector.load %arg9[%c0_17, %c243] : memref<2x2592xbf16, #tpu.memory_space<vmem>>, vector<1x81xbf16>
    tpu.vector_store %arg9[%c0_17, %c243], %16 {strides = array<i32>} : memref<2x2592xbf16, #tpu.memory_space<vmem>>, vector<1x81xbf16>,
    %c4 = arith.constant 4 : index
    %c0_18 = arith.constant 0 : index
    %18 = vector.load %arg8[%c4, %c0_18] : memref<32x162xbf16, #tpu.memory_space<vmem>>, vector<1x81xbf16>
    %c0_19 = arith.constant 0 : index
    %c324 = arith.constant 324 : index
    %19 = vector.load %arg9[%c0_19, %c324] : memref<2x2592xbf16, #tpu.memory_space<vmem>>, vector<1x81xbf16>
    tpu.vector_store %arg9[%c0_19, %c324], %18 {strides = array<i32>} : memref<2x2592xbf16, #tpu.memory_space<vmem>>, vector<1x81xbf16>,
    %c5 = arith.constant 5 : index
    %c0_20 = arith.constant 0 : index
    %20 = vector.load %arg8[%c5, %c0_20] : memref<32x162xbf16, #tpu.memory_space<vmem>>, vector<1x81xbf16>
    %c0_21 = arith.constant 0 : index
    %c405 = arith.constant 405 : index
    %21 = vector.load %arg9[%c0_21, %c405] : memref<2x2592xbf16, #tpu.memory_space<vmem>>, vector<1x81xbf16>
    tpu.vector_store %arg9[%c0_21, %c405], %20 {strides = array<i32>} : memref<2x2592xbf16, #tpu.memory_space<vmem>>, vector<1x81xbf16>,
    %c6 = arith.constant 6 : index
    %c0_22 = arith.constant 0 : index
    %22 = vector.load %arg8[%c6, %c0_22] : memref<32x162xbf16, #tpu.memory_space<vmem>>, vector<1x81xbf16>
    %c0_23 = arith.constant 0 : index
    %c486 = arith.constant 486 : index
    %23 = vector.load %arg9[%c0_23, %c486] : memref<2x2592xbf16, #tpu.memory_space<vmem>>, vector<1x81xbf16>
    tpu.vector_store %arg9[%c0_23, %c486], %22 {strides = array<i32>} : memref<2x2592xbf16, #tpu.memory_space<vmem>>, vector<1x81xbf16>,
    %c7 = arith.constant 7 : index
    %c0_24 = arith.constant 0 : index
    %24 = vector.load %arg8[%c7, %c0_24] : memref<32x162xbf16, #tpu.memory_space<vmem>>, vector<1x81xbf16>
    %c0_25 = arith.constant 0 : index
    %c567 = arith.constant 567 : index
    %25 = vector.load %arg9[%c0_25, %c567] : memref<2x2592xbf16, #tpu.memory_space<vmem>>, vector<1x81xbf16>
    tpu.vector_store %arg9[%c0_25, %c567], %24 {strides = array<i32>} : memref<2x2592xbf16, #tpu.memory_space<vmem>>, vector<1x81xbf16>,
    %c8 = arith.constant 8 : index
    %c0_26 = arith.constant 0 : index
    %26 = vector.load %arg8[%c8, %c0_26] : memref<32x162xbf16, #tpu.memory_space<vmem>>, vector<1x81xbf16>
    %c0_27 = arith.constant 0 : index
    %c648 = arith.constant 648 : index
    %27 = vector.load %arg9[%c0_27, %c648] : memref<2x2592xbf16, #tpu.memory_space<vmem>>, vector<1x81xbf16>
    tpu.vector_store %arg9[%c0_27, %c648], %26 {strides = array<i32>} : memref<2x2592xbf16, #tpu.memory_space<vmem>>, vector<1x81xbf16>,
    %c9 = arith.constant 9 : index
    %c0_28 = arith.constant 0 : index
    %28 = vector.load %arg8[%c9, %c0_28] : memref<32x162xbf16, #tpu.memory_space<vmem>>, vector<1x81xbf16>
    %c0_29 = arith.constant 0 : index
    %c729 = arith.constant 729 : index
    %29 = vector.load %arg9[%c0_29, %c729] : memref<2x2592xbf16, #tpu.memory_space<vmem>>, vector<1x81xbf16>
    tpu.vector_store %arg9[%c0_29, %c729], %28 {strides = array<i32>} : memref<2x2592xbf16, #tpu.memory_space<vmem>>, vector<1x81xbf16>,
    %c10 = arith.constant 10 : index
    %c0_30 = arith.constant 0 : index
    %30 = vector.load %arg8[%c10, %c0_30] : memref<32x162xbf16, #tpu.memory_space<vmem>>, vector<1x81xbf16>
    %c0_31 = arith.constant 0 : index
    %c810 = arith.constant 810 : index
    %31 = vector.load %arg9[%c0_31, %c810] : memref<2x2592xbf16, #tpu.memory_space<vmem>>, vector<1x81xbf16>
    tpu.vector_store %arg9[%c0_31, %c810], %30 {strides = array<i32>} : memref<2x2592xbf16, #tpu.memory_space<vmem>>, vector<1x81xbf16>,
    %c11 = arith.constant 11 : index
    %c0_32 = arith.constant 0 : index
    %32 = vector.load %arg8[%c11, %c0_32] : memref<32x162xbf16, #tpu.memory_space<vmem>>, vector<1x81xbf16>
    %c0_33 = arith.constant 0 : index
    %c891 = arith.constant 891 : index
    %33 = vector.load %arg9[%c0_33, %c891] : memref<2x2592xbf16, #tpu.memory_space<vmem>>, vector<1x81xbf16>
    tpu.vector_store %arg9[%c0_33, %c891], %32 {strides = array<i32>} : memref<2x2592xbf16, #tpu.memory_space<vmem>>, vector<1x81xbf16>,
    %c12 = arith.constant 12 : index
    %c0_34 = arith.constant 0 : index
    %34 = vector.load %arg8[%c12, %c0_34] : memref<32x162xbf16, #tpu.memory_space<vmem>>, vector<1x81xbf16>
    %c0_35 = arith.constant 0 : index
    %c972 = arith.constant 972 : index
    %35 = vector.load %arg9[%c0_35, %c972] : memref<2x2592xbf16, #tpu.memory_space<vmem>>, vector<1x81xbf16>
    tpu.vector_store %arg9[%c0_35, %c972], %34 {strides = array<i32>} : memref<2x2592xbf16, #tpu.memory_space<vmem>>, vector<1x81xbf16>,
    %c13 = arith.constant 13 : index
    %c0_36 = arith.constant 0 : index
    %36 = vector.load %arg8[%c13, %c0_36] : memref<32x162xbf16, #tpu.memory_space<vmem>>, vector<1x81xbf16>
    %c0_37 = arith.constant 0 : index
    %c1053 = arith.constant 1053 : index
    %37 = vector.load %arg9[%c0_37, %c1053] : memref<2x2592xbf16, #tpu.memory_space<vmem>>, vector<1x81xbf16>
    tpu.vector_store %arg9[%c0_37, %c1053], %36 {strides = array<i32>} : memref<2x2592xbf16, #tpu.memory_space<vmem>>, vector<1x81xbf16>,
    %c14 = arith.constant 14 : index
    %c0_38 = arith.constant 0 : index
    %38 = vector.load %arg8[%c14, %c0_38] : memref<32x162xbf16, #tpu.memory_space<vmem>>, vector<1x81xbf16>
    %c0_39 = arith.constant 0 : index
    %c1134 = arith.constant 1134 : index
    %39 = vector.load %arg9[%c0_39, %c1134] : memref<2x2592xbf16, #tpu.memory_space<vmem>>, vector<1x81xbf16>
    tpu.vector_store %arg9[%c0_39, %c1134], %38 {strides = array<i32>} : memref<2x2592xbf16, #tpu.memory_space<vmem>>, vector<1x81xbf16>,
    %c15 = arith.constant 15 : index
    %c0_40 = arith.constant 0 : index
    %40 = vector.load %arg8[%c15, %c0_40] : memref<32x162xbf16, #tpu.memory_space<vmem>>, vector<1x81xbf16>
    %c0_41 = arith.constant 0 : index
    %c1215 = arith.constant 1215 : index
    %41 = vector.load %arg9[%c0_41, %c1215] : memref<2x2592xbf16, #tpu.memory_space<vmem>>, vector<1x81xbf16>
    tpu.vector_store %arg9[%c0_41, %c1215], %40 {strides = array<i32>} : memref<2x2592xbf16, #tpu.memory_space<vmem>>, vector<1x81xbf16>,
    %c16 = arith.constant 16 : index
    %c0_42 = arith.constant 0 : index
    %42 = vector.load %arg8[%c16, %c0_42] : memref<32x162xbf16, #tpu.memory_space<vmem>>, vector<1x81xbf16>
    %c0_43 = arith.constant 0 : index
    %c1296 = arith.constant 1296 : index
    %43 = vector.load %arg9[%c0_43, %c1296] : memref<2x2592xbf16, #tpu.memory_space<vmem>>, vector<1x81xbf16>
    tpu.vector_store %arg9[%c0_43, %c1296], %42 {strides = array<i32>} : memref<2x2592xbf16, #tpu.memory_space<vmem>>, vector<1x81xbf16>,
    %c17 = arith.constant 17 : index
    %c0_44 = arith.constant 0 : index
    %44 = vector.load %arg8[%c17, %c0_44] : memref<32x162xbf16, #tpu.memory_space<vmem>>, vector<1x81xbf16>
    %c0_45 = arith.constant 0 : index
    %c1377 = arith.constant 1377 : index
    %45 = vector.load %arg9[%c0_45, %c1377] : memref<2x2592xbf16, #tpu.memory_space<vmem>>, vector<1x81xbf16>
    tpu.vector_store %arg9[%c0_45, %c1377], %44 {strides = array<i32>} : memref<2x2592xbf16, #tpu.memory_space<vmem>>, vector<1x81xbf16>,
    %c18 = arith.constant 18 : index
    %c0_46 = arith.constant 0 : index
    %46 = vector.load %arg8[%c18, %c0_46] : memref<32x162xbf16, #tpu.memory_space<vmem>>, vector<1x81xbf16>
    %c0_47 = arith.constant 0 : index
    %c1458 = arith.constant 1458 : index
    %47 = vector.load %arg9[%c0_47, %c1458] : memref<2x2592xbf16, #tpu.memory_space<vmem>>, vector<1x81xbf16>
    tpu.vector_store %arg9[%c0_47, %c1458], %46 {strides = array<i32>} : memref<2x2592xbf16, #tpu.memory_space<vmem>>, vector<1x81xbf16>,
    %c19 = arith.constant 19 : index
    %c0_48 = arith.constant 0 : index
    %48 = vector.load %arg8[%c19, %c0_48] : memref<32x162xbf16, #tpu.memory_space<vmem>>, vector<1x81xbf16>
    %c0_49 = arith.constant 0 : index
    %c1539 = arith.constant 1539 : index
    %49 = vector.load %arg9[%c0_49, %c1539] : memref<2x2592xbf16, #tpu.memory_space<vmem>>, vector<1x81xbf16>
    tpu.vector_store %arg9[%c0_49, %c1539], %48 {strides = array<i32>} : memref<2x2592xbf16, #tpu.memory_space<vmem>>, vector<1x81xbf16>,
    %c20 = arith.constant 20 : index
    %c0_50 = arith.constant 0 : index
    %50 = vector.load %arg8[%c20, %c0_50] : memref<32x162xbf16, #tpu.memory_space<vmem>>, vector<1x81xbf16>
    %c0_51 = arith.constant 0 : index
    %c1620 = arith.constant 1620 : index
    %51 = vector.load %arg9[%c0_51, %c1620] : memref<2x2592xbf16, #tpu.memory_space<vmem>>, vector<1x81xbf16>
    tpu.vector_store %arg9[%c0_51, %c1620], %50 {strides = array<i32>} : memref<2x2592xbf16, #tpu.memory_space<vmem>>, vector<1x81xbf16>,
    %c21 = arith.constant 21 : index
    %c0_52 = arith.constant 0 : index
    %52 = vector.load %arg8[%c21, %c0_52] : memref<32x162xbf16, #tpu.memory_space<vmem>>, vector<1x81xbf16>
    %c0_53 = arith.constant 0 : index
    %c1701 = arith.constant 1701 : index
    %53 = vector.load %arg9[%c0_53, %c1701] : memref<2x2592xbf16, #tpu.memory_space<vmem>>, vector<1x81xbf16>
    tpu.vector_store %arg9[%c0_53, %c1701], %52 {strides = array<i32>} : memref<2x2592xbf16, #tpu.memory_space<vmem>>, vector<1x81xbf16>,
    %c22 = arith.constant 22 : index
    %c0_54 = arith.constant 0 : index
    %54 = vector.load %arg8[%c22, %c0_54] : memref<32x162xbf16, #tpu.memory_space<vmem>>, vector<1x81xbf16>
    %c0_55 = arith.constant 0 : index
    %c1782 = arith.constant 1782 : index
    %55 = vector.load %arg9[%c0_55, %c1782] : memref<2x2592xbf16, #tpu.memory_space<vmem>>, vector<1x81xbf16>
    tpu.vector_store %arg9[%c0_55, %c1782], %54 {strides = array<i32>} : memref<2x2592xbf16, #tpu.memory_space<vmem>>, vector<1x81xbf16>,
    %c23 = arith.constant 23 : index
    %c0_56 = arith.constant 0 : index
    %56 = vector.load %arg8[%c23, %c0_56] : memref<32x162xbf16, #tpu.memory_space<vmem>>, vector<1x81xbf16>
    %c0_57 = arith.constant 0 : index
    %c1863 = arith.constant 1863 : index
    %57 = vector.load %arg9[%c0_57, %c1863] : memref<2x2592xbf16, #tpu.memory_space<vmem>>, vector<1x81xbf16>
    tpu.vector_store %arg9[%c0_57, %c1863], %56 {strides = array<i32>} : memref<2x2592xbf16, #tpu.memory_space<vmem>>, vector<1x81xbf16>,
    %c24 = arith.constant 24 : index
    %c0_58 = arith.constant 0 : index
    %58 = vector.load %arg8[%c24, %c0_58] : memref<32x162xbf16, #tpu.memory_space<vmem>>, vector<1x81xbf16>
    %c0_59 = arith.constant 0 : index
    %c1944 = arith.constant 1944 : index
    %59 = vector.load %arg9[%c0_59, %c1944] : memref<2x2592xbf16, #tpu.memory_space<vmem>>, vector<1x81xbf16>
    tpu.vector_store %arg9[%c0_59, %c1944], %58 {strides = array<i32>} : memref<2x2592xbf16, #tpu.memory_space<vmem>>, vector<1x81xbf16>,
    %c25 = arith.constant 25 : index
    %c0_60 = arith.constant 0 : index
    %60 = vector.load %arg8[%c25, %c0_60] : memref<32x162xbf16, #tpu.memory_space<vmem>>, vector<1x81xbf16>
    %c0_61 = arith.constant 0 : index
    %c2025 = arith.constant 2025 : index
    %61 = vector.load %arg9[%c0_61, %c2025] : memref<2x2592xbf16, #tpu.memory_space<vmem>>, vector<1x81xbf16>
    tpu.vector_store %arg9[%c0_61, %c2025], %60 {strides = array<i32>} : memref<2x2592xbf16, #tpu.memory_space<vmem>>, vector<1x81xbf16>,
    %c26 = arith.constant 26 : index
    %c0_62 = arith.constant 0 : index
    %62 = vector.load %arg8[%c26, %c0_62] : memref<32x162xbf16, #tpu.memory_space<vmem>>, vector<1x81xbf16>
    %c0_63 = arith.constant 0 : index
    %c2106 = arith.constant 2106 : index
    %63 = vector.load %arg9[%c0_63, %c2106] : memref<2x2592xbf16, #tpu.memory_space<vmem>>, vector<1x81xbf16>
    tpu.vector_store %arg9[%c0_63, %c2106], %62 {strides = array<i32>} : memref<2x2592xbf16, #tpu.memory_space<vmem>>, vector<1x81xbf16>,
    %c27 = arith.constant 27 : index
    %c0_64 = arith.constant 0 : index
    %64 = vector.load %arg8[%c27, %c0_64] : memref<32x162xbf16, #tpu.memory_space<vmem>>, vector<1x81xbf16>
    %c0_65 = arith.constant 0 : index
    %c2187 = arith.constant 2187 : index
    %65 = vector.load %arg9[%c0_65, %c2187] : memref<2x2592xbf16, #tpu.memory_space<vmem>>, vector<1x81xbf16>
    tpu.vector_store %arg9[%c0_65, %c2187], %64 {strides = array<i32>} : memref<2x2592xbf16, #tpu.memory_space<vmem>>, vector<1x81xbf16>,
    %c28 = arith.constant 28 : index
    %c0_66 = arith.constant 0 : index
    %66 = vector.load %arg8[%c28, %c0_66] : memref<32x162xbf16, #tpu.memory_space<vmem>>, vector<1x81xbf16>
    %c0_67 = arith.constant 0 : index
    %c2268 = arith.constant 2268 : index
    %67 = vector.load %arg9[%c0_67, %c2268] : memref<2x2592xbf16, #tpu.memory_space<vmem>>, vector<1x81xbf16>
    tpu.vector_store %arg9[%c0_67, %c2268], %66 {strides = array<i32>} : memref<2x2592xbf16, #tpu.memory_space<vmem>>, vector<1x81xbf16>,
    %c29 = arith.constant 29 : index
    %c0_68 = arith.constant 0 : index
    %68 = vector.load %arg8[%c29, %c0_68] : memref<32x162xbf16, #tpu.memory_space<vmem>>, vector<1x81xbf16>
    %c0_69 = arith.constant 0 : index
    %c2349 = arith.constant 2349 : index
    %69 = vector.load %arg9[%c0_69, %c2349] : memref<2x2592xbf16, #tpu.memory_space<vmem>>, vector<1x81xbf16>
    tpu.vector_store %arg9[%c0_69, %c2349], %68 {strides = array<i32>} : memref<2x2592xbf16, #tpu.memory_space<vmem>>, vector<1x81xbf16>,
    %c30 = arith.constant 30 : index
    %c0_70 = arith.constant 0 : index
    %70 = vector.load %arg8[%c30, %c0_70] : memref<32x162xbf16, #tpu.memory_space<vmem>>, vector<1x81xbf16>
    %c0_71 = arith.constant 0 : index
    %c2430 = arith.constant 2430 : index
    %71 = vector.load %arg9[%c0_71, %c2430] : memref<2x2592xbf16, #tpu.memory_space<vmem>>, vector<1x81xbf16>
    tpu.vector_store %arg9[%c0_71, %c2430], %70 {strides = array<i32>} : memref<2x2592xbf16, #tpu.memory_space<vmem>>, vector<1x81xbf16>,
    %c31 = arith.constant 31 : index
    %c0_72 = arith.constant 0 : index
    %72 = vector.load %arg8[%c31, %c0_72] : memref<32x162xbf16, #tpu.memory_space<vmem>>, vector<1x81xbf16>
    %c0_73 = arith.constant 0 : index
    %c2511 = arith.constant 2511 : index
    %73 = vector.load %arg9[%c0_73, %c2511] : memref<2x2592xbf16, #tpu.memory_space<vmem>>, vector<1x81xbf16>
    tpu.vector_store %arg9[%c0_73, %c2511], %72 {strides = array<i32>} : memref<2x2592xbf16, #tpu.memory_space<vmem>>, vector<1x81xbf16>,
    %c0_74 = arith.constant 0 : index
    %c81_75 = arith.constant 81 : index
    %74 = vector.load %arg8[%c0_74, %c81_75] : memref<32x162xbf16, #tpu.memory_space<vmem>>, vector<1x81xbf16>
    %c1_76 = arith.constant 1 : index
    %c0_77 = arith.constant 0 : index
    %75 = vector.load %arg9[%c1_76, %c0_77] : memref<2x2592xbf16, #tpu.memory_space<vmem>>, vector<1x81xbf16>
    tpu.vector_store %arg9[%c1_76, %c0_77], %74 {strides = array<i32>} : memref<2x2592xbf16, #tpu.memory_space<vmem>>, vector<1x81xbf16>,
    %c1_78 = arith.constant 1 : index
    %c81_79 = arith.constant 81 : index
    %76 = vector.load %arg8[%c1_78, %c81_79] : memref<32x162xbf16, #tpu.memory_space<vmem>>, vector<1x81xbf16>
    %c1_80 = arith.constant 1 : index
    %c81_81 = arith.constant 81 : index
    %77 = vector.load %arg9[%c1_80, %c81_81] : memref<2x2592xbf16, #tpu.memory_space<vmem>>, vector<1x81xbf16>
    tpu.vector_store %arg9[%c1_80, %c81_81], %76 {strides = array<i32>} : memref<2x2592xbf16, #tpu.memory_space<vmem>>, vector<1x81xbf16>,
    %c2_82 = arith.constant 2 : index
    %c81_83 = arith.constant 81 : index
    %78 = vector.load %arg8[%c2_82, %c81_83] : memref<32x162xbf16, #tpu.memory_space<vmem>>, vector<1x81xbf16>
    %c1_84 = arith.constant 1 : index
    %c162_85 = arith.constant 162 : index
    %79 = vector.load %arg9[%c1_84, %c162_85] : memref<2x2592xbf16, #tpu.memory_space<vmem>>, vector<1x81xbf16>
    tpu.vector_store %arg9[%c1_84, %c162_85], %78 {strides = array<i32>} : memref<2x2592xbf16, #tpu.memory_space<vmem>>, vector<1x81xbf16>,
    %c3_86 = arith.constant 3 : index
    %c81_87 = arith.constant 81 : index
    %80 = vector.load %arg8[%c3_86, %c81_87] : memref<32x162xbf16, #tpu.memory_space<vmem>>, vector<1x81xbf16>
    %c1_88 = arith.constant 1 : index
    %c243_89 = arith.constant 243 : index
    %81 = vector.load %arg9[%c1_88, %c243_89] : memref<2x2592xbf16, #tpu.memory_space<vmem>>, vector<1x81xbf16>
    tpu.vector_store %arg9[%c1_88, %c243_89], %80 {strides = array<i32>} : memref<2x2592xbf16, #tpu.memory_space<vmem>>, vector<1x81xbf16>,
    %c4_90 = arith.constant 4 : index
    %c81_91 = arith.constant 81 : index
    %82 = vector.load %arg8[%c4_90, %c81_91] : memref<32x162xbf16, #tpu.memory_space<vmem>>, vector<1x81xbf16>
    %c1_92 = arith.constant 1 : index
    %c324_93 = arith.constant 324 : index
    %83 = vector.load %arg9[%c1_92, %c324_93] : memref<2x2592xbf16, #tpu.memory_space<vmem>>, vector<1x81xbf16>
    tpu.vector_store %arg9[%c1_92, %c324_93], %82 {strides = array<i32>} : memref<2x2592xbf16, #tpu.memory_space<vmem>>, vector<1x81xbf16>,
    %c5_94 = arith.constant 5 : index
    %c81_95 = arith.constant 81 : index
    %84 = vector.load %arg8[%c5_94, %c81_95] : memref<32x162xbf16, #tpu.memory_space<vmem>>, vector<1x81xbf16>
    %c1_96 = arith.constant 1 : index
    %c405_97 = arith.constant 405 : index
    %85 = vector.load %arg9[%c1_96, %c405_97] : memref<2x2592xbf16, #tpu.memory_space<vmem>>, vector<1x81xbf16>
    tpu.vector_store %arg9[%c1_96, %c405_97], %84 {strides = array<i32>} : memref<2x2592xbf16, #tpu.memory_space<vmem>>, vector<1x81xbf16>,
    %c6_98 = arith.constant 6 : index
    %c81_99 = arith.constant 81 : index
    %86 = vector.load %arg8[%c6_98, %c81_99] : memref<32x162xbf16, #tpu.memory_space<vmem>>, vector<1x81xbf16>
    %c1_100 = arith.constant 1 : index
    %c486_101 = arith.constant 486 : index
    %87 = vector.load %arg9[%c1_100, %c486_101] : memref<2x2592xbf16, #tpu.memory_space<vmem>>, vector<1x81xbf16>
    tpu.vector_store %arg9[%c1_100, %c486_101], %86 {strides = array<i32>} : memref<2x2592xbf16, #tpu.memory_space<vmem>>, vector<1x81xbf16>,
    %c7_102 = arith.constant 7 : index
    %c81_103 = arith.constant 81 : index
    %88 = vector.load %arg8[%c7_102, %c81_103] : memref<32x162xbf16, #tpu.memory_space<vmem>>, vector<1x81xbf16>
    %c1_104 = arith.constant 1 : index
    %c567_105 = arith.constant 567 : index
    %89 = vector.load %arg9[%c1_104, %c567_105] : memref<2x2592xbf16, #tpu.memory_space<vmem>>, vector<1x81xbf16>
    tpu.vector_store %arg9[%c1_104, %c567_105], %88 {strides = array<i32>} : memref<2x2592xbf16, #tpu.memory_space<vmem>>, vector<1x81xbf16>,
    %c8_106 = arith.constant 8 : index
    %c81_107 = arith.constant 81 : index
    %90 = vector.load %arg8[%c8_106, %c81_107] : memref<32x162xbf16, #tpu.memory_space<vmem>>, vector<1x81xbf16>
    %c1_108 = arith.constant 1 : index
    %c648_109 = arith.constant 648 : index
    %91 = vector.load %arg9[%c1_108, %c648_109] : memref<2x2592xbf16, #tpu.memory_space<vmem>>, vector<1x81xbf16>
    tpu.vector_store %arg9[%c1_108, %c648_109], %90 {strides = array<i32>} : memref<2x2592xbf16, #tpu.memory_space<vmem>>, vector<1x81xbf16>,
    %c9_110 = arith.constant 9 : index
    %c81_111 = arith.constant 81 : index
    %92 = vector.load %arg8[%c9_110, %c81_111] : memref<32x162xbf16, #tpu.memory_space<vmem>>, vector<1x81xbf16>
    %c1_112 = arith.constant 1 : index
    %c729_113 = arith.constant 729 : index
    %93 = vector.load %arg9[%c1_112, %c729_113] : memref<2x2592xbf16, #tpu.memory_space<vmem>>, vector<1x81xbf16>
    tpu.vector_store %arg9[%c1_112, %c729_113], %92 {strides = array<i32>} : memref<2x2592xbf16, #tpu.memory_space<vmem>>, vector<1x81xbf16>,
    %c10_114 = arith.constant 10 : index
    %c81_115 = arith.constant 81 : index
    %94 = vector.load %arg8[%c10_114, %c81_115] : memref<32x162xbf16, #tpu.memory_space<vmem>>, vector<1x81xbf16>
    %c1_116 = arith.constant 1 : index
    %c810_117 = arith.constant 810 : index
    %95 = vector.load %arg9[%c1_116, %c810_117] : memref<2x2592xbf16, #tpu.memory_space<vmem>>, vector<1x81xbf16>
    tpu.vector_store %arg9[%c1_116, %c810_117], %94 {strides = array<i32>} : memref<2x2592xbf16, #tpu.memory_space<vmem>>, vector<1x81xbf16>,
    %c11_118 = arith.constant 11 : index
    %c81_119 = arith.constant 81 : index
    %96 = vector.load %arg8[%c11_118, %c81_119] : memref<32x162xbf16, #tpu.memory_space<vmem>>, vector<1x81xbf16>
    %c1_120 = arith.constant 1 : index
    %c891_121 = arith.constant 891 : index
    %97 = vector.load %arg9[%c1_120, %c891_121] : memref<2x2592xbf16, #tpu.memory_space<vmem>>, vector<1x81xbf16>
    tpu.vector_store %arg9[%c1_120, %c891_121], %96 {strides = array<i32>} : memref<2x2592xbf16, #tpu.memory_space<vmem>>, vector<1x81xbf16>,
    %c12_122 = arith.constant 12 : index
    %c81_123 = arith.constant 81 : index
    %98 = vector.load %arg8[%c12_122, %c81_123] : memref<32x162xbf16, #tpu.memory_space<vmem>>, vector<1x81xbf16>
    %c1_124 = arith.constant 1 : index
    %c972_125 = arith.constant 972 : index
    %99 = vector.load %arg9[%c1_124, %c972_125] : memref<2x2592xbf16, #tpu.memory_space<vmem>>, vector<1x81xbf16>
    tpu.vector_store %arg9[%c1_124, %c972_125], %98 {strides = array<i32>} : memref<2x2592xbf16, #tpu.memory_space<vmem>>, vector<1x81xbf16>,
    %c13_126 = arith.constant 13 : index
    %c81_127 = arith.constant 81 : index
    %100 = vector.load %arg8[%c13_126, %c81_127] : memref<32x162xbf16, #tpu.memory_space<vmem>>, vector<1x81xbf16>
    %c1_128 = arith.constant 1 : index
    %c1053_129 = arith.constant 1053 : index
    %101 = vector.load %arg9[%c1_128, %c1053_129] : memref<2x2592xbf16, #tpu.memory_space<vmem>>, vector<1x81xbf16>
    tpu.vector_store %arg9[%c1_128, %c1053_129], %100 {strides = array<i32>} : memref<2x2592xbf16, #tpu.memory_space<vmem>>, vector<1x81xbf16>,
    %c14_130 = arith.constant 14 : index
    %c81_131 = arith.constant 81 : index
    %102 = vector.load %arg8[%c14_130, %c81_131] : memref<32x162xbf16, #tpu.memory_space<vmem>>, vector<1x81xbf16>
    %c1_132 = arith.constant 1 : index
    %c1134_133 = arith.constant 1134 : index
    %103 = vector.load %arg9[%c1_132, %c1134_133] : memref<2x2592xbf16, #tpu.memory_space<vmem>>, vector<1x81xbf16>
    tpu.vector_store %arg9[%c1_132, %c1134_133], %102 {strides = array<i32>} : memref<2x2592xbf16, #tpu.memory_space<vmem>>, vector<1x81xbf16>,
    %c15_134 = arith.constant 15 : index
    %c81_135 = arith.constant 81 : index
    %104 = vector.load %arg8[%c15_134, %c81_135] : memref<32x162xbf16, #tpu.memory_space<vmem>>, vector<1x81xbf16>
    %c1_136 = arith.constant 1 : index
    %c1215_137 = arith.constant 1215 : index
    %105 = vector.load %arg9[%c1_136, %c1215_137] : memref<2x2592xbf16, #tpu.memory_space<vmem>>, vector<1x81xbf16>
    tpu.vector_store %arg9[%c1_136, %c1215_137], %104 {strides = array<i32>} : memref<2x2592xbf16, #tpu.memory_space<vmem>>, vector<1x81xbf16>,
    %c16_138 = arith.constant 16 : index
    %c81_139 = arith.constant 81 : index
    %106 = vector.load %arg8[%c16_138, %c81_139] : memref<32x162xbf16, #tpu.memory_space<vmem>>, vector<1x81xbf16>
    %c1_140 = arith.constant 1 : index
    %c1296_141 = arith.constant 1296 : index
    %107 = vector.load %arg9[%c1_140, %c1296_141] : memref<2x2592xbf16, #tpu.memory_space<vmem>>, vector<1x81xbf16>
    tpu.vector_store %arg9[%c1_140, %c1296_141], %106 {strides = array<i32>} : memref<2x2592xbf16, #tpu.memory_space<vmem>>, vector<1x81xbf16>,
    %c17_142 = arith.constant 17 : index
    %c81_143 = arith.constant 81 : index
    %108 = vector.load %arg8[%c17_142, %c81_143] : memref<32x162xbf16, #tpu.memory_space<vmem>>, vector<1x81xbf16>
    %c1_144 = arith.constant 1 : index
    %c1377_145 = arith.constant 1377 : index
    %109 = vector.load %arg9[%c1_144, %c1377_145] : memref<2x2592xbf16, #tpu.memory_space<vmem>>, vector<1x81xbf16>
    tpu.vector_store %arg9[%c1_144, %c1377_145], %108 {strides = array<i32>} : memref<2x2592xbf16, #tpu.memory_space<vmem>>, vector<1x81xbf16>,
    %c18_146 = arith.constant 18 : index
    %c81_147 = arith.constant 81 : index
    %110 = vector.load %arg8[%c18_146, %c81_147] : memref<32x162xbf16, #tpu.memory_space<vmem>>, vector<1x81xbf16>
    %c1_148 = arith.constant 1 : index
    %c1458_149 = arith.constant 1458 : index
    %111 = vector.load %arg9[%c1_148, %c1458_149] : memref<2x2592xbf16, #tpu.memory_space<vmem>>, vector<1x81xbf16>
    tpu.vector_store %arg9[%c1_148, %c1458_149], %110 {strides = array<i32>} : memref<2x2592xbf16, #tpu.memory_space<vmem>>, vector<1x81xbf16>,
    %c19_150 = arith.constant 19 : index
    %c81_151 = arith.constant 81 : index
    %112 = vector.load %arg8[%c19_150, %c81_151] : memref<32x162xbf16, #tpu.memory_space<vmem>>, vector<1x81xbf16>
    %c1_152 = arith.constant 1 : index
    %c1539_153 = arith.constant 1539 : index
    %113 = vector.load %arg9[%c1_152, %c1539_153] : memref<2x2592xbf16, #tpu.memory_space<vmem>>, vector<1x81xbf16>
    tpu.vector_store %arg9[%c1_152, %c1539_153], %112 {strides = array<i32>} : memref<2x2592xbf16, #tpu.memory_space<vmem>>, vector<1x81xbf16>,
    %c20_154 = arith.constant 20 : index
    %c81_155 = arith.constant 81 : index
    %114 = vector.load %arg8[%c20_154, %c81_155] : memref<32x162xbf16, #tpu.memory_space<vmem>>, vector<1x81xbf16>
    %c1_156 = arith.constant 1 : index
    %c1620_157 = arith.constant 1620 : index
    %115 = vector.load %arg9[%c1_156, %c1620_157] : memref<2x2592xbf16, #tpu.memory_space<vmem>>, vector<1x81xbf16>
    tpu.vector_store %arg9[%c1_156, %c1620_157], %114 {strides = array<i32>} : memref<2x2592xbf16, #tpu.memory_space<vmem>>, vector<1x81xbf16>,
    %c21_158 = arith.constant 21 : index
    %c81_159 = arith.constant 81 : index
    %116 = vector.load %arg8[%c21_158, %c81_159] : memref<32x162xbf16, #tpu.memory_space<vmem>>, vector<1x81xbf16>
    %c1_160 = arith.constant 1 : index
    %c1701_161 = arith.constant 1701 : index
    %117 = vector.load %arg9[%c1_160, %c1701_161] : memref<2x2592xbf16, #tpu.memory_space<vmem>>, vector<1x81xbf16>
    tpu.vector_store %arg9[%c1_160, %c1701_161], %116 {strides = array<i32>} : memref<2x2592xbf16, #tpu.memory_space<vmem>>, vector<1x81xbf16>,
    %c22_162 = arith.constant 22 : index
    %c81_163 = arith.constant 81 : index
    %118 = vector.load %arg8[%c22_162, %c81_163] : memref<32x162xbf16, #tpu.memory_space<vmem>>, vector<1x81xbf16>
    %c1_164 = arith.constant 1 : index
    %c1782_165 = arith.constant 1782 : index
    %119 = vector.load %arg9[%c1_164, %c1782_165] : memref<2x2592xbf16, #tpu.memory_space<vmem>>, vector<1x81xbf16>
    tpu.vector_store %arg9[%c1_164, %c1782_165], %118 {strides = array<i32>} : memref<2x2592xbf16, #tpu.memory_space<vmem>>, vector<1x81xbf16>,
    %c23_166 = arith.constant 23 : index
    %c81_167 = arith.constant 81 : index
    %120 = vector.load %arg8[%c23_166, %c81_167] : memref<32x162xbf16, #tpu.memory_space<vmem>>, vector<1x81xbf16>
    %c1_168 = arith.constant 1 : index
    %c1863_169 = arith.constant 1863 : index
    %121 = vector.load %arg9[%c1_168, %c1863_169] : memref<2x2592xbf16, #tpu.memory_space<vmem>>, vector<1x81xbf16>
    tpu.vector_store %arg9[%c1_168, %c1863_169], %120 {strides = array<i32>} : memref<2x2592xbf16, #tpu.memory_space<vmem>>, vector<1x81xbf16>,
    %c24_170 = arith.constant 24 : index
    %c81_171 = arith.constant 81 : index
    %122 = vector.load %arg8[%c24_170, %c81_171] : memref<32x162xbf16, #tpu.memory_space<vmem>>, vector<1x81xbf16>
    %c1_172 = arith.constant 1 : index
    %c1944_173 = arith.constant 1944 : index
    %123 = vector.load %arg9[%c1_172, %c1944_173] : memref<2x2592xbf16, #tpu.memory_space<vmem>>, vector<1x81xbf16>
    tpu.vector_store %arg9[%c1_172, %c1944_173], %122 {strides = array<i32>} : memref<2x2592xbf16, #tpu.memory_space<vmem>>, vector<1x81xbf16>,
    %c25_174 = arith.constant 25 : index
    %c81_175 = arith.constant 81 : index
    %124 = vector.load %arg8[%c25_174, %c81_175] : memref<32x162xbf16, #tpu.memory_space<vmem>>, vector<1x81xbf16>
    %c1_176 = arith.constant 1 : index
    %c2025_177 = arith.constant 2025 : index
    %125 = vector.load %arg9[%c1_176, %c2025_177] : memref<2x2592xbf16, #tpu.memory_space<vmem>>, vector<1x81xbf16>
    tpu.vector_store %arg9[%c1_176, %c2025_177], %124 {strides = array<i32>} : memref<2x2592xbf16, #tpu.memory_space<vmem>>, vector<1x81xbf16>,
    %c26_178 = arith.constant 26 : index
    %c81_179 = arith.constant 81 : index
    %126 = vector.load %arg8[%c26_178, %c81_179] : memref<32x162xbf16, #tpu.memory_space<vmem>>, vector<1x81xbf16>
    %c1_180 = arith.constant 1 : index
    %c2106_181 = arith.constant 2106 : index
    %127 = vector.load %arg9[%c1_180, %c2106_181] : memref<2x2592xbf16, #tpu.memory_space<vmem>>, vector<1x81xbf16>
    tpu.vector_store %arg9[%c1_180, %c2106_181], %126 {strides = array<i32>} : memref<2x2592xbf16, #tpu.memory_space<vmem>>, vector<1x81xbf16>,
    %c27_182 = arith.constant 27 : index
    %c81_183 = arith.constant 81 : index
    %128 = vector.load %arg8[%c27_182, %c81_183] : memref<32x162xbf16, #tpu.memory_space<vmem>>, vector<1x81xbf16>
    %c1_184 = arith.constant 1 : index
    %c2187_185 = arith.constant 2187 : index
    %129 = vector.load %arg9[%c1_184, %c2187_185] : memref<2x2592xbf16, #tpu.memory_space<vmem>>, vector<1x81xbf16>
    tpu.vector_store %arg9[%c1_184, %c2187_185], %128 {strides = array<i32>} : memref<2x2592xbf16, #tpu.memory_space<vmem>>, vector<1x81xbf16>,
    %c28_186 = arith.constant 28 : index
    %c81_187 = arith.constant 81 : index
    %130 = vector.load %arg8[%c28_186, %c81_187] : memref<32x162xbf16, #tpu.memory_space<vmem>>, vector<1x81xbf16>
    %c1_188 = arith.constant 1 : index
    %c2268_189 = arith.constant 2268 : index
    %131 = vector.load %arg9[%c1_188, %c2268_189] : memref<2x2592xbf16, #tpu.memory_space<vmem>>, vector<1x81xbf16>
    tpu.vector_store %arg9[%c1_188, %c2268_189], %130 {strides = array<i32>} : memref<2x2592xbf16, #tpu.memory_space<vmem>>, vector<1x81xbf16>,
    %c29_190 = arith.constant 29 : index
    %c81_191 = arith.constant 81 : index
    %132 = vector.load %arg8[%c29_190, %c81_191] : memref<32x162xbf16, #tpu.memory_space<vmem>>, vector<1x81xbf16>
    %c1_192 = arith.constant 1 : index
    %c2349_193 = arith.constant 2349 : index
    %133 = vector.load %arg9[%c1_192, %c2349_193] : memref<2x2592xbf16, #tpu.memory_space<vmem>>, vector<1x81xbf16>
    tpu.vector_store %arg9[%c1_192, %c2349_193], %132 {strides = array<i32>} : memref<2x2592xbf16, #tpu.memory_space<vmem>>, vector<1x81xbf16>,
    %c30_194 = arith.constant 30 : index
    %c81_195 = arith.constant 81 : index
    %134 = vector.load %arg8[%c30_194, %c81_195] : memref<32x162xbf16, #tpu.memory_space<vmem>>, vector<1x81xbf16>
    %c1_196 = arith.constant 1 : index
    %c2430_197 = arith.constant 2430 : index
    %135 = vector.load %arg9[%c1_196, %c2430_197] : memref<2x2592xbf16, #tpu.memory_space<vmem>>, vector<1x81xbf16>
    tpu.vector_store %arg9[%c1_196, %c2430_197], %134 {strides = array<i32>} : memref<2x2592xbf16, #tpu.memory_space<vmem>>, vector<1x81xbf16>,
    %c31_198 = arith.constant 31 : index
    %c81_199 = arith.constant 81 : index
    %136 = vector.load %arg8[%c31_198, %c81_199] : memref<32x162xbf16, #tpu.memory_space<vmem>>, vector<1x81xbf16>
    %c1_200 = arith.constant 1 : index
    %c2511_201 = arith.constant 2511 : index
    %137 = vector.load %arg9[%c1_200, %c2511_201] : memref<2x2592xbf16, #tpu.memory_space<vmem>>, vector<1x81xbf16>
    tpu.vector_store %arg9[%c1_200, %c2511_201], %136 {strides = array<i32>} : memref<2x2592xbf16, #tpu.memory_space<vmem>>, vector<1x81xbf16>,
    %c0_202 = arith.constant 0 : index
    %c0_203 = arith.constant 0 : index
    %138 = vector.load %arg9[%c0_202, %c0_203] : memref<2x2592xbf16, #tpu.memory_space<vmem>>, vector<2x2592xbf16>
    %c0_204 = arith.constant 0 : index
    %c0_205 = arith.constant 0 : index
    %139 = vector.load %arg3[%c0_204, %c0_205] : memref<2592x256xbf16, #tpu.memory_space<vmem>>, vector<2592x256xbf16>
    %cst_206 = arith.constant dense<0.000000e+00> : vector<2x256xf32>
    %140 = tpu.matmul %138, %139, %cst_206 {dimension_numbers = #tpu.dot_dimension_numbers<[1], [0], [0], [1], [0, 0, 1, 1], [], []>} : vector<2x2592xbf16>, vector<2592x256xbf16>, vector<2x256xf32> -> vector<2x256xf32>
    %c0_207 = arith.constant 0 : index
    %c0_208 = arith.constant 0 : index
    %141 = vector.load %arg4[%c0_207, %c0_208] : memref<1x256xf32, #tpu.memory_space<vmem>>, vector<1x256xf32>
    %142 = vector.broadcast %141 : vector<1x256xf32> to vector<2x256xf32>
    %143 = arith.addf %140, %142 : vector<2x256xf32>
    %cst_209 = arith.constant 0.000000e+00 : f32
    %144 = vector.broadcast %cst_209 : f32 to vector<2x256xf32>
    %145 = arith.maximumf %143, %144 : vector<2x256xf32>
    %146 = arith.truncf %145 : vector<2x256xf32> to vector<2x256xbf16>
    %c0_210 = arith.constant 0 : index
    %c0_211 = arith.constant 0 : index
    %147 = vector.load %arg5[%c0_210, %c0_211] : memref<256x6xbf16, #tpu.memory_space<vmem>>, vector<256x6xbf16>
    %cst_212 = arith.constant dense<0.000000e+00> : vector<2x6xf32>
    %148 = tpu.matmul %146, %147, %cst_212 {dimension_numbers = #tpu.dot_dimension_numbers<[1], [0], [0], [1], [0, 0, 1, 1], [], []>} : vector<2x256xbf16>, vector<256x6xbf16>, vector<2x6xf32> -> vector<2x6xf32>
    %c0_213 = arith.constant 0 : index
    %c0_214 = arith.constant 0 : index
    %149 = vector.load %arg6[%c0_213, %c0_214] : memref<1x6xf32, #tpu.memory_space<vmem>>, vector<1x6xf32>
    %150 = vector.broadcast %149 : vector<1x6xf32> to vector<2x6xf32>
    %151 = arith.addf %148, %150 : vector<2x6xf32>
    %c0_215 = arith.constant 0 : index
    %c0_216 = arith.constant 0 : index
    %152 = vector.load %arg7[%c0_215, %c0_216] : memref<2x6xf32, #tpu.memory_space<vmem>>, vector<2x6xf32>
    tpu.vector_store %arg7[%c0_215, %c0_216], %151 {strides = array<i32>} : memref<2x6xf32, #tpu.memory_space<vmem>>, vector<2x6xf32>,
    return
  }
}

</mosaic_0001>

<bundles_post_ra>
// kernel: dqn_forward.2
= control target key start
LH: loop header
LB: loop body
LE: loop exit
PB: predicated region body
PF: predicated region fallthrough
CT: control target
= control target key end

     0   :  { %s1356_s12 = smov 0   ;;  %s1358_s13 = smov 0   ;;  %s1722_s0 = inlined_call_operand.vmem [shape: bf16[16,256], index: 0, kind: input, shape index: {}]   ;;  %s1723_s1 = inlined_call_operand.vmem [shape: bf16[256,1024], index: 1, kind: input, shape index: {}]   ;;  %s1724_s2 = inlined_call_operand.vmem [shape: f32[16,1], index: 2, kind: input, shape index: {}]   ;;  %s1725_s3 = inlined_call_operand.vmem [shape: bf16[16,1024], index: 3, kind: output, shape index: {}]  }
   0x1   :  { %s1360_s14 = smov 0  }
   0x2 LB: > { %s938_s15 = sadd.s32 4294967295, %s1333_s14   ;;  %s1373_s16 = sadd.s32 1, %s1333_s14   ;;  %s1333_s14 = sphi %s1360_s14, %s1729_s14   ;;  %s1329_s13 = sphi %s1358_s13, %s1728_s13   ;;  %s1325_s12 = sphi %s1356_s12, %s1727_s12  }
   0x3   : > { %s38_s17 = ssub.s32 %s1333_s14, %s1373_s16  ;;  %s41_s18 = sadd.s32 1, %s1329_s13 }
   0x4   : > { %p39_p0 = scmp.eq.s32.totalorder %s38_s17, 0  ;;  %p48_p1 = scmp.ne.s32.totalorder %s1329_s13, %s1325_s12 }
   0x5   : > { %p49_p2 = scmp.eq.s32.totalorder %s1333_s14, 0  ;;  %p99_p3 = scmp.eq.s32.totalorder %s938_s15, 1 }
   0x6   : > { %s1384_s19 = scalar_select %p39_p0, %s1329_s13, %s41_s18  }
   0x7   : > { %p50_p4 = por %p49_p2, %p48_p1  ;;  %p1386_p5 = por %p99_p3, %p48_p1 }
   0x8   : > { %p941_p6 = scmp.ge.s32.totalorder %s1333_s14, 2 }
   0xa   : > { %127 = sbr.rel (%p941_p6) target bundleno = 83 (0x53), region = 24 }
   0xf   : > { %130 = sbr.rel (!%p50_p4) target bundleno = 83 (0x53), region = 28  ;;  %s132_s21 = sand.u32 (%p50_p4), 1, %s1329_s13  }
  0x10   : > { %s1217_s22 = sshll.u32 (%p50_p4), %s1333_s14, 4  ;;  %s942_s23 = sshll.u32 (%p50_p4), %s132_s21, 9 }
  0x11   : > { %s1396_s26 = scalar_lea.vmem (%p50_p4), %s1723_s1, %s1217_s22  ;;  %s1401_s27 = scalar_lea.vmem (%p50_p4), [#allocation2], %s942_s23 }
  0x12   : > { %v150_v0 = vld [vmem:[%s1396_s26] sm:$0xff] (%p50_p4)  ;;  %v152_v1 = vld [vmem:[%s1396_s26 + $0x8] sm:$0xff] (%p50_p4) }
  0x13   : > { %v154_v2 = vld [vmem:[%s1396_s26 + $0x20] sm:$0xff] (%p50_p4)  ;;  %151 = vst [vmem:[%s1401_s27] sm:$0xff] (%p50_p4), %v150_v0  ;;  %v156_v3 = vld [vmem:[%s1396_s26 + $0x28] sm:$0xff] (%p50_p4) }
  0x14   : > { %153 = vst [vmem:[%s1401_s27 + $0x8] sm:$0xff] %v152_v1  ;;  %v158_v4 = vld [vmem:[%s1396_s26 + $0x40] sm:$0xff]  ;;  %v160_v5 = vld [vmem:[%s1396_s26 + $0x48] sm:$0xff] }
  0x15   : > { %155 = vst [vmem:[%s1401_s27 + $0x10] sm:$0xff] %v154_v2  ;;  %v162_v6 = vld [vmem:[%s1396_s26 + $0x60] sm:$0xff]  ;;  %v164_v7 = vld [vmem:[%s1396_s26 + $0x68] sm:$0xff] }
  0x16   : > { %157 = vst [vmem:[%s1401_s27 + $0x18] sm:$0xff] %v156_v3  ;;  %v166_v8 = vld [vmem:[%s1396_s26 + $0x80] sm:$0xff]  ;;  %v168_v9 = vld [vmem:[%s1396_s26 + $0x88] sm:$0xff] }
  0x17   : > { %159 = vst [vmem:[%s1401_s27 + $0x20] sm:$0xff] %v158_v4  ;;  %v170_v10 = vld [vmem:[%s1396_s26 + $0xa0] sm:$0xff]  ;;  %v172_v11 = vld [vmem:[%s1396_s26 + $0xa8] sm:$0xff] }
  0x18   : > { %161 = vst [vmem:[%s1401_s27 + $0x28] sm:$0xff] %v160_v5  ;;  %v174_v12 = vld [vmem:[%s1396_s26 + $0xc0] sm:$0xff]  ;;  %v176_v13 = vld [vmem:[%s1396_s26 + $0xc8] sm:$0xff] }
  0x19   : > { %163 = vst [vmem:[%s1401_s27 + $0x30] sm:$0xff] %v162_v6  ;;  %v178_v14 = vld [vmem:[%s1396_s26 + $0xe0] sm:$0xff]  ;;  %v180_v15 = vld [vmem:[%s1396_s26 + $0xe8] sm:$0xff] }
  0x1a   : > { %165 = vst [vmem:[%s1401_s27 + $0x38] sm:$0xff] %v164_v7  ;;  %v182_v16 = vld [vmem:[%s1396_s26 + $0x100] sm:$0xff]  ;;  %v184_v17 = vld [vmem:[%s1396_s26 + $0x108] sm:$0xff] }
  0x1b   : > { %167 = vst [vmem:[%s1401_s27 + $0x40] sm:$0xff] %v166_v8  ;;  %v186_v18 = vld [vmem:[%s1396_s26 + $0x120] sm:$0xff]  ;;  %v188_v19 = vld [vmem:[%s1396_s26 + $0x128] sm:$0xff] }
  0x1c   : > { %169 = vst [vmem:[%s1401_s27 + $0x48] sm:$0xff] %v168_v9  ;;  %v190_v20 = vld [vmem:[%s1396_s26 + $0x140] sm:$0xff]  ;;  %v192_v21 = vld [vmem:[%s1396_s26 + $0x148] sm:$0xff] }
  0x1d   : > { %171 = vst [vmem:[%s1401_s27 + $0x50] sm:$0xff] %v170_v10  ;;  %v194_v22 = vld [vmem:[%s1396_s26 + $0x160] sm:$0xff]  ;;  %v196_v23 = vld [vmem:[%s1396_s26 + $0x168] sm:$0xff] }
  0x1e   : > { %173 = vst [vmem:[%s1401_s27 + $0x58] sm:$0xff] %v172_v11  ;;  %v198_v24 = vld [vmem:[%s1396_s26 + $0x180] sm:$0xff]  ;;  %v200_v25 = vld [vmem:[%s1396_s26 + $0x188] sm:$0xff] }
  0x1f   : > { %175 = vst [vmem:[%s1401_s27 + $0x60] sm:$0xff] %v174_v12  ;;  %v202_v26 = vld [vmem:[%s1396_s26 + $0x1a0] sm:$0xff]  ;;  %v204_v27 = vld [vmem:[%s1396_s26 + $0x1a8] sm:$0xff] }
  0x20   : > { %177 = vst [vmem:[%s1401_s27 + $0x68] sm:$0xff] %v176_v13  ;;  %v206_v28 = vld [vmem:[%s1396_s26 + $0x1c0] sm:$0xff]  ;;  %v208_v29 = vld [vmem:[%s1396_s26 + $0x1c8] sm:$0xff] }
  0x21   : > { %179 = vst [vmem:[%s1401_s27 + $0x70] sm:$0xff] %v178_v14  ;;  %v210_v30 = vld [vmem:[%s1396_s26 + $0x1e0] sm:$0xff]  ;;  %v212_v31 = vld [vmem:[%s1396_s26 + $0x1e8] sm:$0xff] }
  0x22   : > { %181 = vst [vmem:[%s1401_s27 + $0x78] sm:$0xff] %v180_v15  ;;  %v214_v32 = vld [vmem:[%s1396_s26 + $0x200] sm:$0xff]  ;;  %v216_v33 = vld [vmem:[%s1396_s26 + $0x208] sm:$0xff] }
  0x23   : > { %183 = vst [vmem:[%s1401_s27 + $0x80] sm:$0xff] %v182_v16  ;;  %v218_v34 = vld [vmem:[%s1396_s26 + $0x220] sm:$0xff]  ;;  %v220_v35 = vld [vmem:[%s1396_s26 + $0x228] sm:$0xff] }
  0x24   : > { %185 = vst [vmem:[%s1401_s27 + $0x88] sm:$0xff] %v184_v17  ;;  %v222_v36 = vld [vmem:[%s1396_s26 + $0x240] sm:$0xff]  ;;  %v224_v37 = vld [vmem:[%s1396_s26 + $0x248] sm:$0xff] }
  0x25   : > { %187 = vst [vmem:[%s1401_s27 + $0x90] sm:$0xff] %v186_v18  ;;  %v226_v38 = vld [vmem:[%s1396_s26 + $0x260] sm:$0xff]  ;;  %v228_v39 = vld [vmem:[%s1396_s26 + $0x268] sm:$0xff] }
  0x26   : > { %189 = vst [vmem:[%s1401_s27 + $0x98] sm:$0xff] %v188_v19  ;;  %v230_v40 = vld [vmem:[%s1396_s26 + $0x280] sm:$0xff]  ;;  %v232_v41 = vld [vmem:[%s1396_s26 + $0x288] sm:$0xff] }
  0x27   : > { %191 = vst [vmem:[%s1401_s27 + $0xa0] sm:$0xff] %v190_v20  ;;  %v234_v42 = vld [vmem:[%s1396_s26 + $0x2a0] sm:$0xff]  ;;  %v236_v43 = vld [vmem:[%s1396_s26 + $0x2a8] sm:$0xff] }
  0x28   : > { %193 = vst [vmem:[%s1401_s27 + $0xa8] sm:$0xff] %v192_v21  ;;  %v238_v44 = vld [vmem:[%s1396_s26 + $0x2c0] sm:$0xff]  ;;  %v240_v45 = vld [vmem:[%s1396_s26 + $0x2c8] sm:$0xff] }
  0x29   : > { %195 = vst [vmem:[%s1401_s27 + $0xb0] sm:$0xff] %v194_v22  ;;  %v242_v46 = vld [vmem:[%s1396_s26 + $0x2e0] sm:$0xff]  ;;  %v244_v47 = vld [vmem:[%s1396_s26 + $0x2e8] sm:$0xff] }
  0x2a   : > { %197 = vst [vmem:[%s1401_s27 + $0xb8] sm:$0xff] %v196_v23  ;;  %v246_v48 = vld [vmem:[%s1396_s26 + $0x300] sm:$0xff]  ;;  %v248_v49 = vld [vmem:[%s1396_s26 + $0x308] sm:$0xff] }
  0x2b   : > { %199 = vst [vmem:[%s1401_s27 + $0xc0] sm:$0xff] %v198_v24  ;;  %v250_v50 = vld [vmem:[%s1396_s26 + $0x320] sm:$0xff]  ;;  %v252_v51 = vld [vmem:[%s1396_s26 + $0x328] sm:$0xff] }
  0x2c   : > { %201 = vst [vmem:[%s1401_s27 + $0xc8] sm:$0xff] %v200_v25  ;;  %v254_v52 = vld [vmem:[%s1396_s26 + $0x340] sm:$0xff]  ;;  %v256_v53 = vld [vmem:[%s1396_s26 + $0x348] sm:$0xff] }
  0x2d   : > { %203 = vst [vmem:[%s1401_s27 + $0xd0] sm:$0xff] %v202_v26  ;;  %v258_v54 = vld [vmem:[%s1396_s26 + $0x360] sm:$0xff]  ;;  %v260_v55 = vld [vmem:[%s1396_s26 + $0x368] sm:$0xff] }
  0x2e   : > { %205 = vst [vmem:[%s1401_s27 + $0xd8] sm:$0xff] %v204_v27  ;;  %v262_v56 = vld [vmem:[%s1396_s26 + $0x380] sm:$0xff]  ;;  %v264_v57 = vld [vmem:[%s1396_s26 + $0x388] sm:$0xff] }
  0x2f   : > { %207 = vst [vmem:[%s1401_s27 + $0xe0] sm:$0xff] %v206_v28  ;;  %v266_v58 = vld [vmem:[%s1396_s26 + $0x3a0] sm:$0xff]  ;;  %v268_v59 = vld [vmem:[%s1396_s26 + $0x3a8] sm:$0xff] }
  0x30   : > { %209 = vst [vmem:[%s1401_s27 + $0xe8] sm:$0xff] %v208_v29  ;;  %v270_v60 = vld [vmem:[%s1396_s26 + $0x3c0] sm:$0xff]  ;;  %v272_v61 = vld [vmem:[%s1396_s26 + $0x3c8] sm:$0xff] }
  0x31   : > { %211 = vst [vmem:[%s1401_s27 + $0xf0] sm:$0xff] %v210_v30  ;;  %v274_v62 = vld [vmem:[%s1396_s26 + $0x3e0] sm:$0xff]  ;;  %v276_v63 = vld [vmem:[%s1396_s26 + $0x3e8] sm:$0xff] }
  0x32   : > { %213 = vst [vmem:[%s1401_s27 + $0xf8] sm:$0xff] %v212_v31 }
  0x33   : > { %215 = vst [vmem:[%s1401_s27 + $0x100] sm:$0xff] %v214_v32 }
  0x34   : > { %217 = vst [vmem:[%s1401_s27 + $0x108] sm:$0xff] %v216_v33 }
  0x35   : > { %219 = vst [vmem:[%s1401_s27 + $0x110] sm:$0xff] %v218_v34 }
  0x36   : > { %221 = vst [vmem:[%s1401_s27 + $0x118] sm:$0xff] %v220_v35 }
  0x37   : > { %223 = vst [vmem:[%s1401_s27 + $0x120] sm:$0xff] %v222_v36 }
  0x38   : > { %225 = vst [vmem:[%s1401_s27 + $0x128] sm:$0xff] %v224_v37 }
  0x39   : > { %227 = vst [vmem:[%s1401_s27 + $0x130] sm:$0xff] %v226_v38 }
  0x3a   : > { %229 = vst [vmem:[%s1401_s27 + $0x138] sm:$0xff] %v228_v39 }
  0x3b   : > { %231 = vst [vmem:[%s1401_s27 + $0x140] sm:$0xff] %v230_v40 }
  0x3c   : > { %233 = vst [vmem:[%s1401_s27 + $0x148] sm:$0xff] %v232_v41 }
  0x3d   : > { %235 = vst [vmem:[%s1401_s27 + $0x150] sm:$0xff] %v234_v42 }
  0x3e   : > { %237 = vst [vmem:[%s1401_s27 + $0x158] sm:$0xff] %v236_v43 }
  0x3f   : > { %239 = vst [vmem:[%s1401_s27 + $0x160] sm:$0xff] %v238_v44 }
  0x40   : > { %241 = vst [vmem:[%s1401_s27 + $0x168] sm:$0xff] %v240_v45 }
  0x41   : > { %243 = vst [vmem:[%s1401_s27 + $0x170] sm:$0xff] %v242_v46 }
  0x42   : > { %245 = vst [vmem:[%s1401_s27 + $0x178] sm:$0xff] %v244_v47 }
  0x43   : > { %247 = vst [vmem:[%s1401_s27 + $0x180] sm:$0xff] %v246_v48 }
  0x44   : > { %249 = vst [vmem:[%s1401_s27 + $0x188] sm:$0xff] %v248_v49 }
  0x45   : > { %251 = vst [vmem:[%s1401_s27 + $0x190] sm:$0xff] %v250_v50 }
  0x46   : > { %253 = vst [vmem:[%s1401_s27 + $0x198] sm:$0xff] %v252_v51 }
  0x47   : > { %255 = vst [vmem:[%s1401_s27 + $0x1a0] sm:$0xff] %v254_v52 }
  0x48   : > { %257 = vst [vmem:[%s1401_s27 + $0x1a8] sm:$0xff] %v256_v53 }
  0x49   : > { %259 = vst [vmem:[%s1401_s27 + $0x1b0] sm:$0xff] %v258_v54 }
  0x4a   : > { %261 = vst [vmem:[%s1401_s27 + $0x1b8] sm:$0xff] %v260_v55 }
  0x4b   : > { %263 = vst [vmem:[%s1401_s27 + $0x1c0] sm:$0xff] %v262_v56 }
  0x4c   : > { %265 = vst [vmem:[%s1401_s27 + $0x1c8] sm:$0xff] %v264_v57 }
  0x4d   : > { %267 = vst [vmem:[%s1401_s27 + $0x1d0] sm:$0xff] %v266_v58 }
  0x4e   : > { %269 = vst [vmem:[%s1401_s27 + $0x1d8] sm:$0xff] %v268_v59 }
  0x4f   : > { %271 = vst [vmem:[%s1401_s27 + $0x1e0] sm:$0xff] %v270_v60 }
  0x50   : > { %273 = vst [vmem:[%s1401_s27 + $0x1e8] sm:$0xff] %v272_v61 }
  0x51   : > { %275 = vst [vmem:[%s1401_s27 + $0x1f0] sm:$0xff] %v274_v62 }
  0x52   : > { %277 = vst [vmem:[%s1401_s27 + $0x1f8] sm:$0xff] %v276_v63 }
  0x53 PF: > { %p945_p7 = scmp.ge.s32.totalorder %s1333_s14, 1  ;;  %p282_p8 = scmp.lt.s32.totalorder %s1333_s14, 3 }
  0x55   : > { %p283_p9 = pnand %p945_p7, %p282_p8 }
  0x56   : > { %s289_s28 = sand.u32 (!%p283_p9), 1, %s1325_s12  }
  0x57   : > { %286 = sbr.rel (%p283_p9) target bundleno = 316 (0x13c), region = 51  ;;  %s946_s29 = sshll.u32 (!%p283_p9), %s289_s28, 9 }
  0x58   : > { %s1533_s30 = scalar_lea.vmem (!%p283_p9), [#allocation2], %s946_s29  ;;  %s947_s23 = sshll.u32 (!%p283_p9), %s289_s28, 5 }
  0x59   : > { %s1695_s24 = scalar_lea.vmem (!%p283_p9), [#allocation3], %s947_s23 }
  0x5c   : > { %v1070_v0 = vld [vmem:[%s1533_s30 + $0xe0] sm:$0xf]  ;;  %v1250_v1 = vld [vmem:[%s1533_s30 + $0xec] sm:$0xf0]  ;;  %v1248_v5 = vld [vmem:[%s1533_s30 + $0xe4] sm:$0xf] }
  0x5d   : > { %v1198_v2 = vld [vmem:[%s1533_s30 + $0x1e0] sm:$0xf]  ;;  %v1071_v3 = vor.u32 %v1250_v1, %v1070_v0  ;;  %v1282_v4 = vld [vmem:[%s1533_s30 + $0x1ec] sm:$0xf0]  ;;  %v1072_v6 = vld [vmem:[%s1533_s30 + $0xf0] sm:$0xf0] }
  0x5e   : > { %v1199_v7 = vor.u32 %v1282_v4, %v1198_v2  ;;  %v1075_v8 = vor.u32 %v1248_v5, %v1072_v6  ;;  %v1280_v9 = vld [vmem:[%s1533_s30 + $0x1e4] sm:$0xf]  ;;  %v1200_v10 = vld [vmem:[%s1533_s30 + $0x1f0] sm:$0xf0]  ;;  %v1054_v11 = vld [vmem:[%s1533_s30 + $0xc0] sm:$0xf] }
  0x5f   : > { %721 = vmatpush.bf16.msra.mxu0 %v1071_v3  ;;  %v1203_v12 = vor.u32 %v1280_v9, %v1200_v10  ;;  %v1246_v13 = vld [vmem:[%s1533_s30 + $0xcc] sm:$0xf0]  ;;  %v1182_v14 = vld [vmem:[%s1533_s30 + $0x1c0] sm:$0xf]  ;;  %v1244_v18 = vld [vmem:[%s1533_s30 + $0xc4] sm:$0xf] }
  0x60   : > { %v1278_v15 = vld [vmem:[%s1533_s30 + $0x1cc] sm:$0xf0]  ;;  %735 = vmatpush.bf16.msra.mxu1 %v1199_v7  ;;  %749 = vmatpush.bf16.msra.mxu2 %v1075_v8  ;;  %v1055_v16 = vor.u32 %v1246_v13, %v1054_v11  ;;  %v1056_v19 = vld [vmem:[%s1533_s30 + $0xd0] sm:$0xf0]  ;;  %v1276_v20 = vld [vmem:[%s1533_s30 + $0x1c4] sm:$0xf] }
  0x61   : > { %v1183_v17 = vor.u32 %v1278_v15, %v1182_v14  ;;  %763 = vmatpush.bf16.msra.mxu3 %v1203_v12  ;;  %v1059_v21 = vor.u32 %v1244_v18, %v1056_v19  ;;  %v1184_v22 = vld [vmem:[%s1533_s30 + $0x1d0] sm:$0xf0]  ;;  %v1038_v23 = vld [vmem:[%s1533_s30 + $0xa0] sm:$0xf]  ;;  %v1242_v24 = vld [vmem:[%s1533_s30 + $0xac] sm:$0xf0] }
  0x62   : > { %v1187_v25 = vor.u32 %v1276_v20, %v1184_v22  ;;  %v1166_v26 = vld [vmem:[%s1533_s30 + $0x1a0] sm:$0xf]  ;;  %v1274_v27 = vld [vmem:[%s1533_s30 + $0x1ac] sm:$0xf0]  ;;  %v1240_v28 = vld [vmem:[%s1533_s30 + $0xa4] sm:$0xf]  ;;  %v1039_v29 = vor.u32 %v1242_v24, %v1038_v23 }
  0x63   : > { %722 = vmatpush.bf16.msra.mxu0 %v1055_v16  ;;  %v1040_v30 = vld [vmem:[%s1533_s30 + $0xb0] sm:$0xf0]  ;;  %v1272_v31 = vld [vmem:[%s1533_s30 + $0x1a4] sm:$0xf]  ;;  %v1167_v33 = vor.u32 %v1274_v27, %v1166_v26  ;;  %v1022_v35 = vld [vmem:[%s1533_s30 + $0x80] sm:$0xf] }
  0x64   : > { %v1168_v32 = vld [vmem:[%s1533_s30 + $0x1b0] sm:$0xf0]  ;;  %736 = vmatpush.bf16.msra.mxu1 %v1183_v17  ;;  %750 = vmatpush.bf16.msra.mxu2 %v1059_v21  ;;  %v1043_v34 = vor.u32 %v1240_v28, %v1040_v30  ;;  %v1238_v36 = vld [vmem:[%s1533_s30 + $0x8c] sm:$0xf0]  ;;  %v1150_v37 = vld [vmem:[%s1533_s30 + $0x180] sm:$0xf] }
  0x65   : > { %764 = vmatpush.bf16.msra.mxu3 %v1187_v25  ;;  %v1171_v38 = vor.u32 %v1272_v31, %v1168_v32  ;;  %v1270_v39 = vld [vmem:[%s1533_s30 + $0x18c] sm:$0xf0]  ;;  %v1236_v40 = vld [vmem:[%s1533_s30 + $0x84] sm:$0xf]  ;;  %v1024_v41 = vld [vmem:[%s1533_s30 + $0x90] sm:$0xf0]  ;;  %v1023_v44 = vor.u32 %v1238_v36, %v1022_v35 }
  0x66   : > { %v1268_v42 = vld [vmem:[%s1533_s30 + $0x184] sm:$0xf]  ;;  %v1152_v43 = vld [vmem:[%s1533_s30 + $0x190] sm:$0xf0]  ;;  %v1151_v45 = vor.u32 %v1270_v39, %v1150_v37  ;;  %v1027_v46 = vor.u32 %v1236_v40, %v1024_v41  ;;  %v1006_v47 = vld [vmem:[%s1533_s30 + $0x60] sm:$0xf] }
  0x67   : > { %723 = vmatpush.bf16.msra.mxu0 %v1039_v29  ;;  %v1234_v48 = vld [vmem:[%s1533_s30 + $0x6c] sm:$0xf0]  ;;  %v1134_v49 = vld [vmem:[%s1533_s30 + $0x160] sm:$0xf]  ;;  %v1155_v50 = vor.u32 %v1268_v42, %v1152_v43  ;;  %v1232_v52 = vld [vmem:[%s1533_s30 + $0x64] sm:$0xf] }
  0x68   : > { %737 = vmatpush.bf16.msra.mxu1 %v1167_v33  ;;  %751 = vmatpush.bf16.msra.mxu2 %v1043_v34  ;;  %v1266_v51 = vld [vmem:[%s1533_s30 + $0x16c] sm:$0xf0]  ;;  %v1008_v53 = vld [vmem:[%s1533_s30 + $0x70] sm:$0xf0]  ;;  %v1264_v54 = vld [vmem:[%s1533_s30 + $0x164] sm:$0xf]  ;;  %v1007_v56 = vor.u32 %v1234_v48, %v1006_v47 }
  0x69   : > { %765 = vmatpush.bf16.msra.mxu3 %v1171_v38  ;;  %v1136_v55 = vld [vmem:[%s1533_s30 + $0x170] sm:$0xf0]  ;;  %v1135_v57 = vor.u32 %v1266_v51, %v1134_v49  ;;  %v1011_v58 = vor.u32 %v1232_v52, %v1008_v53  ;;  %v990_v59 = vld [vmem:[%s1533_s30 + $0x40] sm:$0xf]  ;;  %v1230_v60 = vld [vmem:[%s1533_s30 + $0x4c] sm:$0xf0] }
  0x6a   : > { %v1118_v61 = vld [vmem:[%s1533_s30 + $0x140] sm:$0xf]  ;;  %v1139_v62 = vor.u32 %v1264_v54, %v1136_v55  ;;  %v1262_v63 = vld [vmem:[%s1533_s30 + $0x14c] sm:$0xf0]  ;;  %v1228_v0 = vld [vmem:[%s1533_s30 + $0x44] sm:$0xf]  ;;  %v991_v4 = vor.u32 %v1230_v60, %v990_v59 }
  0x6b   : > { %724 = vmatpush.bf16.msra.mxu0 %v1023_v44  ;;  %v992_v1 = vld [vmem:[%s1533_s30 + $0x50] sm:$0xf0]  ;;  %v1260_v2 = vld [vmem:[%s1533_s30 + $0x144] sm:$0xf]  ;;  %v1119_v5 = vor.u32 %v1262_v63, %v1118_v61  ;;  %v974_v7 = vld [vmem:[%s1533_s30 + $0x20] sm:$0xf] }
  0x6c   : > { %738 = vmatpush.bf16.msra.mxu1 %v1151_v45  ;;  %752 = vmatpush.bf16.msra.mxu2 %v1027_v46  ;;  %v1120_v3 = vld [vmem:[%s1533_s30 + $0x150] sm:$0xf0]  ;;  %v995_v6 = vor.u32 %v1228_v0, %v992_v1  ;;  %v1226_v8 = vld [vmem:[%s1533_s30 + $0x2c] sm:$0xf0]  ;;  %v1102_v9 = vld [vmem:[%s1533_s30 + $0x120] sm:$0xf] }
  0x6d   : > { %766 = vmatpush.bf16.msra.mxu3 %v1155_v50  ;;  %v1123_v10 = vor.u32 %v1260_v2, %v1120_v3  ;;  %v1258_v11 = vld [vmem:[%s1533_s30 + $0x12c] sm:$0xf0]  ;;  %v1224_v12 = vld [vmem:[%s1533_s30 + $0x24] sm:$0xf]  ;;  %v976_v13 = vld [vmem:[%s1533_s30 + $0x30] sm:$0xf0]  ;;  %v975_v16 = vor.u32 %v1226_v8, %v974_v7 }
  0x6e   : > { %v1256_v14 = vld [vmem:[%s1533_s30 + $0x124] sm:$0xf]  ;;  %v1104_v15 = vld [vmem:[%s1533_s30 + $0x130] sm:$0xf0]  ;;  %v958_v17 = vld [vmem:[%s1533_s30] sm:$0xf]  ;;  %v1103_v20 = vor.u32 %v1258_v11, %v1102_v9  ;;  %v979_v21 = vor.u32 %v1224_v12, %v976_v13 }
  0x6f   : > { %725 = vmatpush.bf16.msra.mxu0 %v1007_v56  ;;  %v1222_v18 = vld [vmem:[%s1533_s30 + $0xc] sm:$0xf0]  ;;  %v1086_v19 = vld [vmem:[%s1533_s30 + $0x100] sm:$0xf]  ;;  %v1220_v23 = vld [vmem:[%s1533_s30 + $0x4] sm:$0xf]  ;;  %v1107_v25 = vor.u32 %v1256_v14, %v1104_v15 }
  0x70   : > { %739 = vmatpush.bf16.msra.mxu1 %v1135_v57  ;;  %753 = vmatpush.bf16.msra.mxu2 %v1011_v58  ;;  %v1254_v22 = vld [vmem:[%s1533_s30 + $0x10c] sm:$0xf0]  ;;  %v960_v24 = vld [vmem:[%s1533_s30 + $0x10] sm:$0xf0]  ;;  %v1252_v26 = vld [vmem:[%s1533_s30 + $0x104] sm:$0xf]  ;;  %v959_v32 = vor.u32 %v1222_v18, %v958_v17 }
  0x71   : > { %767 = vmatpush.bf16.msra.mxu3 %v1139_v62  ;;  %v1088_v27 = vld [vmem:[%s1533_s30 + $0x110] sm:$0xf0]  ;;  %v1078_v28 = vld [vmem:[%s1533_s30 + $0xe8] sm:$0xf]  ;;  %v1251_v29 = vld [vmem:[%s1533_s30 + $0xf4] sm:$0xf0]  ;;  %v1087_v36 = vor.u32 %v1254_v22, %v1086_v19  ;;  %v963_v37 = vor.u32 %v1220_v23, %v960_v24 }
  0x72   : > { %v1206_v30 = vld [vmem:[%s1533_s30 + $0x1e8] sm:$0xf]  ;;  %v1283_v31 = vld [vmem:[%s1533_s30 + $0x1f4] sm:$0xf0]  ;;  %v1249_v33 = vld [vmem:[%s1533_s30 + $0xec] sm:$0xf]  ;;  %v1091_v41 = vor.u32 %v1252_v26, %v1088_v27  ;;  %v1079_v42 = vor.u32 %v1251_v29, %v1078_v28 }
  0x73   : > { %726 = vmatpush.bf16.msra.mxu0 %v991_v4  ;;  %v1080_v34 = vld [vmem:[%s1533_s30 + $0xf8] sm:$0xf0]  ;;  %v1281_v35 = vld [vmem:[%s1533_s30 + $0x1ec] sm:$0xf]  ;;  %v950_v39 = vld [vmem:[%s1722_s0] sm:$0xf]  ;;  %v1207_v45 = vor.u32 %v1283_v31, %v1206_v30 }
  0x74   : > { %740 = vmatpush.bf16.msra.mxu1 %v1119_v5  ;;  %754 = vmatpush.bf16.msra.mxu2 %v995_v6  ;;  %v1208_v38 = vld [vmem:[%s1533_s30 + $0x1f8] sm:$0xf0]  ;;  %v1219_v40 = vld [vmem:[%s1722_s0 + $0x4] sm:$0xf0]  ;;  %v1247_v44 = vld [vmem:[%s1533_s30 + $0xd4] sm:$0xf0]  ;;  %v1083_v46 = vor.u32 %v1249_v33, %v1080_v34 }
  0x75   : > { %768 = vmatpush.bf16.msra.mxu3 %v1123_v10  ;;  %v1062_v43 = vld [vmem:[%s1533_s30 + $0xc8] sm:$0xf]  ;;  %v1218_v48 = vld [vmem:[%s1722_s0 + $0x4] sm:$0xf]  ;;  %v952_v49 = vld [vmem:[%s1722_s0 + $0x8] sm:$0xf0]  ;;  %v1211_v50 = vor.u32 %v1281_v35, %v1208_v38  ;;  %v1625_v54 = vor.u32 %v1219_v40, %v950_v39 }
  0x76   : > { %v1190_v47 = vld [vmem:[%s1533_s30 + $0x1c8] sm:$0xf]  ;;  %v1279_v51 = vld [vmem:[%s1533_s30 + $0x1d4] sm:$0xf0]  ;;  %v1245_v52 = vld [vmem:[%s1533_s30 + $0xcc] sm:$0xf]  ;;  %v1629_v57 = vor.u32 %v1218_v48, %v952_v49  ;;  %v1063_v58 = vor.u32 %v1247_v44, %v1062_v43 }
  0x77   : > { %727 = vmatpush.bf16.msra.mxu0 %v975_v16  ;;  %v1064_v53 = vld [vmem:[%s1533_s30 + $0xd8] sm:$0xf0]  ;;  %v1277_v55 = vld [vmem:[%s1533_s30 + $0x1cc] sm:$0xf]  ;;  %v1191_v59 = vor.u32 %v1279_v51, %v1190_v47  ;;  %v1046_v61 = vld [vmem:[%s1533_s30 + $0xa8] sm:$0xf] }
  0x78   : > { %741 = vmatpush.bf16.msra.mxu1 %v1103_v20  ;;  %755 = vmatpush.bf16.msra.mxu2 %v979_v21  ;;  %v1192_v56 = vld [vmem:[%s1533_s30 + $0x1d8] sm:$0xf0]  ;;  %v1067_v60 = vor.u32 %v1245_v52, %v1064_v53  ;;  %v1243_v62 = vld [vmem:[%s1533_s30 + $0xb4] sm:$0xf0]  ;;  %v1174_v63 = vld [vmem:[%s1533_s30 + $0x1a8] sm:$0xf] }
  0x79   : > { %769 = vmatpush.bf16.msra.mxu3 %v1107_v25  ;;  %v1195_v0 = vor.u32 %v1277_v55, %v1192_v56  ;;  %v1275_v1 = vld [vmem:[%s1533_s30 + $0x1b4] sm:$0xf0]  ;;  %v1241_v2 = vld [vmem:[%s1533_s30 + $0xac] sm:$0xf]  ;;  %v1048_v3 = vld [vmem:[%s1533_s30 + $0xb8] sm:$0xf0]  ;;  %v1047_v6 = vor.u32 %v1243_v62, %v1046_v61 }
  0x7a   : > { %v1273_v4 = vld [vmem:[%s1533_s30 + $0x1ac] sm:$0xf]  ;;  %v1176_v5 = vld [vmem:[%s1533_s30 + $0x1b8] sm:$0xf0]  ;;  %v1030_v7 = vld [vmem:[%s1533_s30 + $0x88] sm:$0xf]  ;;  %v1175_v8 = vor.u32 %v1275_v1, %v1174_v63  ;;  %v1051_v9 = vor.u32 %v1241_v2, %v1048_v3 }
  0x7b   : > { %728 = vmatpush.bf16.msra.mxu0 %v959_v32  ;;  %v1239_v10 = vld [vmem:[%s1533_s30 + $0x94] sm:$0xf0]  ;;  %v1158_v11 = vld [vmem:[%s1533_s30 + $0x188] sm:$0xf]  ;;  %v379_v12 = vld [vmem:[%s1724_s2] sm:$0xff]  ;;  %v1179_v13 = vor.u32 %v1273_v4, %v1176_v5  ;;  %v1335_v17 = vmov 0  }
  0x7c   : > { %742 = vmatpush.bf16.msra.mxu1 %v1087_v36  ;;  %756 = vmatpush.bf16.msra.mxu2 %v963_v37  ;;  %v1271_v14 = vld [vmem:[%s1533_s30 + $0x194] sm:$0xf0]  ;;  %v1237_v15 = vld [vmem:[%s1533_s30 + $0x8c] sm:$0xf]  ;;  %v1032_v16 = vld [vmem:[%s1533_s30 + $0x98] sm:$0xf0]  ;;  %v1031_v20 = vor.u32 %v1239_v10, %v1030_v7 }
  0x7d   : > { %770 = vmatpush.bf16.msra.mxu3 %v1091_v41  ;;  %1310 = vset.pattern.permute.xlu0 %v1335_v17  ;;  %v1269_v18 = vld [vmem:[%s1533_s30 + $0x18c] sm:$0xf]  ;;  %v1160_v19 = vld [vmem:[%s1533_s30 + $0x198] sm:$0xf0]  ;;  %v1159_v21 = vor.u32 %v1271_v14, %v1158_v11  ;;  %v1035_v22 = vor.u32 %v1237_v15, %v1032_v16  ;;  %v1014_v23 = vld [vmem:[%s1533_s30 + $0x68] sm:$0xf] }
  0x7e   : > { %729 = vmatmul.bf16.vlgmr.msra.gmra.mxu0 %v1625_v54  ;;  %383 = vperm.xlu0 %1310, %v379_v12   ;;  %v1235_v24 = vld [vmem:[%s1533_s30 + $0x74] sm:$0xf0]  ;;  %v1142_v25 = vld [vmem:[%s1533_s30 + $0x168] sm:$0xf]  ;;  %v1163_v26 = vor.u32 %v1269_v18, %v1160_v19  ;;  %v1233_v28 = vld [vmem:[%s1533_s30 + $0x6c] sm:$0xf] }
  0x7f   : > { %777 = vmatpush.bf16.msrb.mxu0 %v1079_v42  ;;  %757 = vmatmul.bf16.vlgmr.msra.gmra.mxu2 %v1625_v54  ;;  %v1267_v27 = vld [vmem:[%s1533_s30 + $0x174] sm:$0xf0]  ;;  %v1016_v29 = vld [vmem:[%s1533_s30 + $0x78] sm:$0xf0]  ;;  %v1265_v30 = vld [vmem:[%s1533_s30 + $0x16c] sm:$0xf]  ;;  %v1015_v32 = vor.u32 %v1235_v24, %v1014_v23 }
  0x80   : > { %791 = vmatpush.bf16.msrb.mxu1 %v1207_v45  ;;  %805 = vmatpush.bf16.msrb.mxu2 %v1083_v46  ;;  %v1144_v31 = vld [vmem:[%s1533_s30 + $0x178] sm:$0xf0]  ;;  %v380_v33 = vld [vmem:[%s1724_s2 + $0x8] sm:$0xff]  ;;  %v1143_v34 = vor.u32 %v1267_v27, %v1142_v25  ;;  %v1019_v35 = vor.u32 %v1233_v28, %v1016_v29  ;;  %v1231_v37 = vld [vmem:[%s1533_s30 + $0x54] sm:$0xf0]  ;;  %s1284_s12 = sshll.u32 (%p1386_p5), %s938_s15, 4 }
  0x81   : > { %819 = vmatpush.bf16.msrb.mxu3 %v1211_v50  ;;  %743 = vmatmul.bf16.vlgmr.msra.gmra.mxu1 %v1629_v57  ;;  %v998_v36 = vld [vmem:[%s1533_s30 + $0x48] sm:$0xf]  ;;  %v1147_v39 = vor.u32 %v1265_v30, %v1144_v31  ;;  %v1263_v40 = vld [vmem:[%s1533_s30 + $0x154] sm:$0xf0]  ;;  %v1229_v41 = vld [vmem:[%s1533_s30 + $0x4c] sm:$0xf]  ;;  %s858_s27 = scalar_lea.vmem (%p1386_p5), %s1725_s3, %s1284_s12 }
  0x82   : > { %771 = vmatmul.bf16.vlgmr.msra.gmra.mxu3 %v1629_v57  ;;  %v1126_v38 = vld [vmem:[%s1533_s30 + $0x148] sm:$0xf]  ;;  %v1000_v42 = vld [vmem:[%s1533_s30 + $0x58] sm:$0xf0]  ;;  %v1261_v43 = vld [vmem:[%s1533_s30 + $0x14c] sm:$0xf]  ;;  %v999_v45 = vor.u32 %v1231_v37, %v998_v36 }
  0x83   : > { %778 = vmatpush.bf16.msrb.mxu0 %v1063_v58  ;;  %v1128_v44 = vld [vmem:[%s1533_s30 + $0x158] sm:$0xf0]  ;;  %v1127_v46 = vor.u32 %v1263_v40, %v1126_v38  ;;  %v1003_v47 = vor.u32 %v1229_v41, %v1000_v42  ;;  %v982_v48 = vld [vmem:[%s1533_s30 + $0x28] sm:$0xf]  ;;  %v1227_v49 = vld [vmem:[%s1533_s30 + $0x34] sm:$0xf0] }
  0x84   : > { %792 = vmatpush.bf16.msrb.mxu1 %v1191_v59  ;;  %806 = vmatpush.bf16.msrb.mxu2 %v1067_v60  ;;  %v1110_v50 = vld [vmem:[%s1533_s30 + $0x128] sm:$0xf]  ;;  %v1131_v51 = vor.u32 %v1261_v43, %v1128_v44  ;;  %v1259_v52 = vld [vmem:[%s1533_s30 + $0x134] sm:$0xf0]  ;;  %v1225_v53 = vld [vmem:[%s1533_s30 + $0x2c] sm:$0xf]  ;;  %v983_v59 = vor.u32 %v1227_v49, %v982_v48 }
  0x85   : > { %820 = vmatpush.bf16.msrb.mxu3 %v1195_v0  ;;  %v984_v55 = vld [vmem:[%s1533_s30 + $0x38] sm:$0xf0]  ;;  %v1257_v56 = vld [vmem:[%s1533_s30 + $0x12c] sm:$0xf]  ;;  %v1111_v60 = vor.u32 %v1259_v52, %v1110_v50  ;;  %v966_v62 = vld [vmem:[%s1533_s30 + $0x8] sm:$0xf] }
  0x86   : > { %388 = vperm.xlu0 %1310, %v380_v33   ;;  %v1112_v58 = vld [vmem:[%s1533_s30 + $0x138] sm:$0xf0]  ;;  %v987_v61 = vor.u32 %v1225_v53, %v984_v55  ;;  %v1223_v63 = vld [vmem:[%s1533_s30 + $0x14] sm:$0xf0]  ;;  %v1094_v0 = vld [vmem:[%s1533_s30 + $0x108] sm:$0xf] }
  0x87   : > { %779 = vmatpush.bf16.msrb.mxu0 %v1047_v6  ;;  %v1115_v1 = vor.u32 %v1257_v56, %v1112_v58  ;;  %v1255_v2 = vld [vmem:[%s1533_s30 + $0x114] sm:$0xf0]  ;;  %v1221_v3 = vld [vmem:[%s1533_s30 + $0xc] sm:$0xf]  ;;  %v968_v4 = vld [vmem:[%s1533_s30 + $0x18] sm:$0xf0]  ;;  %v967_v7 = vor.u32 %v1223_v63, %v966_v62 }
  0x88   : > { %793 = vmatpush.bf16.msrb.mxu1 %v1175_v8  ;;  %807 = vmatpush.bf16.msrb.mxu2 %v1051_v9  ;;  %v1253_v5 = vld [vmem:[%s1533_s30 + $0x10c] sm:$0xf]  ;;  %v1096_v6 = vld [vmem:[%s1533_s30 + $0x118] sm:$0xf0]  ;;  %v1095_v8 = vor.u32 %v1255_v2, %v1094_v0  ;;  %v971_v9 = vor.u32 %v1221_v3, %v968_v4 }
  0x89   : > { %821 = vmatpush.bf16.msrb.mxu3 %v1179_v13  ;;  %v1099_v10 = vor.u32 %v1253_v5, %v1096_v6 }
  0x8b   : > { %780 = vmatpush.bf16.msrb.mxu0 %v1031_v20 }
  0x8c   : > { %794 = vmatpush.bf16.msrb.mxu1 %v1159_v21  ;;  %808 = vmatpush.bf16.msrb.mxu2 %v1035_v22 }
  0x8d   : > { %822 = vmatpush.bf16.msrb.mxu3 %v1163_v26 }
  0x8f   : > { %781 = vmatpush.bf16.msrb.mxu0 %v1015_v32 }
  0x90   : > { %795 = vmatpush.bf16.msrb.mxu1 %v1143_v34  ;;  %809 = vmatpush.bf16.msrb.mxu2 %v1019_v35 }
  0x91   : > { %823 = vmatpush.bf16.msrb.mxu3 %v1147_v39 }
  0x93   : > { %782 = vmatpush.bf16.msrb.mxu0 %v999_v45 }
  0x94   : > { %796 = vmatpush.bf16.msrb.mxu1 %v1127_v46  ;;  %810 = vmatpush.bf16.msrb.mxu2 %v1003_v47 }
  0x95   : > { %824 = vmatpush.bf16.msrb.mxu3 %v1131_v51 }
  0x97   : > { %783 = vmatpush.bf16.msrb.mxu0 %v983_v59 }
  0x98   : > { %797 = vmatpush.bf16.msrb.mxu1 %v1111_v60  ;;  %811 = vmatpush.bf16.msrb.mxu2 %v987_v61 }
  0x99   : > { %825 = vmatpush.bf16.msrb.mxu3 %v1115_v1 }
  0x9b   : > { %784 = vmatpush.bf16.msrb.mxu0 %v967_v7 }
  0x9c   : > { %798 = vmatpush.bf16.msrb.mxu1 %v1095_v8  ;;  %812 = vmatpush.bf16.msrb.mxu2 %v971_v9 }
  0x9d   : > { %826 = vmatpush.bf16.msrb.mxu3 %v1099_v10 }
  0x9e   : > { %785 = vmatmul.bf16.vlgmr.msrb.gmra.mxu0 %v1625_v54 }
  0x9f   : > { %799 = vmatmul.bf16.vlgmr.msrb.gmra.mxu1 %v1629_v57  ;;  %813 = vmatmul.bf16.vlgmr.msrb.gmra.mxu2 %v1625_v54 }
  0xa0   : > { %827 = vmatmul.bf16.vlgmr.msrb.gmra.mxu3 %v1629_v57 }
  0xf0   : > { %v384_v11 = vpop.permute.xlu0 %383 }
  0xf8   : > { %v389_v19 = vpop.permute.xlu0 %388 }
  0xfb   : > { %v730_v12 = vpop.f32.mrf.mxu0 }
  0xfc   : > { %v731_v13 = vadd.f32 %v730_v12, %v384_v11 }
  0xfe   : > { %v744_v14 = vpop.f32.mrf.mxu1 }
  0xff   : > { %v745_v15 = vadd.f32 %v744_v14, %v731_v13 }
 0x101   : > { %v833_v20 = vmax.f32 %v745_v15, 0.0 }
 0x102   : > { %v758_v16 = vpop.f32.mrf.mxu2 }
 0x103   : > { %v759_v17 = vadd.f32 %v758_v16, %v384_v11  ;;  %v732_v22 = vpop.f32.mrf.mxu0 }
 0x104   : > { %v733_v23 = vadd.f32 %v732_v22, %v389_v19 }
 0x105   : > { %v772_v18 = vpop.f32.mrf.mxu3 }
 0x106   : > { %v773_v21 = vadd.f32 %v772_v18, %v759_v17  ;;  %v746_v24 = vpop.f32.mrf.mxu1 }
 0x107   : > { %v747_v26 = vadd.f32 %v746_v24, %v733_v23 }
 0x108   : > { %v834_v25 = vmax.f32 %v773_v21, 0.0 }
 0x109   : > { %v837_v29 = vmax.f32 %v747_v26, 0.0 }
 0x10a   : > { %v841_v54 = vpack.c.bf16 %v834_v25, %v833_v20  ;;  %v760_v57 = vpop.f32.mrf.mxu2 }
 0x10b   : > { %v761_v27 = vadd.f32 %v760_v57, %v389_v19 }
 0x10c   : > { %845 = vst [vmem:[%s1695_s24] sm:$0xff] %v841_v54 }
 0x10d   : > { %v774_v28 = vpop.f32.mrf.mxu3 }
 0x10e   : > { %v775_v30 = vadd.f32 %v774_v28, %v761_v27 }
 0x110   : > { %v838_v31 = vmax.f32 %v775_v30, 0.0 }
 0x112   : > { %v843_v32 = vpack.c.bf16 %v838_v31, %v837_v29 }
 0x113   : > { %v871_v56 = vld [vmem:[%s1695_s24] sm:$0xff] (%p1386_p5) }
 0x114   : > { %847 = vst [vmem:[%s1695_s24 + $0x10] sm:$0xff] %v843_v32 }
 0x115   : > { %872 = vst [vmem:[%s858_s27] sm:$0xff] (%p1386_p5), %v871_v56 }
 0x11b   : > { %v786_v33 = vpop.f32.mrf.mxu0  ;;  %v875_v59 = vld [vmem:[%s1695_s24 + $0x10] sm:$0xff] (%p1386_p5) }
 0x11c   : > { %v787_v34 = vadd.f32 %v786_v33, %v384_v11  ;;  %v800_v35 = vpop.f32.mrf.mxu1  ;;  %876 = vst [vmem:[%s858_s27 + $0x20] sm:$0xff] (%p1386_p5), %v875_v59 }
 0x11e   : > { %v801_v36 = vadd.f32 %v800_v35, %v787_v34 }
 0x120   : > { %v835_v41 = vmax.f32 %v801_v36, 0.0 }
 0x122   : > { %v814_v37 = vpop.f32.mrf.mxu2 }
 0x123   : > { %v815_v38 = vadd.f32 %v814_v37, %v384_v11  ;;  %v828_v39 = vpop.f32.mrf.mxu3  ;;  %v788_v40 = vpop.f32.mrf.mxu0 }
 0x124   : > { %v789_v44 = vadd.f32 %v788_v40, %v389_v19  ;;  %v802_v46 = vpop.f32.mrf.mxu1 }
 0x125   : > { %v829_v42 = vadd.f32 %v828_v39, %v815_v38 }
 0x126   : > { %v803_v48 = vadd.f32 %v802_v46, %v789_v44 }
 0x127   : > { %v836_v43 = vmax.f32 %v829_v42, 0.0 }
 0x128   : > { %v839_v52 = vmax.f32 %v803_v48, 0.0 }
 0x129   : > { %v842_v45 = vpack.c.bf16 %v836_v43, %v835_v41 }
 0x12a   : > { %v816_v47 = vpop.f32.mrf.mxu2 }
 0x12b   : > { %846 = vst [vmem:[%s1695_s24 + $0x8] sm:$0xff] %v842_v45  ;;  %v817_v49 = vadd.f32 %v816_v47, %v389_v19  ;;  %v830_v50 = vpop.f32.mrf.mxu3 }
 0x12d   : > { %v831_v51 = vadd.f32 %v830_v50, %v817_v49 }
 0x12f   : > { %v840_v53 = vmax.f32 %v831_v51, 0.0  ;;  %855 = sbr.rel (!%p1386_p5) target bundleno = 316 (0x13c), region = 59 }
 0x131   : > { %v844_v55 = vpack.c.bf16 %v840_v53, %v839_v52 }
 0x132   : > { %v873_v58 = vld [vmem:[%s1695_s24 + $0x8] sm:$0xff] (%p1386_p5) }
 0x133   : > { %848 = vst [vmem:[%s1695_s24 + $0x18] sm:$0xff] %v844_v55 }
 0x134   : > { %874 = vst [vmem:[%s858_s27 + $0x8] sm:$0xff] %v873_v58 }
 0x13a   : > { %v877_v60 = vld [vmem:[%s1695_s24 + $0x18] sm:$0xff] }
 0x13b   : > { %878 = vst [vmem:[%s858_s27 + $0x28] sm:$0xff] %v877_v60 }
 0x13c PF: > { %p10_p10 = scmp.ge.s32.totalorder %s1373_s16, 4   ;;  %s1727_s12 = smov %s1329_s13 }
 0x13d   : > { %s1728_s13 = smov %s1384_s19  ;;  %s1729_s14 = smov %s1373_s16 }
 0x13e   :  { %12 = sbr.rel (!%p10_p10) target bundleno = 2 (0x2), region = 113 }

// kernel: dqn_forward.3
= control target key start
LH: loop header
LB: loop body
LE: loop exit
PB: predicated region body
PF: predicated region fallthrough
CT: control target
= control target key end

     0   :  { %s9648_s0 = inlined_call_operand.vmem [shape: bf16[256,162], index: 0, kind: input, shape index: {}]   ;;  %s9649_s1 = inlined_call_operand.vmem [shape: bf16[32,256], index: 1, kind: input, shape index: {}]   ;;  %s9650_s2 = inlined_call_operand.vmem [shape: f32[32,1], index: 2, kind: input, shape index: {}]   ;;  %s9651_s3 = inlined_call_operand.vmem [shape: bf16[2592,256], index: 3, kind: input, shape index: {}]   ;;  %s9652_s4 = inlined_call_operand.vmem [shape: f32[1,256], index: 4, kind: input, shape index: {}]   ;;  %s9653_s5 = inlined_call_operand.vmem [shape: bf16[256,6], index: 5, kind: input, shape index: {}]   ;;  %s9654_s6 = inlined_call_operand.vmem [shape: f32[1,6], index: 6, kind: input, shape index: {}]   ;;  %s9655_s7 = inlined_call_operand.hbm [shape: f32[2,6], index: 7, kind: output, shape index: {}]  }
   0x1   :  { %v4337_v0 = vld [vmem:[%s9648_s0 + $0x70] sm:$0xf]  ;;  %v5804_v1 = vld [vmem:[%s9648_s0 + $0x74] sm:$0xf0]  ;;  %v5803_v5 = vld [vmem:[%s9648_s0 + $0x74] sm:$0xf] }
   0x2   :  { %v4401_v2 = vld [vmem:[%s9648_s0 + $0xf0] sm:$0xf]  ;;  %v4338_v3 = vor.u32 %v5804_v1, %v4337_v0  ;;  %v5820_v4 = vld [vmem:[%s9648_s0 + $0xf4] sm:$0xf0]  ;;  %v4339_v6 = vld [vmem:[%s9648_s0 + $0x78] sm:$0xf0] }
   0x3   :  { %v4402_v7 = vor.u32 %v5820_v4, %v4401_v2  ;;  %v4342_v8 = vor.u32 %v5803_v5, %v4339_v6  ;;  %v5819_v9 = vld [vmem:[%s9648_s0 + $0xf4] sm:$0xf]  ;;  %v4403_v10 = vld [vmem:[%s9648_s0 + $0xf8] sm:$0xf0]  ;;  %v4329_v11 = vld [vmem:[%s9648_s0 + $0x60] sm:$0xf] }
   0x4   :  { %268 = vmatpush.bf16.msra.mxu0 %v4338_v3  ;;  %v4406_v12 = vor.u32 %v5819_v9, %v4403_v10  ;;  %v5802_v13 = vld [vmem:[%s9648_s0 + $0x64] sm:$0xf0]  ;;  %v4393_v14 = vld [vmem:[%s9648_s0 + $0xe0] sm:$0xf]  ;;  %v5801_v18 = vld [vmem:[%s9648_s0 + $0x64] sm:$0xf] }
   0x5   :  { %v5818_v15 = vld [vmem:[%s9648_s0 + $0xe4] sm:$0xf0]  ;;  %287 = vmatpush.bf16.msra.mxu1 %v4402_v7  ;;  %306 = vmatpush.bf16.msra.mxu2 %v4342_v8  ;;  %v4330_v16 = vor.u32 %v5802_v13, %v4329_v11  ;;  %v4331_v19 = vld [vmem:[%s9648_s0 + $0x68] sm:$0xf0]  ;;  %v5817_v20 = vld [vmem:[%s9648_s0 + $0xe4] sm:$0xf] }
   0x6   :  { %v4394_v17 = vor.u32 %v5818_v15, %v4393_v14  ;;  %325 = vmatpush.bf16.msra.mxu3 %v4406_v12  ;;  %v4334_v21 = vor.u32 %v5801_v18, %v4331_v19  ;;  %v4395_v22 = vld [vmem:[%s9648_s0 + $0xe8] sm:$0xf0]  ;;  %v4321_v23 = vld [vmem:[%s9648_s0 + $0x50] sm:$0xf]  ;;  %v5800_v24 = vld [vmem:[%s9648_s0 + $0x54] sm:$0xf0] }
   0x7   :  { %v4398_v25 = vor.u32 %v5817_v20, %v4395_v22  ;;  %v4385_v26 = vld [vmem:[%s9648_s0 + $0xd0] sm:$0xf]  ;;  %v5816_v27 = vld [vmem:[%s9648_s0 + $0xd4] sm:$0xf0]  ;;  %v5799_v28 = vld [vmem:[%s9648_s0 + $0x54] sm:$0xf]  ;;  %v4322_v29 = vor.u32 %v5800_v24, %v4321_v23 }
   0x8   :  { %269 = vmatpush.bf16.msra.mxu0 %v4330_v16  ;;  %v4323_v30 = vld [vmem:[%s9648_s0 + $0x58] sm:$0xf0]  ;;  %v5815_v31 = vld [vmem:[%s9648_s0 + $0xd4] sm:$0xf]  ;;  %v4386_v33 = vor.u32 %v5816_v27, %v4385_v26  ;;  %v4313_v35 = vld [vmem:[%s9648_s0 + $0x40] sm:$0xf] }
   0x9   :  { %v4387_v32 = vld [vmem:[%s9648_s0 + $0xd8] sm:$0xf0]  ;;  %288 = vmatpush.bf16.msra.mxu1 %v4394_v17  ;;  %307 = vmatpush.bf16.msra.mxu2 %v4334_v21  ;;  %v4326_v34 = vor.u32 %v5799_v28, %v4323_v30  ;;  %v5798_v36 = vld [vmem:[%s9648_s0 + $0x44] sm:$0xf0]  ;;  %v4377_v37 = vld [vmem:[%s9648_s0 + $0xc0] sm:$0xf] }
   0xa   :  { %326 = vmatpush.bf16.msra.mxu3 %v4398_v25  ;;  %v4390_v38 = vor.u32 %v5815_v31, %v4387_v32  ;;  %v5814_v39 = vld [vmem:[%s9648_s0 + $0xc4] sm:$0xf0]  ;;  %v5797_v40 = vld [vmem:[%s9648_s0 + $0x44] sm:$0xf]  ;;  %v4315_v41 = vld [vmem:[%s9648_s0 + $0x48] sm:$0xf0]  ;;  %v4314_v44 = vor.u32 %v5798_v36, %v4313_v35 }
   0xb   :  { %v5813_v42 = vld [vmem:[%s9648_s0 + $0xc4] sm:$0xf]  ;;  %v4379_v43 = vld [vmem:[%s9648_s0 + $0xc8] sm:$0xf0]  ;;  %v4378_v45 = vor.u32 %v5814_v39, %v4377_v37  ;;  %v4318_v46 = vor.u32 %v5797_v40, %v4315_v41  ;;  %v4305_v47 = vld [vmem:[%s9648_s0 + $0x30] sm:$0xf] }
   0xc   :  { %270 = vmatpush.bf16.msra.mxu0 %v4322_v29  ;;  %v5796_v48 = vld [vmem:[%s9648_s0 + $0x34] sm:$0xf0]  ;;  %v4369_v49 = vld [vmem:[%s9648_s0 + $0xb0] sm:$0xf]  ;;  %v4382_v50 = vor.u32 %v5813_v42, %v4379_v43  ;;  %v5795_v52 = vld [vmem:[%s9648_s0 + $0x34] sm:$0xf] }
   0xd   :  { %289 = vmatpush.bf16.msra.mxu1 %v4386_v33  ;;  %308 = vmatpush.bf16.msra.mxu2 %v4326_v34  ;;  %v5812_v51 = vld [vmem:[%s9648_s0 + $0xb4] sm:$0xf0]  ;;  %v4307_v53 = vld [vmem:[%s9648_s0 + $0x38] sm:$0xf0]  ;;  %v5811_v54 = vld [vmem:[%s9648_s0 + $0xb4] sm:$0xf]  ;;  %v4306_v56 = vor.u32 %v5796_v48, %v4305_v47 }
   0xe   :  { %327 = vmatpush.bf16.msra.mxu3 %v4390_v38  ;;  %v4371_v55 = vld [vmem:[%s9648_s0 + $0xb8] sm:$0xf0]  ;;  %v4370_v57 = vor.u32 %v5812_v51, %v4369_v49  ;;  %v4310_v58 = vor.u32 %v5795_v52, %v4307_v53  ;;  %v4297_v59 = vld [vmem:[%s9648_s0 + $0x20] sm:$0xf]  ;;  %v5794_v60 = vld [vmem:[%s9648_s0 + $0x24] sm:$0xf0] }
   0xf   :  { %v4361_v61 = vld [vmem:[%s9648_s0 + $0xa0] sm:$0xf]  ;;  %v4374_v62 = vor.u32 %v5811_v54, %v4371_v55  ;;  %v5810_v63 = vld [vmem:[%s9648_s0 + $0xa4] sm:$0xf0]  ;;  %v5793_v0 = vld [vmem:[%s9648_s0 + $0x24] sm:$0xf]  ;;  %v4298_v4 = vor.u32 %v5794_v60, %v4297_v59 }
  0x10   :  { %271 = vmatpush.bf16.msra.mxu0 %v4314_v44  ;;  %v4299_v1 = vld [vmem:[%s9648_s0 + $0x28] sm:$0xf0]  ;;  %v5809_v2 = vld [vmem:[%s9648_s0 + $0xa4] sm:$0xf]  ;;  %v4362_v5 = vor.u32 %v5810_v63, %v4361_v61  ;;  %v4289_v7 = vld [vmem:[%s9648_s0 + $0x10] sm:$0xf] }
  0x11   :  { %290 = vmatpush.bf16.msra.mxu1 %v4378_v45  ;;  %309 = vmatpush.bf16.msra.mxu2 %v4318_v46  ;;  %v4363_v3 = vld [vmem:[%s9648_s0 + $0xa8] sm:$0xf0]  ;;  %v4302_v6 = vor.u32 %v5793_v0, %v4299_v1  ;;  %v5792_v8 = vld [vmem:[%s9648_s0 + $0x14] sm:$0xf0]  ;;  %v4353_v9 = vld [vmem:[%s9648_s0 + $0x90] sm:$0xf] }
  0x12   :  { %328 = vmatpush.bf16.msra.mxu3 %v4382_v50  ;;  %v4366_v10 = vor.u32 %v5809_v2, %v4363_v3  ;;  %v5808_v11 = vld [vmem:[%s9648_s0 + $0x94] sm:$0xf0]  ;;  %v5791_v12 = vld [vmem:[%s9648_s0 + $0x14] sm:$0xf]  ;;  %v4291_v13 = vld [vmem:[%s9648_s0 + $0x18] sm:$0xf0]  ;;  %v4290_v17 = vor.u32 %v5792_v8, %v4289_v7 }
  0x13   :  { %v5807_v14 = vld [vmem:[%s9648_s0 + $0x94] sm:$0xf]  ;;  %v4355_v15 = vld [vmem:[%s9648_s0 + $0x98] sm:$0xf0]  ;;  %v64_v16 = vld [vmem:[%s9650_s2] sm:$0xff]  ;;  %v6230_v21 = vmov 0   ;;  %v4354_v22 = vor.u32 %v5808_v11, %v4353_v9  ;;  %v4294_v23 = vor.u32 %v5791_v12, %v4291_v13 }
  0x14   :  { %272 = vmatpush.bf16.msra.mxu0 %v4306_v56  ;;  %v4281_v18 = vld [vmem:[%s9648_s0] sm:$0xf]  ;;  %v5790_v19 = vld [vmem:[%s9648_s0 + $0x4] sm:$0xf0]  ;;  %6195 = vset.pattern.permute.xlu0 %v6230_v21  ;;  %v5789_v25 = vld [vmem:[%s9648_s0 + $0x4] sm:$0xf]  ;;  %v4358_v27 = vor.u32 %v5807_v14, %v4355_v15 }
  0x15   :  { %291 = vmatpush.bf16.msra.mxu1 %v4370_v57  ;;  %310 = vmatpush.bf16.msra.mxu2 %v4310_v58  ;;  %v4345_v20 = vld [vmem:[%s9648_s0 + $0x80] sm:$0xf]  ;;  %v5806_v24 = vld [vmem:[%s9648_s0 + $0x84] sm:$0xf0]  ;;  %v66_v26 = vld [vmem:[%s9650_s2 + $0x10] sm:$0xff] }
  0x16   :  { %329 = vmatpush.bf16.msra.mxu3 %v4374_v62  ;;  %v4283_v28 = vld [vmem:[%s9648_s0 + $0x8] sm:$0xf0]  ;;  %70 = vperm.xlu0 %6195, %v64_v16  }
  0x18   :  { %273 = vmatpush.bf16.msra.mxu0 %v4298_v4 }
  0x19   :  { %292 = vmatpush.bf16.msra.mxu1 %v4362_v5  ;;  %311 = vmatpush.bf16.msra.mxu2 %v4302_v6 }
  0x1a   :  { %330 = vmatpush.bf16.msra.mxu3 %v4366_v10 }
  0x1b   :  { %12 = vsyncpa [#allocation5], 0  ;;  %v5805_v29 = vld [vmem:[%s9648_s0 + $0x84] sm:$0xf]  ;;  %v4347_v30 = vld [vmem:[%s9648_s0 + $0x88] sm:$0xf0]  ;;  %6196 = vset.pattern.permute.xlu1 %v6230_v21  ;;  %v4282_v31 = vor.u32 %v5790_v19, %v4281_v18  ;;  %v4346_v34 = vor.u32 %v5806_v24, %v4345_v20  ;;  %v4286_v35 = vor.u32 %v5789_v25, %v4283_v28 }
  0x1c   :  { %274 = vmatpush.bf16.msra.mxu0 %v4290_v17  ;;  %v4265_v32 = vld [vmem:[%s9649_s1] sm:$0xf]  ;;  %v5786_v33 = vld [vmem:[%s9649_s1 + $0x4] sm:$0xf0]  ;;  %80 = vperm.xlu1 %6196, %v66_v26   ;;  %v5785_v36 = vld [vmem:[%s9649_s1 + $0x4] sm:$0xf]  ;;  %v4350_v38 = vor.u32 %v5805_v29, %v4347_v30 }
  0x1d   :  { %293 = vmatpush.bf16.msra.mxu1 %v4354_v22  ;;  %312 = vmatpush.bf16.msra.mxu2 %v4294_v23  ;;  %v4267_v37 = vld [vmem:[%s9649_s1 + $0x8] sm:$0xf0]  ;;  %v4266_v39 = vor.u32 %v5786_v33, %v4265_v32  ;;  %v67_v42 = vld [vmem:[%s9650_s2 + $0x18] sm:$0xff]  ;;  %v4273_v43 = vld [vmem:[%s9649_s1 + $0x10] sm:$0xf]  ;;  %vm356_vm0 = vcmask 1043456  }
  0x1e   :  { %331 = vmatpush.bf16.msra.mxu3 %v4358_v27  ;;  %v65_v40 = vld [vmem:[%s9650_s2 + $0x8] sm:$0xff]  ;;  %v4270_v41 = vor.u32 %v5785_v36, %v4267_v37  ;;  %v5788_v44 = vld [vmem:[%s9649_s1 + $0x14] sm:$0xf0]  ;;  %v5787_v45 = vld [vmem:[%s9649_s1 + $0x14] sm:$0xf]  ;;  %vm357_vm1 = vcmask 277508  }
  0x1f   :  { %75 = vperm.xlu0 %6195, %v65_v40   ;;  %v4275_v46 = vld [vmem:[%s9649_s1 + $0x18] sm:$0xf0]  ;;  %v4274_v47 = vor.u32 %v5788_v44, %v4273_v43  ;;  %vm6532_vm2 = vmor %vm357_vm1, %vm356_vm0  ;;  %vm364_vm3 = vcmask 655360   ;;  %vm365_vm4 = vsmask.f32 256  ;;  %vm373_vm6 = vcmask 1040384  }
  0x20   :  { %275 = vmatpush.bf16.msra.mxu0 %v4282_v31  ;;  %v4278_v48 = vor.u32 %v5787_v45, %v4275_v46  ;;  %vm366_vm5 = vmand %vm364_vm3, %vm365_vm4  ;;  %v367_v8 = vld [vmem:[#allocation3] sm:$0x1]  ;;  %s6231_s1 = smov 47   ;;  %s6232_s2 = smov 81   ;;  %vm387_vm7 = vcmask 1041032   ;;  %vm389_vm8 = vcmask 271361  }
  0x21   :  { %294 = vmatpush.bf16.msra.mxu1 %v4346_v34  ;;  %313 = vmatpush.bf16.msra.mxu2 %v4286_v35  ;;  %s6233_s14 = smov 115   ;;  %s6234_s15 = smov 34   ;;  %vm390_vm9 = vsmask.f32 1280  ;;  %vm388_vm10 = vmand %vm387_vm7, %vm365_vm4  ;;  %vm9656_vm12 = vcmask 662528   ;;  %vm405_vm14 = vcmask 934160  }
  0x22   :  { %332 = vmatpush.bf16.msra.mxu3 %v4350_v38  ;;  %s6235_s16 = smov 68   ;;  %s6236_s17 = smov 21   ;;  %vm391_vm11 = vmand %vm389_vm8, %vm390_vm9  ;;  %vm995_vm0 = vsmask.f32 7938  ;;  %vm992_vm1 = vcmask 384000  }
  0x23   :  { %276 = vmatmul.bf16.vlgmr.msra.gmra.mxu0 %v4266_v39  ;;  %s6237_s18 = smov 102   ;;  %s6238_s19 = smov 55   ;;  %vm392_vm13 = vmor %vm391_vm11, %vm388_vm10  ;;  %vm9657_vm10 = vcmask 549889  }
  0x24   :  { %295 = vmatmul.bf16.vlgmr.msra.gmra.mxu1 %v4270_v41  ;;  %314 = vmatmul.bf16.vlgmr.msra.gmra.mxu2 %v4266_v39  ;;  %s6239_s20 = smov 8   ;;  %vm406_vm15 = vmand %vm405_vm14, %vm365_vm4  ;;  %s6240_s21 = smov 89  }
  0x25   :  { %333 = vmatmul.bf16.vlgmr.msra.gmra.mxu3 %v4270_v41  ;;  %85 = vperm.xlu1 %6196, %v67_v42   ;;  %s6241_s22 = smov 42   ;;  %s6242_s23 = smov 123  }
  0x26   :  { %s6243_s0 = smov 76   ;;  %s6244_s24 = smov 29  }
  0x27   :  { %s6245_s25 = smov 110   ;;  %s6246_s26 = smov 63  }
  0x28   :  { %s6247_s27 = smov 16   ;;  %s6248_s28 = smov 97  }
  0x29   :  { %s6249_s29 = smov 50   ;;  %s6250_s30 = smov 3  }
  0x2a   :  { %s6251_s8 = smov 84   ;;  %s6252_s9 = smov 37  }
  0x2b   :  { %s6253_s10 = smov 118   ;;  %s6254_s11 = smov 71  }
  0x2c   :  { %s6255_s12 = smov 24   ;;  %s6256_s13 = smov 105  }
  0x33   :  { %281 = vmatmul.bf16.gmra.mxu0 %v4274_v47 }
  0x34   :  { %319 = vmatmul.bf16.gmra.mxu2 %v4274_v47  ;;  %300 = vmatmul.bf16.gmra.mxu1 %v4278_v48 }
  0x35   :  { %338 = vmatmul.bf16.gmra.mxu3 %v4278_v48 }
  0x88   :  { %v71_v50 = vpop.permute.xlu0 %70 }
  0x8e   :  { %v81_v34 = vpop.permute.xlu1 %80 }
  0x91   :  { %v76_v60 = vpop.permute.xlu0 %75 }
  0x97   :  { %v86_v43 = vpop.permute.xlu1 %85 }
  0xa0   :  { %v277_v49 = vpop.f32.mrf.mxu0 }
  0xa1   :  { %v278_v51 = vadd.f32 %v277_v49, %v71_v50  ;;  %v296_v52 = vpop.f32.mrf.mxu1 }
  0xa3   :  { %v297_v53 = vadd.f32 %v296_v52, %v278_v51 }
  0xa5   :  { %v344_v57 = vmax.f32 %v297_v53, 0.0 }
  0xa7   :  { %v315_v54 = vpop.f32.mrf.mxu2 }
  0xa8   :  { %v316_v55 = vadd.f32 %v315_v54, %v71_v50  ;;  %v334_v56 = vpop.f32.mrf.mxu3  ;;  %v279_v59 = vpop.f32.mrf.mxu0 }
  0xa9   :  { %v280_v63 = vadd.f32 %v279_v59, %v76_v60  ;;  %v298_v2 = vpop.f32.mrf.mxu1 }
  0xaa   :  { %v335_v58 = vadd.f32 %v334_v56, %v316_v55 }
  0xab   :  { %v299_v4 = vadd.f32 %v298_v2, %v280_v63 }
  0xac   :  { %v345_v61 = vmax.f32 %v335_v58, 0.0 }
  0xad   :  { %v346_v9 = vmax.f32 %v299_v4, 0.0 }
  0xae   :  { %v352_v0 = vpack.c.bf16 %v345_v61, %v344_v57 }
  0xaf   :  { %v317_v1 = vpop.f32.mrf.mxu2 }
  0xb0   :  { %359 = vst.msk [vmem:[#allocation2] sm:$0xff] %vm6532_vm2, %v352_v0  ;;  %v318_v3 = vadd.f32 %v317_v1, %v76_v60  ;;  %v336_v5 = vpop.f32.mrf.mxu3  ;;  %v282_v35 = vpop.f32.mrf.mxu0 }
  0xb1   :  { %v301_v37 = vpop.f32.mrf.mxu1  ;;  %v283_v46 = vadd.f32 %v282_v35, %v81_v34 }
  0xb2   :  { %v337_v6 = vadd.f32 %v336_v5, %v318_v3 }
  0xb3   :  { %v302_v55 = vadd.f32 %v301_v37, %v283_v46 }
  0xb4   :  { %v347_v7 = vmax.f32 %v337_v6, 0.0 }
  0xb5   :  { %v348_v60 = vmax.f32 %v302_v55, 0.0 }
  0xb6   :  { %v353_v12 = vpack.c.bf16 %v347_v7, %v346_v9 }
  0xb7   :  { %v363_v10 = vld [vmem:[#allocation2] sm:$0x1]  ;;  %v396_v11 = vld [vmem:[#allocation2] sm:$0x2]  ;;  %v433_v25 = vld [vmem:[#allocation2] sm:$0x4]  ;;  %v320_v36 = vpop.f32.mrf.mxu2 }
  0xb8   :  { %v368_v13 = vsel %vm366_vm5, %v363_v10, %v367_v8  ;;  %398 = vst [vmem:[#allocation1] sm:$0xff] %v396_v11  ;;  %v981_v14 = vld [vmem:[#allocation2] sm:$0x11]  ;;  %v410_v19 = vld [vmem:[#allocation2] sm:$0x2]  ;;  %v339_v38 = vpop.f32.mrf.mxu3  ;;  %v284_v44 = vpop.f32.mrf.mxu0  ;;  %v321_v47 = vadd.f32 %v320_v36, %v81_v34  ;;  %vm425_vm5 = vcmask 1041304  }
  0xb9   :  { %369 = vst [vmem:[#allocation3] sm:$0x1] %v368_v13  ;;  %v983_v15 = vrot.slane %v981_v14, 3  ;;  %v370_v16 = vld [vmem:[#allocation2] sm:$0x1]  ;;  %v285_v48 = vadd.f32 %v284_v44, %v86_v43  ;;  %v303_v51 = vpop.f32.mrf.mxu1  ;;  %vm426_vm11 = vmand %vm425_vm5, %vm365_vm4 }
  0xba   :  { %360 = vst.msk [vmem:[#allocation2 + $0x8] sm:$0xff] %vm6532_vm2, %v353_v12  ;;  %v372_v17 = vrot.slane %v370_v16, 3  ;;  %v453_v28 = vld [vmem:[#allocation2] sm:$0x4]  ;;  %v470_v30 = vld [vmem:[#allocation2] sm:$0x8]  ;;  %v340_v56 = vadd.f32 %v339_v38, %v321_v47 }
  0xbb   :  { %v986_v20 = vsel %vm373_vm6, %v981_v14, %v983_v15  ;;  %v490_v33 = vld [vmem:[#allocation2] sm:$0x8]  ;;  %v304_v57 = vadd.f32 %v303_v51, %v285_v48 }
  0xbc   :  { %v987_v21 = vshll.u32 %v986_v20, 16  ;;  %v376_v22 = vsel %vm373_vm6, %v370_v16, %v372_v17  ;;  %v349_v61 = vmax.f32 %v340_v56, 0.0  ;;  %v1100_v44 = vld [vmem:[#allocation2] sm:$0x88] }
  0xbd   :  { %v377_v23 = vshrl.u32 %v376_v22, 16  ;;  %v350_v63 = vmax.f32 %v304_v57, 0.0 }
  0xbe   :  { %989 = vrot.lane.b32.xlu1 %v987_v21, %s6231_s1  ;;  %v354_v1 = vpack.c.bf16 %v349_v61, %v348_v60  ;;  %s6257_s1 = smov 58  }
  0xbf   :  { %v400_v18 = vld [vmem:[#allocation1 + $0x1] ss:$4 sm:$0xff]  ;;  %381 = vrot.lane.b32.xlu2 %v377_v23, %s6232_s2  ;;  %v322_v49 = vpop.f32.mrf.mxu2 }
  0xc0   :  { %412 = vst [vmem:[#allocation1] sm:$0xff] %v410_v19  ;;  %v323_v50 = vadd.f32 %v322_v49, %v86_v43  ;;  %v341_v52 = vpop.f32.mrf.mxu3  ;;  %v393_v17 = vld [vmem:[#allocation3] sm:$0x3] }
  0xc1   :  { %v552_v40 = vld [vmem:[#allocation2 + $0x8] sm:$0x2]  ;;  %v513_v42 = vld [vmem:[#allocation2 + $0x8] sm:$0x1]  ;;  %361 = vst.msk [vmem:[#allocation2 + $0x10] sm:$0xff] %vm6532_vm2, %v354_v1 }
  0xc2   :  { %v515_v45 = vrot.slane %v513_v42, 3  ;;  %v566_v54 = vld [vmem:[#allocation2 + $0x8] sm:$0x2]  ;;  %v342_v58 = vadd.f32 %v341_v52, %v323_v50  ;;  %v589_v4 = vld [vmem:[#allocation2 + $0x8] sm:$0x4] }
  0xc3   :  { %v609_v6 = vld [vmem:[#allocation2 + $0x8] sm:$0x4]  ;;  %v626_v8 = vld [vmem:[#allocation2 + $0x8] sm:$0x8] }
  0xc4   :  { %v518_v59 = vsel %vm373_vm6, %v513_v42, %v515_v45  ;;  %v351_v0 = vmax.f32 %v342_v58, 0.0  ;;  %v646_v10 = vld [vmem:[#allocation2 + $0x8] sm:$0x8] }
  0xc6   :  { %v355_v2 = vpack.c.bf16 %v351_v0, %v350_v63 }
  0xc7   :  { %v414_v24 = vld [vmem:[#allocation1 + $0x1] ss:$4 sm:$0xff]  ;;  %402 = vrot.lane.b32.xlu2 %v400_v18, %s6234_s15 }
  0xc8   :  { %435 = vst [vmem:[#allocation1] sm:$0xff] %v433_v25  ;;  %v415_v26 = vshrl.u32 %v414_v24, 16  ;;  %v708_v11 = vld [vmem:[#allocation2 + $0x10] sm:$0x2]  ;;  %v745_v20 = vld [vmem:[#allocation2 + $0x10] sm:$0x4] }
  0xc9   :  { %362 = vst.msk [vmem:[#allocation2 + $0x18] sm:$0xff] %vm6532_vm2, %v355_v2  ;;  %v728_v15 = vld [vmem:[#allocation2 + $0x10] sm:$0x2]  ;;  %v765_v25 = vld [vmem:[#allocation2 + $0x10] sm:$0x4]  ;;  %vm996_vm2 = vmand %vm364_vm3, %vm995_vm0 }
  0xca   :  { %419 = vrot.lane.b32.xlu0 %v415_v26, %s6233_s14  ;;  %v802_v35 = vld [vmem:[#allocation2 + $0x10] sm:$0x8] }
  0xcf   :  { %v437_v27 = vld [vmem:[#allocation1 + $0x2] ss:$4 sm:$0xff] }
  0xd0   :  { %455 = vst [vmem:[#allocation1] sm:$0xff] %v453_v28  ;;  %439 = vrot.lane.b32.xlu2 %v437_v27, %s6235_s16  ;;  %v782_v28 = vld [vmem:[#allocation2 + $0x10] sm:$0x8]  ;;  %v864_v48 = vld [vmem:[#allocation2 + $0x18] sm:$0x2] }
  0xd1   :  { %v884_v57 = vld [vmem:[#allocation2 + $0x18] sm:$0x2]  ;;  %v901_v0 = vld [vmem:[#allocation2 + $0x18] sm:$0x4] }
  0xd7   :  { %v457_v29 = vld [vmem:[#allocation1 + $0x2] ss:$4 sm:$0xff] }
  0xd8   :  { %472 = vst [vmem:[#allocation1] sm:$0xff] %v470_v30  ;;  %v458_v31 = vshrl.u32 %v457_v29, 16 }
  0xda   :  { %462 = vrot.lane.b32.xlu1 %v458_v31, %s6236_s17 }
  0xdf   :  { %v474_v32 = vld [vmem:[#allocation1 + $0x3] ss:$4 sm:$0xff] }
  0xe0   :  { %492 = vst [vmem:[#allocation1] sm:$0xff] %v490_v33  ;;  %476 = vrot.lane.b32.xlu2 %v474_v32, %s6237_s18 }
  0xe7   :  { %v494_v39 = vld [vmem:[#allocation1 + $0x3] ss:$4 sm:$0xff] }
  0xe8   :  { %554 = vst [vmem:[#allocation1] sm:$0xff] %v552_v40  ;;  %v495_v41 = vshrl.u32 %v494_v39, 16 }
  0xea   :  { %499 = vrot.lane.b32.xlu1 %v495_v41, %s6238_s19  ;;  %v1000_v41 = vld [vmem:[#allocation2] sm:$0x11] }
  0xeb   :  { %v1002_v45 = vrot.slane %v1000_v41, 3 }
  0xed   :  { %v1005_v49 = vsel %vm373_vm6, %v1000_v41, %v1002_v45  ;;  %v1081_v41 = vld [vmem:[#allocation2] sm:$0x88] }
  0xef   :  { %v6551_v53 = vld [vmem:[#allocation1 + $0x1] ss:$4 sm:$0xff] }
  0xf0   :  { %568 = vst [vmem:[#allocation1] sm:$0xff] %v566_v54 }
  0xf2   :  { %520 = vrot.lane.b32.xlu1 %v518_v59, %s6239_s20 }
  0xf7   :  { %v6559_v3 = vld [vmem:[#allocation1 + $0x1] ss:$4 sm:$0xff] }
  0xf8   :  { %591 = vst [vmem:[#allocation1] sm:$0xff] %v589_v4 }
  0xff   :  { %v6561_v5 = vld [vmem:[#allocation1 + $0x2] ss:$4 sm:$0xff] }
 0x100   :  { %611 = vst [vmem:[#allocation1] sm:$0xff] %v609_v6 }
 0x107   :  { %v6563_v7 = vld [vmem:[#allocation1 + $0x2] ss:$4 sm:$0xff] }
 0x108   :  { %628 = vst [vmem:[#allocation1] sm:$0xff] %v626_v8 }
 0x10f   :  { %v6565_v9 = vld [vmem:[#allocation1 + $0x3] ss:$4 sm:$0xff] }
 0x110   :  { %648 = vst [vmem:[#allocation1] sm:$0xff] %v646_v10 }
 0x117   :  { %v6567_v12 = vld [vmem:[#allocation1 + $0x3] ss:$4 sm:$0xff] }
 0x118   :  { %710 = vst [vmem:[#allocation1] sm:$0xff] %v708_v11  ;;  %v921_v11 = vld [vmem:[#allocation2 + $0x18] sm:$0x4] }
 0x119   :  { %v382_v62 = vpop.permute.xlu2 %381 }
 0x11a   :  { %v383_v13 = vrot.slane %v382_v62, 7 }
 0x11c   :  { %v385_v16 = vsel %vm9656_vm12, %v383_v13, %v382_v62  ;;  %vm1008_vm12 = vsmask.f32 7942 }
 0x11d   :  { %v394_v18 = vsel %vm392_vm13, %v385_v16, %v393_v17  ;;  %vm428_vm13 = vmand %vm9657_vm10, %vm390_vm9  ;;  %vm9659_vm10 = vcmask 164865  }
 0x11e   :  { %395 = vst [vmem:[#allocation3] sm:$0x3] %v394_v18  ;;  %vm429_vm3 = vmor %vm428_vm13, %vm426_vm11  ;;  %v938_v18 = vld [vmem:[#allocation2 + $0x18] sm:$0x8] }
 0x11f   :  { %v6573_v14 = vld [vmem:[#allocation1 + $0x1] ss:$4 sm:$0xff]  ;;  %vm6601_vm11 = vmand %vm389_vm8, %vm1008_vm12 }
 0x120   :  { %730 = vst [vmem:[#allocation1] sm:$0xff] %v728_v15 }
 0x121   :  { %v403_v21 = vpop.permute.xlu2 %402 }
 0x125   :  { %v407_v22 = vld [vmem:[#allocation3 + $0x1] sm:$0x1]  ;;  %v997_v31 = vld [vmem:[#allocation3] sm:$0x1] }
 0x126   :  { %v408_v23 = vsel %vm406_vm15, %v403_v21, %v407_v22  ;;  %vm9658_vm15 = vcmask 941056  }
 0x127   :  { %v6576_v19 = vld [vmem:[#allocation1 + $0x1] ss:$4 sm:$0xff]  ;;  %409 = vst [vmem:[#allocation3 + $0x1] sm:$0x1] %v408_v23 }
 0x128   :  { %747 = vst [vmem:[#allocation1] sm:$0xff] %v745_v20 }
 0x12a   :  { %v440_v43 = vpop.permute.xlu2 %439 }
 0x12b   :  { %v441_v46 = vrot.slane %v440_v43, 7 }
 0x12e   :  { %v430_v38 = vld [vmem:[#allocation3 + $0x1] sm:$0x3] }
 0x12f   :  { %v6580_v24 = vld [vmem:[#allocation1 + $0x2] ss:$4 sm:$0xff] }
 0x130   :  { %767 = vst [vmem:[#allocation1] sm:$0xff] %v765_v25  ;;  %v990_v26 = vpop.permute.xlu1 %989  ;;  %v958_v25 = vld [vmem:[#allocation2 + $0x18] sm:$0x8] }
 0x131   :  { %v991_v27 = vrot.slane %v990_v26, 1 }
 0x133   :  { %v993_v30 = vsel %vm992_vm1, %v990_v26, %v991_v27  ;;  %vm445_vm1 = vcmask 1040928   ;;  %v1014_v26 = vld [vmem:[#allocation2] sm:$0x22] }
 0x134   :  { %v998_v32 = vsel %vm996_vm2, %v993_v30, %v997_v31  ;;  %vm6595_vm2 = vmand %vm387_vm7, %vm995_vm0 }
 0x135   :  { %999 = vst [vmem:[#allocation3] sm:$0x1] %v998_v32  ;;  %vm6607_vm13 = vmand %vm445_vm1, %vm365_vm4  ;;  %v1048_v32 = vld [vmem:[#allocation2] sm:$0x44] }
 0x136   :  { %vm448_vm7 = vmand %vm9659_vm10, %vm390_vm9  ;;  %vm9661_vm10 = vcmask 827560  }
 0x137   :  { %v6584_v29 = vld [vmem:[#allocation1 + $0x2] ss:$4 sm:$0xff]  ;;  %vm1010_vm8 = vmor %vm6601_vm11, %vm6595_vm2  ;;  %vm9662_vm11 = vcmask 1041200  }
 0x138   :  { %784 = vst [vmem:[#allocation1] sm:$0xff] %v782_v28  ;;  %vm466_vm2 = vmand %vm9661_vm10, %vm365_vm4  ;;  %vm505_vm10 = vcmask 1040824   ;;  %v1030_v28 = vld [vmem:[#allocation2] sm:$0x22] }
 0x13a   :  { %v477_v61 = vpop.permute.xlu2 %476 }
 0x13b   :  { %v478_v1 = vrot.slane %v477_v61, 7 }
 0x13c   :  { %v420_v33 = vpop.permute.xlu0 %419 }
 0x13d   :  { %v421_v34 = vrot.slane %v420_v33, 7 }
 0x13f   :  { %v6590_v36 = vld [vmem:[#allocation1 + $0x3] ss:$4 sm:$0xff]  ;;  %v423_v37 = vsel %vm9658_vm15, %v421_v34, %v420_v33  ;;  %vm449_vm15 = vmor %vm448_vm7, %vm6607_vm13  ;;  %vm9663_vm13 = vcmask 443393   ;;  %v528_v34 = vld [vmem:[#allocation2 + $0x8] sm:$0x1] }
 0x140   :  { %804 = vst [vmem:[#allocation1] sm:$0xff] %v802_v35  ;;  %v431_v40 = vsel %vm429_vm3, %v423_v37, %v430_v38  ;;  %vm9660_vm3 = vcmask 556032   ;;  %vm485_vm7 = vmand %vm9663_vm13, %vm390_vm9  ;;  %v1066_v35 = vld [vmem:[#allocation2] sm:$0x44]  ;;  %v530_v39 = vrot.slane %v528_v34, 3 }
 0x141   :  { %432 = vst [vmem:[#allocation3 + $0x1] sm:$0x3] %v431_v40  ;;  %v443_v50 = vsel %vm9660_vm3, %v441_v46, %v440_v43 }
 0x142   :  { %v533_v40 = vsel %vm373_vm6, %v528_v34, %v530_v39  ;;  %v1310_v34 = vld [vmem:[#allocation2 + $0x10] sm:$0x22]  ;;  %v1325_v39 = vld [vmem:[#allocation2 + $0x10] sm:$0x44] }
 0x143   :  { %v534_v43 = vshrl.u32 %v533_v40, 16 }
 0x147   :  { %v6619_v47 = vld [vmem:[#allocation1 + $0x3] ss:$4 sm:$0xff] }
 0x148   :  { %866 = vst [vmem:[#allocation1] sm:$0xff] %v864_v48  ;;  %v1011_v51 = vld [vmem:[#allocation3] sm:$0x3]  ;;  %v450_v52 = vld [vmem:[#allocation3 + $0x2] sm:$0x3] }
 0x149   :  { %v1012_v54 = vsel %vm1010_vm8, %v1005_v49, %v1011_v51  ;;  %v451_v55 = vsel %vm449_vm15, %v443_v50, %v450_v52  ;;  %vm483_vm15 = vmand %vm9662_vm11, %vm365_vm4  ;;  %vm9664_vm8 = vcmask 834560   ;;  %v1117_v48 = vld [vmem:[#allocation2 + $0x8] sm:$0x11]  ;;  %v1153_v49 = vld [vmem:[#allocation2 + $0x8] sm:$0x22]  ;;  %v571_v52 = vshrl.u32 %v6559_v3, 16 }
 0x14a   :  { %1013 = vst [vmem:[#allocation3] sm:$0x3] %v1012_v54  ;;  %vm486_vm3 = vmor %vm485_vm7, %vm483_vm15  ;;  %v480_v2 = vsel %vm9664_vm8, %v478_v1, %v477_v61  ;;  %vm9665_vm15 = vcmask 449536   ;;  %v1119_v51 = vrot.slane %v1117_v48, 3  ;;  %v1134_v54 = vld [vmem:[#allocation2 + $0x8] sm:$0x11] }
 0x14b   :  { %452 = vst [vmem:[#allocation3 + $0x2] sm:$0x3] %v451_v55  ;;  %vm506_vm11 = vmand %vm505_vm10, %vm365_vm4  ;;  %v1187_v61 = vld [vmem:[#allocation2 + $0x8] sm:$0x44]  ;;  %v651_v1 = vshrl.u32 %v6567_v12, 16 }
 0x14c   :  { %v463_v58 = vpop.permute.xlu1 %462  ;;  %v1122_v55 = vsel %vm373_vm6, %v1117_v48, %v1119_v51 }
 0x14f   :  { %v6623_v56 = vld [vmem:[#allocation1 + $0x1] ss:$4 sm:$0xff] }
 0x150   :  { %886 = vst [vmem:[#allocation1] sm:$0xff] %v884_v57  ;;  %v1123_v57 = vshll.u32 %v1122_v55, 16 }
 0x152   :  { %v467_v59 = vld [vmem:[#allocation3 + $0x3] sm:$0x1] }
 0x153   :  { %v468_v60 = vsel %vm466_vm2, %v463_v58, %v467_v59  ;;  %vm507_vm2 = vcmask 58369   ;;  %v1169_v58 = vld [vmem:[#allocation2 + $0x8] sm:$0x22] }
 0x154   :  { %469 = vst [vmem:[#allocation3 + $0x3] sm:$0x1] %v468_v60  ;;  %vm508_vm13 = vmand %vm507_vm2, %vm390_vm9  ;;  %v614_v60 = vshrl.u32 %v6563_v7, 16  ;;  %v669_v7 = vld [vmem:[#allocation2 + $0x10] sm:$0x1] }
 0x155   :  { %vm509_vm7 = vmor %vm508_vm13, %vm506_vm11  ;;  %vm9666_vm11 = vcmask 1041096   ;;  %vm9668_vm13 = vcmask 336897  }
 0x157   :  { %v6631_v63 = vld [vmem:[#allocation1 + $0x1] ss:$4 sm:$0xff] }
 0x158   :  { %903 = vst [vmem:[#allocation1] sm:$0xff] %v901_v0 }
 0x15b   :  { %v487_v4 = vld [vmem:[#allocation3 + $0x3] sm:$0x3] }
 0x15c   :  { %v488_v6 = vsel %vm486_vm3, %v480_v2, %v487_v4  ;;  %v500_v8 = vpop.permute.xlu1 %499  ;;  %vm9667_vm3 = vcmask 720960   ;;  %v671_v2 = vrot.slane %v669_v7, 3  ;;  %v684_v4 = vld [vmem:[#allocation2 + $0x10] sm:$0x1] }
 0x15d   :  { %489 = vst [vmem:[#allocation3 + $0x3] sm:$0x3] %v488_v6  ;;  %v501_v62 = vrot.slane %v500_v8, 7  ;;  %vm524_vm8 = vmand %vm9667_vm3, %vm365_vm4  ;;  %v1205_v6 = vld [vmem:[#allocation2 + $0x8] sm:$0x44]  ;;  %v686_v12 = vrot.slane %v684_v4, 3 }
 0x15f   :  { %v6636_v10 = vld [vmem:[#allocation1 + $0x2] ss:$4 sm:$0xff]  ;;  %v503_v13 = vsel %vm9665_vm15, %v501_v62, %v500_v8  ;;  %v674_v62 = vsel %vm373_vm6, %v669_v7, %v671_v2  ;;  %vm6718_vm15 = vmand %vm405_vm14, %vm995_vm0 }
 0x160   :  { %923 = vst [vmem:[#allocation1] sm:$0xff] %v921_v11  ;;  %vm6737_vm14 = vmand %vm425_vm5, %vm995_vm0  ;;  %v4609_v2 = vld [vmem:[%s9651_s3 + $0x170] sm:$0xf] }
 0x164   :  { %v510_v15 = vld [vmem:[#allocation3 + $0x4] sm:$0x3]  ;;  %v521_v20 = vpop.permute.xlu1 %520 }
 0x165   :  { %v511_v16 = vsel %vm509_vm7, %v503_v13, %v510_v15  ;;  %v1220_v13 = vld [vmem:[#allocation2 + $0x8] sm:$0x88]  ;;  %vm6712_vm7 = vmand %vm9668_vm13, %vm390_vm9  ;;  %vm9713_vm13 = vcmask 662528  }
 0x166   :  { %512 = vst [vmem:[#allocation3 + $0x4] sm:$0x3] %v511_v16 }
 0x167   :  { %v6641_v17 = vld [vmem:[#allocation1 + $0x2] ss:$4 sm:$0xff] }
 0x168   :  { %940 = vst [vmem:[#allocation1] sm:$0xff] %v938_v18  ;;  %v1256_v18 = vld [vmem:[#allocation2 + $0x10] sm:$0x11] }
 0x16d   :  { %v525_v21 = vld [vmem:[#allocation3 + $0x5] sm:$0x1] }
 0x16e   :  { %v526_v22 = vsel %vm524_vm8, %v521_v20, %v525_v21  ;;  %v1239_v20 = vld [vmem:[#allocation2 + $0x8] sm:$0x88]  ;;  %vm6705_vm8 = vmand %vm9666_vm11, %vm365_vm4  ;;  %vm541_vm11 = vcmask 728064  }
 0x16f   :  { %v6645_v23 = vld [vmem:[#allocation1 + $0x3] ss:$4 sm:$0xff]  ;;  %527 = vst [vmem:[#allocation3 + $0x5] sm:$0x1] %v526_v22  ;;  %vm548_vm3 = vmor %vm6712_vm7, %vm6705_vm8  ;;  %vm561_vm8 = vcmask 999760  }
 0x170   :  { %960 = vst [vmem:[#allocation1] sm:$0xff] %v958_v25  ;;  %v733_v25 = vshrl.u32 %v6576_v19, 16  ;;  %vm562_vm5 = vmand %vm561_vm8, %vm365_vm4 }
 0x177   :  { %v6647_v27 = vld [vmem:[#allocation1 + $0x3] ss:$4 sm:$0xff] }
 0x178   :  { %1016 = vst [vmem:[#allocation1] sm:$0xff] %v1014_v26  ;;  %v1258_v26 = vrot.slane %v1256_v18, 3 }
 0x17f   :  { %v1018_v30 = vld [vmem:[#allocation1 + $0x1] ss:$4 sm:$0xff] }
 0x180   :  { %v1019_v31 = vshll.u32 %v1018_v30, 16  ;;  %1032 = vst [vmem:[#allocation1] sm:$0xff] %v1030_v28  ;;  %v1261_v28 = vsel %vm373_vm6, %v1256_v18, %v1258_v26  ;;  %v1292_v30 = vld [vmem:[#allocation2 + $0x10] sm:$0x22]  ;;  %v889_v26 = vshrl.u32 %v6631_v63, 16 }
 0x181   :  { %v1412_v63 = vld [vmem:[#allocation2 + $0x18] sm:$0x11] }
 0x182   :  { %1021 = vrot.lane.b32.xlu0 %v1019_v31, %s6232_s2  ;;  %s6258_s2 = smov 11  }
 0x187   :  { %v1034_v33 = vld [vmem:[#allocation1 + $0x1] ss:$4 sm:$0xff] }
 0x188   :  { %1050 = vst [vmem:[#allocation1] sm:$0xff] %v1048_v32  ;;  %v1273_v32 = vld [vmem:[#allocation2 + $0x10] sm:$0x11] }
 0x18a   :  { %1036 = vrot.lane.b32.xlu0 %v1034_v33, %s6234_s15  ;;  %v1275_v33 = vrot.slane %v1273_v32, 3  ;;  %s6260_s15 = smov 45  }
 0x18f   :  { %v1052_v37 = vld [vmem:[#allocation1 + $0x2] ss:$4 sm:$0xff] }
 0x190   :  { %v1053_v38 = vshll.u32 %v1052_v37, 16  ;;  %1068 = vst [vmem:[#allocation1] sm:$0xff] %v1066_v35  ;;  %v1278_v37 = vsel %vm373_vm6, %v1273_v32, %v1275_v33 }
 0x192   :  { %1055 = vrot.lane.b32.xlu2 %v1053_v38, %s6233_s14  ;;  %v770_v38 = vshrl.u32 %v6584_v29, 16  ;;  %s6259_s14 = smov 92  }
 0x197   :  { %v1070_v42 = vld [vmem:[#allocation1 + $0x2] ss:$4 sm:$0xff] }
 0x198   :  { %1072 = vrot.lane.b32.xlu0 %v1070_v42, %s6235_s16  ;;  %1083 = vst [vmem:[#allocation1] sm:$0xff] %v1081_v41  ;;  %v807_v41 = vshrl.u32 %v6619_v47, 16  ;;  %v840_v42 = vld [vmem:[#allocation2 + $0x18] sm:$0x1]  ;;  %s6261_s16 = smov 126  }
 0x199   :  { %v5864_v47 = vld [vmem:[%s9651_s3 + $0x154] sm:$0xf0] }
 0x19a   :  { %538 = vrot.lane.b32.xlu2 %v534_v43, %s6240_s21  ;;  %v1344_v43 = vld [vmem:[#allocation2 + $0x10] sm:$0x44] }
 0x19f   :  { %v1085_v45 = vld [vmem:[#allocation1 + $0x3] ss:$4 sm:$0xff] }
 0x1a0   :  { %v1086_v46 = vshll.u32 %v1085_v45, 16  ;;  %1102 = vst [vmem:[#allocation1] sm:$0xff] %v1100_v44  ;;  %v825_v45 = vld [vmem:[#allocation2 + $0x18] sm:$0x1] }
 0x1a1   :  { %v827_v48 = vrot.slane %v825_v45, 3 }
 0x1a2   :  { %1088 = vrot.lane.b32.xlu0 %v1086_v46, %s6236_s17  ;;  %558 = vrot.lane.b32.xlu2 %v6551_v53, %s6241_s22  ;;  %v1136_v53 = vrot.slane %v1134_v54, 3  ;;  %v842_v46 = vrot.slane %v840_v42, 3 }
 0x1a4   :  { %v1139_v3 = vsel %vm373_vm6, %v1134_v54, %v1136_v53  ;;  %v845_v55 = vsel %vm373_vm6, %v840_v42, %v842_v46  ;;  %v1359_v53 = vld [vmem:[#allocation2 + $0x10] sm:$0x88] }
 0x1a7   :  { %v1104_v50 = vld [vmem:[#allocation1 + $0x3] ss:$4 sm:$0xff] }
 0x1a8   :  { %1106 = vrot.lane.b32.xlu1 %v1104_v50, %s6237_s18  ;;  %1155 = vst [vmem:[#allocation1] sm:$0xff] %v1153_v49 }
 0x1aa   :  { %575 = vrot.lane.b32.xlu0 %v571_v52, %s6242_s23  ;;  %595 = vrot.lane.b32.xlu2 %v6561_v5, %s6243_s0 }
 0x1af   :  { %v1157_v59 = vld [vmem:[#allocation1 + $0x1] ss:$4 sm:$0xff] }
 0x1b0   :  { %1125 = vrot.lane.b32.xlu1 %v1123_v57, %s6238_s19  ;;  %1171 = vst [vmem:[#allocation1] sm:$0xff] %v1169_v58  ;;  %v1158_v5 = vshll.u32 %v1157_v59, 16  ;;  %v1027_v57 = vld [vmem:[#allocation3 + $0x1] sm:$0x1] }
 0x1b2   :  { %1141 = vrot.lane.b32.xlu0 %v1139_v3, %s6239_s20  ;;  %618 = vrot.lane.b32.xlu2 %v614_v60, %s6244_s24  ;;  %v549_v60 = vld [vmem:[#allocation3 + $0x5] sm:$0x3]  ;;  %v830_v3 = vsel %vm373_vm6, %v825_v45, %v827_v48  ;;  %v926_v45 = vshrl.u32 %v6641_v17, 16 }
 0x1b7   :  { %v1173_v0 = vld [vmem:[#allocation1 + $0x1] ss:$4 sm:$0xff] }
 0x1b8   :  { %1160 = vrot.lane.b32.xlu1 %v1158_v5, %s6240_s21  ;;  %1189 = vst [vmem:[#allocation1] sm:$0xff] %v1187_v61 }
 0x1ba   :  { %632 = vrot.lane.b32.xlu0 %v6565_v9, %s6245_s25  ;;  %655 = vrot.lane.b32.xlu2 %v651_v1, %s6246_s26  ;;  %v689_v9 = vsel %vm373_vm6, %v684_v4, %v686_v12  ;;  %v846_v1 = vshrl.u32 %v845_v55, 16 }
 0x1bb   :  { %v690_v16 = vshrl.u32 %v689_v9, 16 }
 0x1bf   :  { %v1191_v8 = vld [vmem:[#allocation1 + $0x2] ss:$4 sm:$0xff] }
 0x1c0   :  { %1175 = vrot.lane.b32.xlu1 %v1173_v0, %s6241_s22  ;;  %v1192_v11 = vshll.u32 %v1191_v8, 16  ;;  %1207 = vst [vmem:[#allocation1] sm:$0xff] %v1205_v6  ;;  %v1395_v8 = vld [vmem:[#allocation2 + $0x18] sm:$0x11] }
 0x1c2   :  { %1194 = vrot.lane.b32.xlu0 %v1192_v11, %s6242_s23  ;;  %676 = vrot.lane.b32.xlu2 %v674_v62, %s6247_s27  ;;  %v1378_v11 = vld [vmem:[#allocation2 + $0x10] sm:$0x88] }
 0x1c7   :  { %v1209_v15 = vld [vmem:[#allocation1 + $0x2] ss:$4 sm:$0xff] }
 0x1c8   :  { %1211 = vrot.lane.b32.xlu1 %v1209_v15, %s6243_s0  ;;  %1222 = vst [vmem:[#allocation1] sm:$0xff] %v1220_v13 }
 0x1ca   :  { %694 = vrot.lane.b32.xlu0 %v690_v16, %s6248_s28  ;;  %714 = vrot.lane.b32.xlu2 %v6573_v14, %s6249_s29  ;;  %v1262_v14 = vshll.u32 %v1261_v28, 16  ;;  %v1431_v28 = vld [vmem:[#allocation2 + $0x18] sm:$0x22] }
 0x1cf   :  { %v1224_v21 = vld [vmem:[#allocation1 + $0x3] ss:$4 sm:$0xff] }
 0x1d0   :  { %v1225_v22 = vshll.u32 %v1224_v21, 16  ;;  %1241 = vst [vmem:[#allocation1] sm:$0xff] %v1239_v20  ;;  %v1397_v20 = vrot.slane %v1395_v8, 3 }
 0x1d2   :  { %1227 = vrot.lane.b32.xlu1 %v1225_v22, %s6244_s24  ;;  %737 = vrot.lane.b32.xlu2 %v733_v25, %s6250_s30  ;;  %v1400_v25 = vsel %vm373_vm6, %v1395_v8, %v1397_v20  ;;  %v4537_v20 = vld [vmem:[%s9651_s3 + $0xe0] sm:$0xf] }
 0x1d7   :  { %v1243_v31 = vld [vmem:[#allocation1 + $0x3] ss:$4 sm:$0xff] }
 0x1d8   :  { %1245 = vrot.lane.b32.xlu0 %v1243_v31, %s6245_s25  ;;  %1294 = vst [vmem:[#allocation1] sm:$0xff] %v1292_v30  ;;  %v1401_v31 = vshll.u32 %v1400_v25, 16  ;;  %v4601_v25 = vld [vmem:[%s9651_s3 + $0x160] sm:$0xf] }
 0x1da   :  { %1264 = vrot.lane.b32.xlu1 %v1262_v14, %s6246_s26 }
 0x1df   :  { %v1296_v19 = vld [vmem:[#allocation1 + $0x1] ss:$4 sm:$0xff] }
 0x1e0   :  { %751 = vrot.lane.b32.xlu0 %v6580_v24, %s6251_s8  ;;  %v1297_v35 = vshll.u32 %v1296_v19, 16  ;;  %1312 = vst [vmem:[#allocation1] sm:$0xff] %v1310_v34  ;;  %v1414_v19 = vrot.slane %v1412_v63, 3 }
 0x1e2   :  { %1280 = vrot.lane.b32.xlu1 %v1278_v37, %s6247_s27  ;;  %1299 = vrot.lane.b32.xlu2 %v1297_v35, %s6248_s28  ;;  %v1449_v37 = vld [vmem:[#allocation2 + $0x18] sm:$0x22]  ;;  %s6263_s28 = smov [#allocation4]  }
 0x1e7   :  { %v1314_v40 = vld [vmem:[#allocation1 + $0x1] ss:$4 sm:$0xff] }
 0x1e8   :  { %774 = vrot.lane.b32.xlu0 %v770_v38, %s6252_s9  ;;  %1327 = vst [vmem:[#allocation1] sm:$0xff] %v1325_v39 }
 0x1ea   :  { %788 = vrot.lane.b32.xlu1 %v6590_v36, %s6253_s10  ;;  %1316 = vrot.lane.b32.xlu2 %v1314_v40, %s6249_s29  ;;  %v1417_v40 = vsel %vm373_vm6, %v1412_v63, %v1414_v19  ;;  %vm9670_vm6 = vcmask 1041368   ;;  %v4665_v63 = vld [vmem:[%s9651_s3 + $0x1e0] sm:$0xf]  ;;  %s4252_s29 = sshll.u32 %s6263_s28, 4  ;;  %s4253_s29 = int_to_ptr.vmem [resolvable:$true] %s4252_s29 }
 0x1ec   :  { %v6699_v24 = vpop.permute.xlu2 %1055 }
 0x1ef   :  { %v1329_v29 = vld [vmem:[#allocation1 + $0x2] ss:$4 sm:$0xff] }
 0x1f0   :  { %811 = vrot.lane.b32.xlu0 %v807_v41, %s6254_s11  ;;  %v1330_v44 = vshll.u32 %v1329_v29, 16  ;;  %1346 = vst [vmem:[#allocation1] sm:$0xff] %v1344_v43 }
 0x1f2   :  { %1332 = vrot.lane.b32.xlu1 %v1330_v44, %s6250_s30  ;;  %v1464_v44 = vld [vmem:[#allocation2 + $0x18] sm:$0x44] }
 0x1f4   :  { %v1022_v50 = vpop.permute.xlu0 %1021  ;;  %v539_v51 = vpop.permute.xlu2 %538 }
 0x1f5   :  { %v1023_v52 = vrot.slane %v1022_v50, 1  ;;  %v540_v54 = vrot.slane %v539_v51, 7 }
 0x1f7   :  { %v1024_v58 = vsel %vm9713_vm13, %v1022_v50, %v1023_v52  ;;  %v542_v59 = vsel %vm541_vm11, %v540_v54, %v539_v51  ;;  %v1348_v5 = vld [vmem:[#allocation1 + $0x2] ss:$4 sm:$0xff]  ;;  %vm1039_vm13 = vcmask 277504   ;;  %v963_v52 = vshrl.u32 %v6647_v27, 16 }
 0x1f8   :  { %v1028_v61 = vsel %vm6718_vm15, %v1024_v58, %v1027_v57  ;;  %v550_v0 = vsel %vm548_vm3, %v542_v59, %v549_v60  ;;  %832 = vrot.lane.b32.xlu0 %v830_v3, %s6255_s12  ;;  %1350 = vrot.lane.b32.xlu2 %v1348_v5, %s6251_s8  ;;  %1361 = vst [vmem:[#allocation1] sm:$0xff] %v1359_v53  ;;  %vm9716_vm15 = vcmask 549889   ;;  %v1483_v53 = vld [vmem:[#allocation2 + $0x18] sm:$0x44]  ;;  %v4481_v59 = vld [vmem:[%s9651_s3 + $0x70] sm:$0xf] }
 0x1f9   :  { %1029 = vst [vmem:[#allocation3 + $0x1] sm:$0x1] %v1028_v61  ;;  %vm6743_vm3 = vmand %vm9716_vm15, %vm1008_vm12  ;;  %vm9721_vm15 = vcmask 164865   ;;  %v5836_v60 = vld [vmem:[%s9651_s3 + $0x74] sm:$0xf0] }
 0x1fa   :  { %551 = vst [vmem:[#allocation3 + $0x5] sm:$0x3] %v550_v0  ;;  %850 = vrot.lane.b32.xlu1 %v846_v1, %s6256_s13  ;;  %vm1044_vm7 = vmor %vm6743_vm3, %vm6737_vm14  ;;  %v4545_v3 = vld [vmem:[%s9651_s3 + $0xf0] sm:$0xf]  ;;  %v5852_v5 = vld [vmem:[%s9651_s3 + $0xf4] sm:$0xf0]  ;;  %v4482_v1 = vor.u32 %v5836_v60, %v4481_v59 }
 0x1fb   :  { %vm6758_vm14 = vmand %vm445_vm1, %vm995_vm0  ;;  %vm9722_vm1 = vcmask 941056   ;;  %v4546_v7 = vor.u32 %v5852_v5, %v4545_v3  ;;  %v4585_v60 = vld [vmem:[%s9651_s3 + $0x140] sm:$0xf]  ;;  %v4849_v5 = vld [vmem:[%s9651_s3 + $0x350] sm:$0xf] }
 0x1fc   :  { %v1037_v4 = vpop.permute.xlu0 %1036  ;;  %v559_v16 = vpop.permute.xlu2 %558  ;;  %vm1061_vm3 = vmand %vm9721_vm15, %vm1008_vm12  ;;  %vm9725_vm15 = vcmask 1041200   ;;  %3537 = vmatpush.bf16.msrb.mxu0 %v4482_v1  ;;  %v5822_v1 = vld [vmem:[%s9651_s3 + $0x4] sm:$0xf0] }
 0x1fd   :  { %v1038_v6 = vrot.slane %v1037_v4, 7  ;;  %3550 = vmatpush.bf16.msrb.mxu1 %v4546_v7 }
 0x1ff   :  { %v1040_v62 = vsel %vm1039_vm13, %v1038_v6, %v1037_v4  ;;  %v1363_v12 = vld [vmem:[#allocation1 + $0x3] ss:$4 sm:$0xff]  ;;  %vm1062_vm13 = vmor %vm1061_vm3, %vm6758_vm14  ;;  %vm9724_vm14 = vcmask 556032  }
 0x200   :  { %v1045_v9 = vld [vmem:[#allocation3 + $0x1] sm:$0x3]  ;;  %870 = vrot.lane.b32.xlu0 %v6623_v56, %s6257_s1  ;;  %v1364_v13 = vshll.u32 %v1363_v12, 16  ;;  %1380 = vst [vmem:[#allocation1] sm:$0xff] %v1378_v11  ;;  %v1057_v56 = vrot.slane %v6699_v24, 1  ;;  %vm6784_vm3 = vmand %vm9725_vm15, %vm995_vm0 }
 0x201   :  { %v1046_v15 = vsel %vm1044_vm7, %v1040_v62, %v1045_v9  ;;  %v563_v18 = vld [vmem:[#allocation3 + $0x6] sm:$0x1]  ;;  %vm9723_vm7 = vcmask 827560   ;;  %vm6802_vm15 = vmand %vm9670_vm6, %vm365_vm4  ;;  %vm601_vm6 = vcmask 1040992   ;;  %v5868_v4 = vld [vmem:[%s9651_s3 + $0x174] sm:$0xf0] }
 0x202   :  { %1047 = vst [vmem:[#allocation3 + $0x1] sm:$0x3] %v1046_v15  ;;  %v564_v21 = vsel %vm562_vm5, %v559_v16, %v563_v18  ;;  %1366 = vrot.lane.b32.xlu2 %v1364_v13, %s6252_s9  ;;  %v1058_v14 = vsel %vm9722_vm1, %v6699_v24, %v1057_v56  ;;  %vm1077_vm5 = vmand %vm9723_vm7, %vm995_vm0  ;;  %vm9669_vm7 = vcmask 615425   ;;  %v4610_v11 = vor.u32 %v5868_v4, %v4609_v2  ;;  %v4673_v62 = vld [vmem:[%s9651_s3 + $0x1f0] sm:$0xf]  ;;  %s4254_s9 = sshll.u32 %s9655_s7, 4  ;;  %s4255_s9 = int_to_ptr.hbm [resolvable:$true] %s4254_s9 }
 0x203   :  { %565 = vst [vmem:[#allocation3 + $0x6] sm:$0x1] %v564_v21  ;;  %v5884_v12 = vld [vmem:[%s9651_s3 + $0x1f4] sm:$0xf0]  ;;  %v4473_v15 = vld [vmem:[%s9651_s3 + $0x60] sm:$0xf] }
 0x204   :  { %v596_v9 = vpop.permute.xlu2 %595  ;;  %v4674_v13 = vor.u32 %v5884_v12, %v4673_v62  ;;  %v5834_v18 = vld [vmem:[%s9651_s3 + $0x64] sm:$0xf0]  ;;  %3563 = vmatpush.bf16.msrb.mxu2 %v4610_v11  ;;  %v4449_v12 = vld [vmem:[%s9651_s3 + $0x30] sm:$0xf] }
 0x205   :  { %v4474_v22 = vor.u32 %v5834_v18, %v4473_v15  ;;  %v5850_v56 = vld [vmem:[%s9651_s3 + $0xe4] sm:$0xf0]  ;;  %v5828_v15 = vld [vmem:[%s9651_s3 + $0x34] sm:$0xf0]  ;;  %v4513_v16 = vld [vmem:[%s9651_s3 + $0xb0] sm:$0xf] }
 0x206   :  { %3576 = vmatpush.bf16.msrb.mxu3 %v4674_v13  ;;  %v5878_v4 = vld [vmem:[%s9651_s3 + $0x1c4] sm:$0xf0]  ;;  %v4450_v21 = vor.u32 %v5828_v15, %v4449_v12 }
 0x207   :  { %v1382_v30 = vld [vmem:[#allocation1 + $0x3] ss:$4 sm:$0xff]  ;;  %3538 = vmatpush.bf16.msrb.mxu0 %v4474_v22 }
 0x208   :  { %1384 = vrot.lane.b32.xlu1 %v1382_v30, %s6253_s10  ;;  %1433 = vst [vmem:[#allocation1] sm:$0xff] %v1431_v28  ;;  %893 = vrot.lane.b32.xlu0 %v889_v26, %s6258_s2  ;;  %v597_v26 = vrot.slane %v596_v9, 7  ;;  %v5844_v22 = vld [vmem:[%s9651_s3 + $0xb4] sm:$0xf0]  ;;  %v5854_v15 = vld [vmem:[%s9651_s3 + $0x104] sm:$0xf0] }
 0x209   :  { %v1063_v32 = vld [vmem:[#allocation3 + $0x2] sm:$0x3] }
 0x20a   :  { %v1064_v33 = vsel %vm1062_vm13, %v1058_v14, %v1063_v32  ;;  %1403 = vrot.lane.b32.xlu2 %v1401_v31, %s6254_s11  ;;  %v1073_v34 = vpop.permute.xlu0 %1072  ;;  %vm9728_vm13 = vcmask 443393   ;;  %v586_v58 = vld [vmem:[#allocation3 + $0x6] sm:$0x3]  ;;  %s6262_s11 = smov 79   ;;  %v4538_v31 = vor.u32 %v5850_v56, %v4537_v20  ;;  %v5866_v14 = vld [vmem:[%s9651_s3 + $0x164] sm:$0xf0] }
 0x20b   :  { %1065 = vst [vmem:[#allocation3 + $0x2] sm:$0x3] %v1064_v33  ;;  %v1074_v35 = vrot.slane %v1073_v34, 1  ;;  %vm6790_vm1 = vmand %vm9728_vm13, %vm1008_vm12  ;;  %v4602_v19 = vor.u32 %v5866_v14, %v4601_v25  ;;  %v4577_v56 = vld [vmem:[%s9651_s3 + $0x130] sm:$0xf] }
 0x20c   :  { %vm6817_vm13 = vmand %vm505_vm10, %vm995_vm0  ;;  %3551 = vmatpush.bf16.msrb.mxu1 %v4538_v31  ;;  %v5860_v25 = vld [vmem:[%s9651_s3 + $0x134] sm:$0xf0] }
 0x20d   :  { %v1075_v24 = vsel %vm9724_vm14, %v1073_v34, %v1074_v35  ;;  %vm1096_vm14 = vmor %vm6790_vm1, %vm6784_vm3  ;;  %v5882_v34 = vld [vmem:[%s9651_s3 + $0x1e4] sm:$0xf0]  ;;  %3564 = vmatpush.bf16.msrb.mxu2 %v4602_v19  ;;  %v5876_v14 = vld [vmem:[%s9651_s3 + $0x1b4] sm:$0xf0] }
 0x20e   :  { %vm6811_vm3 = vmand %vm9669_vm7, %vm390_vm9  ;;  %vm9673_vm7 = vcmask 1006592   ;;  %v4666_v35 = vor.u32 %v5882_v34, %v4665_v63  ;;  %v5826_v19 = vld [vmem:[%s9651_s3 + $0x24] sm:$0xf0] }
 0x20f   :  { %v1435_v38 = vld [vmem:[#allocation1 + $0x1] ss:$4 sm:$0xff]  ;;  %vm6824_vm1 = vmand %vm507_vm2, %vm1008_vm12 }
 0x210   :  { %907 = vrot.lane.b32.xlu1 %v6636_v10, %s6259_s14  ;;  %v1436_v39 = vshll.u32 %v1435_v38, 16  ;;  %1451 = vst [vmem:[#allocation1] sm:$0xff] %v1449_v37  ;;  %vm585_vm10 = vmor %vm6811_vm3, %vm6802_vm15  ;;  %vm9743_vm3 = vcmask 834560   ;;  %v4465_v37 = vld [vmem:[%s9651_s3 + $0x50] sm:$0xf]  ;;  %3577 = vmatpush.bf16.msrb.mxu3 %v4666_v35 }
 0x211   :  { %vm1113_vm2 = vmor %vm6824_vm1, %vm6817_vm13  ;;  %v5832_v38 = vld [vmem:[%s9651_s3 + $0x54] sm:$0xf0]  ;;  %vm9744_vm13 = vcmask 720960   ;;  %v4505_v35 = vld [vmem:[%s9651_s3 + $0xa0] sm:$0xf] }
 0x212   :  { %v1078_v41 = vld [vmem:[#allocation3 + $0x3] sm:$0x1]  ;;  %1438 = vrot.lane.b32.xlu0 %v1436_v39, %s6256_s13  ;;  %1419 = vrot.lane.b32.xlu2 %v1417_v40, %s6255_s12  ;;  %v1498_v39 = vld [vmem:[#allocation2 + $0x18] sm:$0x88]  ;;  %vm6943_vm1 = vmand %vm9744_vm13, %vm995_vm0  ;;  %vm9675_vm13 = vcmask 1041264  }
 0x213   :  { %v1079_v42 = vsel %vm1077_vm5, %v1075_v24, %v1078_v41  ;;  %vm1091_vm5 = vcmask 171008   ;;  %v4466_v24 = vor.u32 %v5832_v38, %v4465_v37  ;;  %v4529_v41 = vld [vmem:[%s9651_s3 + $0xd0] sm:$0xf] }
 0x214   :  { %1080 = vst [vmem:[#allocation3 + $0x3] sm:$0x1] %v1079_v42  ;;  %v1089_v10 = vpop.permute.xlu0 %1088 }
 0x215   :  { %v1090_v36 = vrot.slane %v1089_v10, 7  ;;  %3539 = vmatpush.bf16.msrb.mxu0 %v4466_v24  ;;  %v4569_v24 = vld [vmem:[%s9651_s3 + $0x120] sm:$0xf] }
 0x217   :  { %v1453_v46 = vld [vmem:[#allocation1 + $0x1] ss:$4 sm:$0xff]  ;;  %v1092_v49 = vsel %vm1091_vm5, %v1090_v36, %v1089_v10  ;;  %vm9674_vm5 = vcmask 230401  }
 0x218   :  { %930 = vrot.lane.b32.xlu1 %v926_v45, %s6260_s15  ;;  %1466 = vst [vmem:[#allocation1] sm:$0xff] %v1464_v44  ;;  %vm6879_vm15 = vmand %vm9674_vm5, %vm390_vm9  ;;  %v5848_v44 = vld [vmem:[%s9651_s3 + $0xd4] sm:$0xf0] }
 0x219   :  { %v4530_v36 = vor.u32 %v5848_v44, %v4529_v41  ;;  %v4633_v44 = vld [vmem:[%s9651_s3 + $0x1a0] sm:$0xf] }
 0x21a   :  { %v1107_v17 = vpop.permute.xlu1 %1106  ;;  %1455 = vrot.lane.b32.xlu0 %v1453_v46, %s6257_s1  ;;  %944 = vrot.lane.b32.xlu2 %v6645_v23, %s6261_s16  ;;  %v4593_v46 = vld [vmem:[%s9651_s3 + $0x150] sm:$0xf] }
 0x21b   :  { %v1097_v50 = vld [vmem:[#allocation3 + $0x3] sm:$0x3]  ;;  %v1108_v57 = vrot.slane %v1107_v17, 1  ;;  %v4594_v48 = vor.u32 %v5864_v47, %v4593_v46  ;;  %3552 = vmatpush.bf16.msrb.mxu1 %v4530_v36  ;;  %v4433_v46 = vld [vmem:[%s9651_s3 + $0x10] sm:$0xf] }
 0x21c   :  { %v1098_v54 = vsel %vm1096_vm14, %v1092_v49, %v1097_v50  ;;  %v576_v55 = vpop.permute.xlu0 %575  ;;  %vm6867_vm14 = vmand %vm601_vm6, %vm365_vm4  ;;  %v5880_v49 = vld [vmem:[%s9651_s3 + $0x1d4] sm:$0xf0]  ;;  %v5874_v36 = vld [vmem:[%s9651_s3 + $0x1a4] sm:$0xf0] }
 0x21d   :  { %1099 = vst [vmem:[#allocation3 + $0x3] sm:$0x3] %v1098_v54  ;;  %v577_v27 = vrot.slane %v576_v55, 7  ;;  %v1109_v28 = vsel %vm9743_vm3, %v1107_v17, %v1108_v57  ;;  %vm605_vm3 = vmor %vm6879_vm15, %vm6867_vm14  ;;  %v4657_v17 = vld [vmem:[%s9651_s3 + $0x1d0] sm:$0xf]  ;;  %3565 = vmatpush.bf16.msrb.mxu2 %v4594_v48  ;;  %vm9747_vm14 = vcmask 449536   ;;  %v4634_v47 = vor.u32 %v5874_v36, %v4633_v44 }
 0x21e   :  { %v4658_v51 = vor.u32 %v5880_v49, %v4657_v17  ;;  %v5830_v54 = vld [vmem:[%s9651_s3 + $0x44] sm:$0xf0]  ;;  %v1517_v57 = vld [vmem:[#allocation2 + $0x18] sm:$0x88]  ;;  %vm9748_vm15 = vcmask 1041096  }
 0x21f   :  { %v579_v61 = vsel %vm9673_vm7, %v577_v27, %v576_v55  ;;  %v1468_v0 = vld [vmem:[#allocation1 + $0x2] ss:$4 sm:$0xff]  ;;  %vm7023_vm7 = vmand %vm9675_vm13, %vm365_vm4  ;;  %vm661_vm13 = vcmask 1040888  }
 0x220   :  { %v587_v6 = vsel %vm585_vm10, %v579_v61, %v586_v58  ;;  %v1469_v8 = vshll.u32 %v1468_v0, 16  ;;  %1485 = vst [vmem:[#allocation1] sm:$0xff] %v1483_v53  ;;  %vm9671_vm10 = vcmask 621568   ;;  %v4521_v55 = vld [vmem:[%s9651_s3 + $0xc0] sm:$0xf]  ;;  %3578 = vmatpush.bf16.msrb.mxu3 %v4658_v51 }
 0x221   :  { %588 = vst [vmem:[#allocation3 + $0x6] sm:$0x3] %v587_v6  ;;  %v599_v42 = vsel %vm9671_vm10, %v597_v26, %v596_v9  ;;  %v5846_v53 = vld [vmem:[%s9651_s3 + $0xc4] sm:$0xf0]  ;;  %v4649_v0 = vld [vmem:[%s9651_s3 + $0x1c0] sm:$0xf]  ;;  %v619_v9 = vpop.permute.xlu2 %618  ;;  %v4514_v26 = vor.u32 %v5844_v22, %v4513_v16 }
 0x222   :  { %1471 = vrot.lane.b32.xlu1 %v1469_v8, %s6258_s2  ;;  %967 = vrot.lane.b32.xlu2 %v963_v52, %s6262_s11  ;;  %v1126_v33 = vpop.permute.xlu1 %1125  ;;  %v4457_v52 = vld [vmem:[%s9651_s3 + $0x40] sm:$0xf]  ;;  %v4522_v59 = vor.u32 %v5846_v53, %v4521_v55  ;;  %v5862_v61 = vld [vmem:[%s9651_s3 + $0x144] sm:$0xf0]  ;;  %vm640_vm10 = vcmask 508929   ;;  %v4650_v62 = vor.u32 %v5878_v4, %v4649_v0 }
 0x223   :  { %v1127_v10 = vrot.slane %v1126_v33, 1  ;;  %v4458_v23 = vor.u32 %v5830_v54, %v4457_v52  ;;  %v4586_v2 = vor.u32 %v5862_v61, %v4585_v60  ;;  %vm7035_vm5 = vmand %vm640_vm10, %vm390_vm9  ;;  %v5824_v17 = vld [vmem:[%s9651_s3 + $0x14] sm:$0xf0]  ;;  %v4497_v48 = vld [vmem:[%s9651_s3 + $0x90] sm:$0xf] }
 0x224   :  { %v1114_v30 = vld [vmem:[#allocation3 + $0x4] sm:$0x3]  ;;  %v6918_v29 = vpop.permute.xlu0 %1141  ;;  %3553 = vmatpush.bf16.msrb.mxu1 %v4522_v59  ;;  %3579 = vmatpush.bf16.msrb.mxu3 %v4650_v62  ;;  %v5840_v49 = vld [vmem:[%s9651_s3 + $0x94] sm:$0xf0]  ;;  %v4434_v52 = vor.u32 %v5824_v17, %v4433_v46  ;;  %v4425_v0 = vld [vmem:[%s9651_s3] sm:$0xf] }
 0x225   :  { %v1115_v32 = vsel %vm1113_vm2, %v1109_v28, %v1114_v30  ;;  %vm9672_vm2 = vcmask 893160   ;;  %v1128_v27 = vsel %vm9747_vm14, %v1126_v33, %v1127_v10  ;;  %3540 = vmatpush.bf16.msrb.mxu0 %v4458_v23  ;;  %vm9753_vm14 = vcmask 336897   ;;  %3566 = vmatpush.bf16.msrb.mxu2 %v4586_v2  ;;  %v4641_v30 = vld [vmem:[%s9651_s3 + $0x1b0] sm:$0xf]  ;;  %v5856_v55 = vld [vmem:[%s9651_s3 + $0x114] sm:$0xf0] }
 0x226   :  { %1116 = vst [vmem:[#allocation3 + $0x4] sm:$0x3] %v1115_v32  ;;  %v1143_v8 = vrot.slane %v6918_v29, 7  ;;  %v4578_v28 = vor.u32 %v5860_v25, %v4577_v56  ;;  %v4441_v32 = vld [vmem:[%s9651_s3 + $0x20] sm:$0xf]  ;;  %v4642_v34 = vor.u32 %v5876_v14, %v4641_v30  ;;  %v4498_v54 = vor.u32 %v5840_v49, %v4497_v48 }
 0x227   :  { %v1487_v40 = vld [vmem:[#allocation1 + $0x2] ss:$4 sm:$0xff]  ;;  %v4426_v2 = vor.u32 %v5822_v1, %v4425_v0 }
 0x228   :  { %v606_v43 = vld [vmem:[#allocation3 + $0x7] sm:$0x3]  ;;  %1489 = vrot.lane.b32.xlu0 %v1487_v40, %s6259_s14  ;;  %1500 = vst [vmem:[#allocation1] sm:$0xff] %v1498_v39  ;;  %3554 = vmatpush.bf16.msrb.mxu1 %v4514_v26  ;;  %v4442_v39 = vor.u32 %v5826_v19, %v4441_v32  ;;  %v5842_v40 = vld [vmem:[%s9651_s3 + $0xa4] sm:$0xf0] }
 0x229   :  { %v607_v45 = vsel %vm605_vm3, %v599_v42, %v606_v43  ;;  %vm6967_vm3 = vmand %vm9748_vm15, %vm995_vm0  ;;  %3541 = vmatpush.bf16.msrb.mxu0 %v4450_v21  ;;  %3567 = vmatpush.bf16.msrb.mxu2 %v4578_v28  ;;  %v4506_v10 = vor.u32 %v5842_v40, %v4505_v35  ;;  %v4561_v23 = vld [vmem:[%s9651_s3 + $0x110] sm:$0xf]  ;;  %v5872_v59 = vld [vmem:[%s9651_s3 + $0x194] sm:$0xf0] }
 0x22a   :  { %608 = vst [vmem:[#allocation3 + $0x7] sm:$0x3] %v607_v45  ;;  %vm6988_vm15 = vmand %vm9753_vm14, %vm1008_vm12  ;;  %vm1144_vm14 = vcmask 64512   ;;  %v1161_v42 = vpop.permute.xlu1 %1160  ;;  %3580 = vmatpush.bf16.msrb.mxu3 %v4642_v34  ;;  %v4489_v4 = vld [vmem:[%s9651_s3 + $0x80] sm:$0xf] }
 0x22b   :  { %v1145_v37 = vsel %vm1144_vm14, %v1143_v8, %v6918_v29  ;;  %v5858_v29 = vld [vmem:[%s9651_s3 + $0x124] sm:$0xf0]  ;;  %vm642_vm14 = vmor %vm7035_vm5, %vm7023_vm7  ;;  %v1162_v53 = vrot.slane %v1161_v42, 1  ;;  %vm9677_vm5 = vcmask 515072   ;;  %v4617_v16 = vld [vmem:[%s9651_s3 + $0x180] sm:$0xf] }
 0x22c   :  { %v633_v18 = vpop.permute.xlu0 %632  ;;  %v4570_v45 = vor.u32 %v5858_v29, %v4569_v24  ;;  %3555 = vmatpush.bf16.msrb.mxu1 %v4506_v10  ;;  %vm7110_vm7 = vmand %vm661_vm13, %vm365_vm4  ;;  %v5838_v6 = vld [vmem:[%s9651_s3 + $0x84] sm:$0xf0]  ;;  %v4737_v22 = vld [vmem:[%s9651_s3 + $0x270] sm:$0xf] }
 0x22d   :  { %v1131_v58 = vld [vmem:[#allocation3 + $0x5] sm:$0x1]  ;;  %v634_v63 = vrot.slane %v633_v18, 7  ;;  %3542 = vmatpush.bf16.msrb.mxu0 %v4442_v39  ;;  %v4490_v12 = vor.u32 %v5838_v6, %v4489_v4  ;;  %v5870_v21 = vld [vmem:[%s9651_s3 + $0x184] sm:$0xf0] }
 0x22e   :  { %v1132_v3 = vsel %vm6943_vm1, %v1128_v27, %v1131_v58  ;;  %vm6979_vm1 = vmand %vm9672_vm2, %vm365_vm4  ;;  %vm9676_vm2 = vcmask 900096   ;;  %3568 = vmatpush.bf16.msrb.mxu2 %v4570_v45  ;;  %3581 = vmatpush.bf16.msrb.mxu3 %v4634_v47  ;;  %v4562_v27 = vor.u32 %v5856_v55, %v4561_v23  ;;  %v4625_v58 = vld [vmem:[%s9651_s3 + $0x190] sm:$0xf]  ;;  %v4618_v25 = vor.u32 %v5870_v21, %v4617_v16  ;;  %v5900_v26 = vld [vmem:[%s9651_s3 + $0x274] sm:$0xf0] }
 0x22f   :  { %1133 = vst [vmem:[#allocation3 + $0x5] sm:$0x1] %v1132_v3  ;;  %v1502_v7 = vld [vmem:[#allocation1 + $0x3] ss:$4 sm:$0xff]  ;;  %v636_v50 = vsel %vm9676_vm2, %v634_v63, %v633_v18  ;;  %v656_v3 = vpop.permute.xlu2 %655  ;;  %v4626_v61 = vor.u32 %v5872_v59, %v4625_v58  ;;  %v4738_v33 = vor.u32 %v5900_v26, %v4737_v22 }
 0x230   :  { %v1503_v11 = vshll.u32 %v1502_v7, 16  ;;  %1519 = vst [vmem:[#allocation1] sm:$0xff] %v1517_v57  ;;  %3556 = vmatpush.bf16.msrb.mxu1 %v4498_v54  ;;  %v657_v8 = vrot.slane %v656_v3, 7  ;;  %v4801_v28 = vld [vmem:[%s9651_s3 + $0x2f0] sm:$0xf] }
 0x231   :  { %v623_v13 = vld [vmem:[#allocation3 + $0x8] sm:$0x1]  ;;  %3543 = vmatpush.bf16.msrb.mxu0 %v4434_v52  ;;  %v5916_v63 = vld [vmem:[%s9651_s3 + $0x2f4] sm:$0xf0]  ;;  %v4793_v10 = vld [vmem:[%s9651_s3 + $0x2e0] sm:$0xf] }
 0x232   :  { %v624_v20 = vsel %vm6979_vm1, %v619_v9, %v623_v13  ;;  %1505 = vrot.lane.b32.xlu1 %v1503_v11, %s6260_s15  ;;  %vm1149_vm1 = vmor %vm6988_vm15, %vm6967_vm3  ;;  %vm663_vm3 = vcmask 123905   ;;  %3569 = vmatpush.bf16.msrb.mxu2 %v4562_v27  ;;  %v1163_v11 = vsel %vm541_vm11, %v1161_v42, %v1162_v53  ;;  %v4553_v9 = vld [vmem:[%s9651_s3 + $0x100] sm:$0xf]  ;;  %v1176_v18 = vpop.permute.xlu1 %1175  ;;  %v659_v30 = vsel %vm9677_vm5, %v657_v8, %v656_v3  ;;  %v4929_v40 = vld [vmem:[%s9651_s3 + $0x3f0] sm:$0xf] }
 0x233   :  { %625 = vst [vmem:[#allocation3 + $0x8] sm:$0x1] %v624_v20  ;;  %vm7104_vm15 = vmand %vm561_vm8, %vm995_vm0  ;;  %3582 = vmatpush.bf16.msrb.mxu3 %v4626_v61  ;;  %v4554_v20 = vor.u32 %v5854_v15, %v4553_v9  ;;  %v1177_v34 = vrot.slane %v1176_v18, 7  ;;  %v4802_v35 = vor.u32 %v5916_v63, %v4801_v28  ;;  %v5948_v24 = vld [vmem:[%s9651_s3 + $0x3f4] sm:$0xf0] }
 0x234   :  { %vm7122_vm8 = vmand %vm663_vm3, %vm390_vm9  ;;  %3557 = vmatpush.bf16.msrb.mxu1 %v4490_v12  ;;  %v7173_v14 = vpop.permute.xlu0 %1194  ;;  %v4930_v42 = vor.u32 %v5948_v24, %v4929_v40  ;;  %v5914_v46 = vld [vmem:[%s9651_s3 + $0x2e4] sm:$0xf0]  ;;  %v4857_v48 = vld [vmem:[%s9651_s3 + $0x360] sm:$0xf] }
 0x235   :  { %3544 = vmatpush.bf16.msrb.mxu0 %v4426_v2  ;;  %vm665_vm11 = vmor %vm7122_vm8, %vm7110_vm7  ;;  %vm679_vm8 = vcmask 786560   ;;  %v4794_v17 = vor.u32 %v5914_v46, %v4793_v10  ;;  %v5930_v49 = vld [vmem:[%s9651_s3 + $0x364] sm:$0xf0]  ;;  %v4721_v23 = vld [vmem:[%s9651_s3 + $0x250] sm:$0xf]  ;;  %v1196_v61 = vrot.slane %v7173_v14, 1 }
 0x236   :  { %v1150_v38 = vld [vmem:[#allocation3 + $0x5] sm:$0x3]  ;;  %3570 = vmatpush.bf16.msrb.mxu2 %v4554_v20  ;;  %v4858_v52 = vor.u32 %v5930_v49, %v4857_v48  ;;  %v5946_v54 = vld [vmem:[%s9651_s3 + $0x3e4] sm:$0xf0]  ;;  %v4785_v27 = vld [vmem:[%s9651_s3 + $0x2d0] sm:$0xf] }
 0x237   :  { %v1151_v41 = vsel %vm1149_vm1, %v1145_v37, %v1150_v38  ;;  %v1521_v43 = vld [vmem:[#allocation1 + $0x3] ss:$4 sm:$0xff]  ;;  %vm9766_vm1 = vcmask 1041368   ;;  %3583 = vmatpush.bf16.msrb.mxu3 %v4618_v25  ;;  %v677_v58 = vpop.permute.xlu2 %676 }
 0x238   :  { %1152 = vst [vmem:[#allocation3 + $0x5] sm:$0x3] %v1151_v41  ;;  %1523 = vrot.lane.b32.xlu2 %v1521_v43, %s6261_s16  ;;  %v4865_v37 = vld [vmem:[%s9651_s3 + $0x370] sm:$0xf]  ;;  %v5932_v38 = vld [vmem:[%s9651_s3 + $0x374] sm:$0xf0]  ;;  %3602 = vmatpush.bf16.msra.mxu1 %v4802_v35 }
 0x239   :  { %3589 = vmatpush.bf16.msra.mxu0 %v4738_v33  ;;  %v4866_v39 = vor.u32 %v5932_v38, %v4865_v37  ;;  %v4729_v41 = vld [vmem:[%s9651_s3 + $0x260] sm:$0xf]  ;;  %v5898_v43 = vld [vmem:[%s9651_s3 + $0x264] sm:$0xf0]  ;;  %v5912_v3 = vld [vmem:[%s9651_s3 + $0x2d4] sm:$0xf0] }
 0x23a   :  { %v643_v51 = vld [vmem:[#allocation3 + $0x8] sm:$0x3]  ;;  %v4730_v36 = vor.u32 %v5898_v43, %v4729_v41  ;;  %v4786_v7 = vor.u32 %v5912_v3, %v4785_v27  ;;  %v5928_v2 = vld [vmem:[%s9651_s3 + $0x354] sm:$0xf0]  ;;  %v5894_v9 = vld [vmem:[%s9651_s3 + $0x244] sm:$0xf0]  ;;  %v7287_v15 = vpop.permute.xlu1 %1211 }
 0x23b   :  { %v644_v57 = vsel %vm642_vm14, %v636_v50, %v643_v51  ;;  %vm7156_vm14 = vmand %vm9766_vm1, %vm995_vm0  ;;  %vm1178_vm1 = vcmask 343040   ;;  %3615 = vmatpush.bf16.msra.mxu2 %v4866_v39  ;;  %3628 = vmatpush.bf16.msra.mxu3 %v4930_v42  ;;  %v4921_v50 = vld [vmem:[%s9651_s3 + $0x3e0] sm:$0xf]  ;;  %v4913_v4 = vld [vmem:[%s9651_s3 + $0x3d0] sm:$0xf]  ;;  %v4850_v6 = vor.u32 %v5928_v2, %v4849_v5 }
 0x23c   :  { %645 = vst [vmem:[#allocation3 + $0x8] sm:$0x3] %v644_v57  ;;  %v1179_v29 = vsel %vm1178_vm1, %v1177_v34, %v1176_v18  ;;  %3603 = vmatpush.bf16.msra.mxu1 %v4794_v17  ;;  %v4922_v53 = vor.u32 %v5946_v54, %v4921_v50  ;;  %v5896_v57 = vld [vmem:[%s9651_s3 + $0x254] sm:$0xf0]  ;;  %vm702_vm1 = vcmask 402433   ;;  %v695_v0 = vpop.permute.xlu0 %694  ;;  %v1213_v34 = vrot.slane %v7287_v15, 1 }
 0x23d   :  { %3590 = vmatpush.bf16.msra.mxu0 %v4730_v36  ;;  %v4722_v60 = vor.u32 %v5896_v57, %v4721_v23  ;;  %v5944_v8 = vld [vmem:[%s9651_s3 + $0x3d4] sm:$0xf0]  ;;  %vm7291_vm5 = vmand %vm702_vm1, %vm390_vm9  ;;  %v696_v18 = vrot.slane %v695_v0, 7  ;;  %v5910_v21 = vld [vmem:[%s9651_s3 + $0x2c4] sm:$0xf0] }
 0x23e   :  { %v4914_v12 = vor.u32 %v5944_v8, %v4913_v4  ;;  %v4841_v22 = vld [vmem:[%s9651_s3 + $0x340] sm:$0xf]  ;;  %v5926_v28 = vld [vmem:[%s9651_s3 + $0x344] sm:$0xf0]  ;;  %v4705_v33 = vld [vmem:[%s9651_s3 + $0x230] sm:$0xf] }
 0x23f   :  { %v1166_v62 = vld [vmem:[#allocation3 + $0x6] sm:$0x1]  ;;  %3616 = vmatpush.bf16.msra.mxu2 %v4858_v52  ;;  %3629 = vmatpush.bf16.msra.mxu3 %v4922_v53  ;;  %v5892_v63 = vld [vmem:[%s9651_s3 + $0x234] sm:$0xf0]  ;;  %v4769_v37 = vld [vmem:[%s9651_s3 + $0x2b0] sm:$0xf]  ;;  %v715_v46 = vpop.permute.xlu2 %714 }
 0x240   :  { %v1167_v13 = vsel %vm7104_vm15, %v1163_v11, %v1166_v62  ;;  %vm9769_vm15 = vcmask 615425   ;;  %v4713_v11 = vld [vmem:[%s9651_s3 + $0x240] sm:$0xf]  ;;  %3604 = vmatpush.bf16.msra.mxu1 %v4786_v7  ;;  %v4706_v35 = vor.u32 %v5892_v63, %v4705_v33  ;;  %v5908_v38 = vld [vmem:[%s9651_s3 + $0x2b4] sm:$0xf0]  ;;  %v716_v57 = vrot.slane %v715_v46, 7 }
 0x241   :  { %1168 = vst [vmem:[#allocation3 + $0x6] sm:$0x1] %v1167_v13  ;;  %vm7169_vm2 = vmand %vm9769_vm15, %vm1008_vm12  ;;  %vm9678_vm15 = vcmask 1041160   ;;  %3591 = vmatpush.bf16.msra.mxu0 %v4722_v60  ;;  %v4777_v13 = vld [vmem:[%s9651_s3 + $0x2c0] sm:$0xf]  ;;  %v4714_v20 = vor.u32 %v5894_v9, %v4713_v11  ;;  %v4770_v42 = vor.u32 %v5908_v38, %v4769_v37 }
 0x242   :  { %vm1183_vm7 = vmor %vm7169_vm2, %vm7156_vm14  ;;  %v4778_v26 = vor.u32 %v5910_v21, %v4777_v13  ;;  %v4833_v39 = vld [vmem:[%s9651_s3 + $0x330] sm:$0xf]  ;;  %v5924_v40 = vld [vmem:[%s9651_s3 + $0x334] sm:$0xf0] }
 0x243   :  { %v666_v32 = vld [vmem:[#allocation3 + $0x9] sm:$0x3]  ;;  %vm7210_vm2 = vmand %vm601_vm6, %vm995_vm0  ;;  %3617 = vmatpush.bf16.msra.mxu2 %v4850_v6  ;;  %3630 = vmatpush.bf16.msra.mxu3 %v4914_v12  ;;  %v4697_v45 = vld [vmem:[%s9651_s3 + $0x220] sm:$0xf] }
 0x244   :  { %v667_v19 = vsel %vm665_vm11, %v659_v30, %v666_v32  ;;  %vm7228_vm6 = vmand %vm679_vm8, %vm365_vm4  ;;  %vm9776_vm11 = vcmask 230401   ;;  %v4905_v30 = vld [vmem:[%s9651_s3 + $0x3c0] sm:$0xf]  ;;  %v4842_v32 = vor.u32 %v5926_v28, %v4841_v22  ;;  %3605 = vmatpush.bf16.msra.mxu1 %v4778_v26  ;;  %v4897_v43 = vld [vmem:[%s9651_s3 + $0x3b0] sm:$0xf] }
 0x245   :  { %668 = vst [vmem:[#allocation3 + $0x9] sm:$0x3] %v667_v19  ;;  %vm7240_vm14 = vmand %vm9776_vm11, %vm1008_vm12  ;;  %vm9679_vm11 = vcmask 793600   ;;  %3592 = vmatpush.bf16.msra.mxu0 %v4714_v20  ;;  %v5890_v36 = vld [vmem:[%s9651_s3 + $0x224] sm:$0xf0] }
 0x246   :  { %v698_v24 = vsel %vm9679_vm11, %v696_v18, %v695_v0  ;;  %v4761_v48 = vld [vmem:[%s9651_s3 + $0x2a0] sm:$0xf]  ;;  %v4698_v50 = vor.u32 %v5890_v36, %v4697_v45  ;;  %v5906_v51 = vld [vmem:[%s9651_s3 + $0x2a4] sm:$0xf0]  ;;  %v1228_v0 = vpop.permute.xlu1 %1227  ;;  %v5888_v7 = vld [vmem:[%s9651_s3 + $0x214] sm:$0xf0] }
 0x247   :  { %3618 = vmatpush.bf16.msra.mxu2 %v4842_v32  ;;  %v4825_v52 = vld [vmem:[%s9651_s3 + $0x320] sm:$0xf]  ;;  %v4762_v23 = vor.u32 %v5906_v51, %v4761_v48  ;;  %v5922_v55 = vld [vmem:[%s9651_s3 + $0x324] sm:$0xf0]  ;;  %v4753_v2 = vld [vmem:[%s9651_s3 + $0x290] sm:$0xf]  ;;  %v738_v45 = vpop.permute.xlu2 %737 }
 0x248   :  { %v1184_v44 = vld [vmem:[#allocation3 + $0x6] sm:$0x3]  ;;  %3606 = vmatpush.bf16.msra.mxu1 %v4770_v42  ;;  %v4889_v53 = vld [vmem:[%s9651_s3 + $0x3a0] sm:$0xf]  ;;  %v4826_v60 = vor.u32 %v5922_v55, %v4825_v52  ;;  %v5938_v5 = vld [vmem:[%s9651_s3 + $0x3a4] sm:$0xf0] }
 0x249   :  { %v1185_v47 = vsel %vm1183_vm7, %v1179_v29, %v1184_v44  ;;  %vm1201_vm7 = vmor %vm7240_vm14, %vm7210_vm2  ;;  %vm9681_vm14 = vcmask 1040784   ;;  %3593 = vmatpush.bf16.msra.mxu0 %v4706_v35  ;;  %v4834_v29 = vor.u32 %v5924_v40, %v4833_v39  ;;  %v5940_v44 = vld [vmem:[%s9651_s3 + $0x3b4] sm:$0xf0]  ;;  %v4817_v11 = vld [vmem:[%s9651_s3 + $0x310] sm:$0xf]  ;;  %v1229_v18 = vrot.slane %v1228_v0, 7 }
 0x24a   :  { %1186 = vst [vmem:[#allocation3 + $0x6] sm:$0x3] %v1185_v47  ;;  %v4898_v17 = vor.u32 %v5940_v44, %v4897_v43  ;;  %v5904_v8 = vld [vmem:[%s9651_s3 + $0x294] sm:$0xf0]  ;;  %v1246_v20 = vpop.permute.xlu0 %1245  ;;  %v4881_v22 = vld [vmem:[%s9651_s3 + $0x390] sm:$0xf] }
 0x24b   :  { %3619 = vmatpush.bf16.msra.mxu2 %v4834_v29  ;;  %v4754_v13 = vor.u32 %v5904_v8, %v4753_v2  ;;  %v4681_v26 = vld [vmem:[%s9651_s3 + $0x200] sm:$0xf]  ;;  %v5886_v28 = vld [vmem:[%s9651_s3 + $0x204] sm:$0xf0]  ;;  %v1247_v47 = vrot.slane %v1246_v20, 1 }
 0x24c   :  { %v681_v59 = vld [vmem:[#allocation3 + $0xa] sm:$0x1]  ;;  %3607 = vmatpush.bf16.msra.mxu1 %v4762_v23  ;;  %v5902_v32 = vld [vmem:[%s9651_s3 + $0x284] sm:$0xf0]  ;;  %v4809_v40 = vld [vmem:[%s9651_s3 + $0x300] sm:$0xf] }
 0x24d   :  { %v682_v1 = vsel %vm7228_vm6, %v677_v58, %v681_v59  ;;  %vm7277_vm6 = vmand %vm9678_vm15, %vm365_vm4  ;;  %vm9783_vm15 = vcmask 1006592   ;;  %3594 = vmatpush.bf16.msra.mxu0 %v4698_v50 }
 0x24e   :  { %683 = vst [vmem:[#allocation3 + $0xa] sm:$0x1] %v682_v1  ;;  %v1197_v56 = vsel %vm9783_vm15, %v7173_v14, %v1196_v61  ;;  %v5942_v14 = vld [vmem:[%s9651_s3 + $0x3c4] sm:$0xf0]  ;;  %vm704_vm2 = vmor %vm7291_vm5, %vm7277_vm6  ;;  %vm9680_vm15 = vcmask 17409   ;;  %v4890_v1 = vor.u32 %v5938_v5, %v4889_v53  ;;  %v1265_v36 = vpop.permute.xlu1 %1264 }
 0x24f   :  { %v4906_v19 = vor.u32 %v5942_v14, %v4905_v30  ;;  %vm7369_vm5 = vmand %vm9681_vm14, %vm365_vm4  ;;  %v4689_v61 = vld [vmem:[%s9651_s3 + $0x210] sm:$0xf]  ;;  %3620 = vmatpush.bf16.msra.mxu2 %v4826_v60  ;;  %v4682_v30 = vor.u32 %v5886_v28, %v4681_v26  ;;  %v1266_v55 = vrot.slane %v1265_v36, 1  ;;  %v5964_v28 = vld [vmem:[%s9651_s3 + $0x474] sm:$0xf0] }
 0x250   :  { %vm7381_vm6 = vmand %vm9680_vm15, %vm390_vm9  ;;  %v4690_v6 = vor.u32 %v5888_v7, %v4689_v61  ;;  %3608 = vmatpush.bf16.msra.mxu1 %v4754_v13 }
 0x251   :  { %v1202_v25 = vld [vmem:[#allocation3 + $0x7] sm:$0x3]  ;;  %3631 = vmatpush.bf16.msra.mxu3 %v4906_v19  ;;  %vm7426_vm14 = vmand %vm640_vm10, %vm1008_vm12 }
 0x252   :  { %v1203_v31 = vsel %vm1201_vm7, %v1197_v56, %v1202_v25  ;;  %vm9784_vm7 = vcmask 893160   ;;  %3595 = vmatpush.bf16.msra.mxu0 %v4690_v6  ;;  %v5936_v56 = vld [vmem:[%s9651_s3 + $0x394] sm:$0xf0]  ;;  %v752_v48 = vpop.permute.xlu0 %751 }
 0x253   :  { %1204 = vst [vmem:[#allocation3 + $0x7] sm:$0x3] %v1203_v31  ;;  %vm7360_vm11 = vmand %vm9784_vm7, %vm995_vm0  ;;  %vm9791_vm7 = vcmask 621568   ;;  %v4882_v25 = vor.u32 %v5936_v56, %v4881_v22  ;;  %v4745_v31 = vld [vmem:[%s9651_s3 + $0x280] sm:$0xf]  ;;  %v753_v51 = vrot.slane %v752_v48, 7 }
 0x254   :  { %v1214_v58 = vsel %vm9791_vm7, %v7287_v15, %v1213_v34  ;;  %vm724_vm7 = vmor %vm7381_vm6, %vm7369_vm5  ;;  %v5920_v15 = vld [vmem:[%s9651_s3 + $0x314] sm:$0xf0]  ;;  %vm9683_vm6 = vcmask 679960   ;;  %v4746_v34 = vor.u32 %v5902_v32, %v4745_v31 }
 0x255   :  { %v705_v41 = vld [vmem:[#allocation3 + $0xa] sm:$0x3]  ;;  %3632 = vmatpush.bf16.msra.mxu3 %v4898_v17  ;;  %v4818_v21 = vor.u32 %v5920_v15, %v4817_v11  ;;  %vm7462_vm5 = vmand %vm661_vm13, %vm995_vm0  ;;  %v1300_v15 = vpop.permute.xlu2 %1299  ;;  %v5980_v31 = vld [vmem:[%s9651_s3 + $0x4f4] sm:$0xf0] }
 0x256   :  { %v706_v10 = vsel %vm704_vm2, %v698_v24, %v705_v41  ;;  %vm9682_vm2 = vcmask 408576   ;;  %v5918_v24 = vld [vmem:[%s9651_s3 + $0x304] sm:$0xf0]  ;;  %v4873_v41 = vld [vmem:[%s9651_s3 + $0x380] sm:$0xf]  ;;  %vm7495_vm13 = vmand %vm9683_vm6, %vm365_vm4  ;;  %3596 = vmatpush.bf16.msra.mxu0 %v4682_v30  ;;  %3609 = vmatpush.bf16.msra.mxu1 %v4746_v34  ;;  %v1301_v56 = vrot.slane %v1300_v15, 1 }
 0x257   :  { %707 = vst [vmem:[#allocation3 + $0xa] sm:$0x3] %v706_v10  ;;  %v718_v62 = vsel %vm9682_vm2, %v716_v57, %v715_v46  ;;  %3621 = vmatpush.bf16.msra.mxu2 %v4818_v21  ;;  %v4810_v43 = vor.u32 %v5918_v24, %v4809_v40  ;;  %v5934_v10 = vld [vmem:[%s9651_s3 + $0x384] sm:$0xf0]  ;;  %vm9803_vm2 = vcmask 900096   ;;  %v1281_v57 = vpop.permute.xlu1 %1280 }
 0x258   :  { %v4874_v44 = vor.u32 %v5934_v10, %v4873_v41  ;;  %v1248_v49 = vsel %vm9803_vm2, %v1246_v20, %v1247_v47  ;;  %vm1269_vm2 = vmand %vm679_vm8, %vm995_vm0  ;;  %v1282_v4 = vrot.slane %v1281_v57, 7  ;;  %v5057_v30 = vld [vmem:[%s9651_s3 + $0x4f0] sm:$0xf]  ;;  %v5049_v10 = vld [vmem:[%s9651_s3 + $0x4e0] sm:$0xf] }
 0x259   :  { %3633 = vmatpush.bf16.msra.mxu3 %v4890_v1  ;;  %v5058_v14 = vor.u32 %v5980_v31, %v5057_v30  ;;  %v5121_v34 = vld [vmem:[%s9651_s3 + $0x570] sm:$0xf]  ;;  %v5994_v47 = vld [vmem:[%s9651_s3 + $0x564] sm:$0xf0] }
 0x25a   :  { %v1534_v27 = vld [vmem:[#allocation3] sm:$0xff]  ;;  %v1217_v59 = vld [vmem:[#allocation3 + $0x8] sm:$0x1]  ;;  %v775_v7 = vpop.permute.xlu0 %774 }
 0x25b   :  { %1868 = vst [vmem:[#allocation1] ss:$9 sm:$0xff] %v1534_v27  ;;  %v1218_v3 = vsel %vm7360_vm11, %v1214_v58, %v1217_v59  ;;  %vm9792_vm11 = vcmask 1041264   ;;  %3622 = vmatpush.bf16.msra.mxu2 %v4810_v43  ;;  %v5185_v41 = vld [vmem:[%s9651_s3 + $0x5f0] sm:$0xf] }
 0x25c   :  { %1219 = vst [vmem:[#allocation3 + $0x8] sm:$0x1] %v1218_v3  ;;  %vm7413_vm15 = vmand %vm9792_vm11, %vm995_vm0  ;;  %vm1230_vm11 = vcmask 236544   ;;  %v6012_v43 = vld [vmem:[%s9651_s3 + $0x5f4] sm:$0xf0] }
 0x25d   :  { %vm1235_vm10 = vmor %vm7426_vm14, %vm7413_vm15  ;;  %3634 = vmatpush.bf16.msra.mxu3 %v4882_v25  ;;  %v1231_v19 = vsel %vm1230_vm11, %v1229_v18, %v1228_v0  ;;  %vm757_vm15 = vcmask 1041056   ;;  %v1317_v29 = vpop.permute.xlu2 %1316  ;;  %v5992_v0 = vld [vmem:[%s9651_s3 + $0x554] sm:$0xf0]  ;;  %v5169_v1 = vld [vmem:[%s9651_s3 + $0x5d0] sm:$0xf] }
 0x25e   :  { %v725_v12 = vld [vmem:[#allocation3 + $0xb] sm:$0x3]  ;;  %vm7504_vm14 = vmand %vm663_vm3, %vm1008_vm12 }
 0x25f   :  { %v726_v16 = vsel %vm724_vm7, %v718_v62, %v725_v12  ;;  %vm759_vm7 = vcmask 295937   ;;  %vm1252_vm3 = vmor %vm7504_vm14, %vm7462_vm5  ;;  %vm9687_vm5 = vcmask 958760   ;;  %vm9805_vm14 = vcmask 1041160   ;;  %v789_v8 = vpop.permute.xlu1 %788  ;;  %v5033_v62 = vld [vmem:[%s9651_s3 + $0x4c0] sm:$0xf] }
 0x260   :  { %727 = vst [vmem:[#allocation3 + $0xb] sm:$0x3] %v726_v16  ;;  %vm758_vm11 = vmand %vm757_vm15, %vm365_vm4  ;;  %v790_v13 = vrot.slane %v789_v8, 7 }
 0x261   :  { %3635 = vmatpush.bf16.msra.mxu3 %v4874_v44  ;;  %vm7537_vm8 = vmand %vm9805_vm14, %vm995_vm0  ;;  %v5186_v44 = vor.u32 %v6012_v43, %v5185_v41  ;;  %v5089_v41 = vld [vmem:[%s9651_s3 + $0x530] sm:$0xf] }
 0x262   :  { %v7466_v33 = vld [vmem:[#allocation1] sm:$0xff]  ;;  %v7468_v63 = vld [vmem:[#allocation1 + $0x9] sm:$0xff]  ;;  %v7473_v37 = vld [vmem:[#allocation1 + $0x12] sm:$0xff]  ;;  %v812_v26 = vpop.permute.xlu0 %811 }
 0x263   :  { %v1236_v35 = vld [vmem:[#allocation3 + $0x8] sm:$0x3]  ;;  %3545 = vmatmul.bf16.vlgmr.msrb.gmra.mxu0 %v7466_v33  ;;  %3558 = vmatmul.bf16.vlgmr.msrb.gmra.mxu1 %v7468_v63  ;;  %v7475_v38 = vld [vmem:[#allocation1 + $0x1b] sm:$0xff]  ;;  %v7520_v27 = vld [vmem:[#allocation1 + $0x24] sm:$0xff]  ;;  %v813_v40 = vrot.slane %v812_v26, 7 }
 0x264   :  { %v1237_v39 = vsel %vm1235_vm10, %v1231_v19, %v1236_v35  ;;  %3571 = vmatmul.bf16.vlgmr.msrb.gmra.mxu2 %v7473_v37  ;;  %3584 = vmatmul.bf16.vlgmr.msrb.gmra.mxu3 %v7475_v38  ;;  %vm760_vm10 = vmand %vm759_vm7, %vm390_vm9  ;;  %v7522_v58 = vld [vmem:[#allocation1 + $0x2d] sm:$0xff]  ;;  %v7528_v59 = vld [vmem:[#allocation1 + $0x36] sm:$0xff] }
 0x265   :  { %1238 = vst [vmem:[#allocation3 + $0x8] sm:$0x3] %v1237_v39  ;;  %vm761_vm6 = vmor %vm760_vm10, %vm758_vm11  ;;  %v7530_v60 = vld [vmem:[#allocation1 + $0x3f] sm:$0xff]  ;;  %vm9686_vm10 = vcmask 1041328   ;;  %v5996_v19 = vld [vmem:[%s9651_s3 + $0x574] sm:$0xf0]  ;;  %3654 = vmatpush.bf16.msrb.mxu1 %v5058_v14  ;;  %3680 = vmatpush.bf16.msrb.mxu3 %v5186_v44  ;;  %v7711_v30 = vpop.permute.xlu2 %1350 }
 0x266   :  { %vm7545_vm11 = vmand %vm702_vm1, %vm1008_vm12  ;;  %v5122_v24 = vor.u32 %v5996_v19, %v5121_v34  ;;  %v5025_v34 = vld [vmem:[%s9651_s3 + $0x4b0] sm:$0xf]  ;;  %v5972_v19 = vld [vmem:[%s9651_s3 + $0x4b4] sm:$0xf0]  ;;  %v1352_v44 = vrot.slane %v7711_v30, 1 }
 0x267   :  { %v742_v46 = vld [vmem:[#allocation3 + $0xc] sm:$0x1]  ;;  %vm1288_vm14 = vmor %vm7545_vm11, %vm7537_vm8  ;;  %vm9814_vm8 = vcmask 1040784   ;;  %vm791_vm11 = vcmask 965632  }
 0x268   :  { %v743_v17 = vsel %vm7495_vm13, %v738_v45, %v742_v46  ;;  %vm9684_vm13 = vcmask 687104   ;;  %vm7555_vm1 = vmand %vm9686_vm10, %vm365_vm4  ;;  %vm9817_vm10 = vcmask 17409   ;;  %v792_v21 = vsel %vm791_vm11, %v790_v13, %v789_v8  ;;  %3667 = vmatpush.bf16.msrb.mxu2 %v5122_v24  ;;  %v5978_v45 = vld [vmem:[%s9651_s3 + $0x4e4] sm:$0xf0]  ;;  %v5097_v13 = vld [vmem:[%s9651_s3 + $0x540] sm:$0xf] }
 0x269   :  { %744 = vst [vmem:[#allocation3 + $0xc] sm:$0x1] %v743_v17  ;;  %v755_v54 = vsel %vm9684_vm13, %v753_v51, %v752_v48  ;;  %v5050_v46 = vor.u32 %v5978_v45, %v5049_v10  ;;  %v5177_v17 = vld [vmem:[%s9651_s3 + $0x5e0] sm:$0xf]  ;;  %v5026_v24 = vor.u32 %v5972_v19, %v5025_v34  ;;  %v5153_v10 = vld [vmem:[%s9651_s3 + $0x5b0] sm:$0xf] }
 0x26a   :  { %v833_v31 = vpop.permute.xlu0 %832  ;;  %v5073_v8 = vld [vmem:[%s9651_s3 + $0x510] sm:$0xf]  ;;  %v5065_v19 = vld [vmem:[%s9651_s3 + $0x500] sm:$0xf]  ;;  %v6044_v45 = vld [vmem:[%s9651_s3 + $0x6f4] sm:$0xf0] }
 0x26b   :  { %3655 = vmatpush.bf16.msrb.mxu1 %v5050_v46  ;;  %v4985_v46 = vld [vmem:[%s9651_s3 + $0x460] sm:$0xf] }
 0x26c   :  { %v1253_v50 = vld [vmem:[#allocation3 + $0x9] sm:$0x3] }
 0x26d   :  { %v1254_v52 = vsel %vm1252_vm3, %v1248_v49, %v1253_v50  ;;  %vm778_vm3 = vmand %vm9687_vm5, %vm365_vm4  ;;  %v7637_v50 = vpop.permute.xlu1 %1332 }
 0x26e   :  { %1255 = vst [vmem:[#allocation3 + $0x9] sm:$0x3] %v1254_v52  ;;  %v6010_v52 = vld [vmem:[%s9651_s3 + $0x5e4] sm:$0xf0] }
 0x270   :  { %v762_v23 = vld [vmem:[#allocation3 + $0xc] sm:$0x3] }
 0x271   :  { %v763_v53 = vsel %vm761_vm6, %v755_v54, %v762_v23  ;;  %vm9804_vm6 = vcmask 515072   ;;  %v1318_v54 = vrot.slane %v1317_v29, 1 }
 0x272   :  { %764 = vst [vmem:[#allocation3 + $0xc] sm:$0x3] %v763_v53  ;;  %v1267_v3 = vsel %vm9804_vm6, %v1265_v36, %v1266_v55  ;;  %vm1283_vm6 = vcmask 130048   ;;  %v5113_v36 = vld [vmem:[%s9651_s3 + $0x560] sm:$0xf]  ;;  %v5178_v55 = vor.u32 %v6010_v52, %v5177_v17 }
 0x273   :  { %3597 = vmatmul.bf16.vlgmr.msra.gmra.mxu0 %v7520_v27  ;;  %3610 = vmatmul.bf16.vlgmr.msra.gmra.mxu1 %v7522_v58  ;;  %v1284_v12 = vsel %vm1283_vm6, %v1282_v4, %v1281_v57  ;;  %vm7577_vm6 = vmand %vm9817_vm10, %vm1008_vm12  ;;  %v5114_v51 = vor.u32 %v5994_v47, %v5113_v36  ;;  %v5041_v53 = vld [vmem:[%s9651_s3 + $0x4d0] sm:$0xf]  ;;  %v5976_v57 = vld [vmem:[%s9651_s3 + $0x4d4] sm:$0xf0] }
 0x274   :  { %3623 = vmatmul.bf16.vlgmr.msra.gmra.mxu2 %v7528_v59  ;;  %3636 = vmatmul.bf16.vlgmr.msra.gmra.mxu3 %v7530_v60  ;;  %v5962_v47 = vld [vmem:[%s9651_s3 + $0x464] sm:$0xf0]  ;;  %v6060_v17 = vld [vmem:[%s9651_s3 + $0x774] sm:$0xf0] }
 0x275   :  { %v1270_v5 = vld [vmem:[#allocation3 + $0xa] sm:$0x1]  ;;  %3668 = vmatpush.bf16.msrb.mxu2 %v5114_v51  ;;  %3681 = vmatpush.bf16.msrb.mxu3 %v5178_v55  ;;  %v5017_v51 = vld [vmem:[%s9651_s3 + $0x4a0] sm:$0xf]  ;;  %v5970_v52 = vld [vmem:[%s9651_s3 + $0x4a4] sm:$0xf0] }
 0x276   :  { %v1271_v61 = vsel %vm1269_vm2, %v1267_v3, %v1270_v5  ;;  %vm9685_vm2 = vcmask 574465   ;;  %v5042_v3 = vor.u32 %v5976_v57, %v5041_v53  ;;  %v5105_v5 = vld [vmem:[%s9651_s3 + $0x550] sm:$0xf]  ;;  %v5018_v55 = vor.u32 %v5970_v52, %v5017_v51  ;;  %v5081_v53 = vld [vmem:[%s9651_s3 + $0x520] sm:$0xf] }
 0x277   :  { %1272 = vst [vmem:[#allocation3 + $0xa] sm:$0x1] %v1271_v61  ;;  %vm7561_vm13 = vmand %vm9685_vm2, %vm390_vm9  ;;  %v5986_v57 = vld [vmem:[%s9651_s3 + $0x524] sm:$0xf0]  ;;  %v5441_v52 = vld [vmem:[%s9651_s3 + $0x7f0] sm:$0xf] }
 0x278   :  { %vm798_vm2 = vmor %vm7561_vm13, %vm7555_vm1  ;;  %vm9688_vm1 = vcmask 580608   ;;  %3656 = vmatpush.bf16.msrb.mxu1 %v5042_v3  ;;  %v6002_v61 = vld [vmem:[%s9651_s3 + $0x5a4] sm:$0xf0] }
 0x279   :  { %v779_v2 = vld [vmem:[#allocation3 + $0xd] sm:$0x1]  ;;  %v815_v48 = vsel %vm9688_vm1, %v813_v40, %v812_v26  ;;  %v4993_v26 = vld [vmem:[%s9651_s3 + $0x470] sm:$0xf]  ;;  %v851_v40 = vpop.permute.xlu1 %850  ;;  %vm9690_vm1 = vcmask 859136  }
 0x27a   :  { %v780_v6 = vsel %vm778_vm3, %v775_v7, %v779_v2  ;;  %vm7567_vm3 = vmand %vm9814_vm8, %vm995_vm0  ;;  %vm817_vm8 = vcmask 1040952   ;;  %v5106_v7 = vor.u32 %v5992_v0, %v5105_v5  ;;  %v6008_v2 = vld [vmem:[%s9651_s3 + $0x5d4] sm:$0xf0]  ;;  %v4994_v14 = vor.u32 %v5964_v28, %v4993_v26  ;;  %v4977_v0 = vld [vmem:[%s9651_s3 + $0x450] sm:$0xf] }
 0x27b   :  { %781 = vst [vmem:[#allocation3 + $0xd] sm:$0x1] %v780_v6  ;;  %vm1306_vm5 = vmor %vm7577_vm6, %vm7567_vm3  ;;  %v5170_v11 = vor.u32 %v6008_v2, %v5169_v1  ;;  %v5082_v5 = vor.u32 %v5986_v57, %v5081_v53  ;;  %v4961_v57 = vld [vmem:[%s9651_s3 + $0x430] sm:$0xf]  ;;  %v6056_v28 = vld [vmem:[%s9651_s3 + $0x754] sm:$0xf0] }
 0x27c   :  { %vm7588_vm13 = vmand %vm817_vm8, %vm365_vm4  ;;  %3669 = vmatpush.bf16.msrb.mxu2 %v5106_v7  ;;  %3641 = vmatpush.bf16.msrb.mxu0 %v4994_v14  ;;  %v5960_v7 = vld [vmem:[%s9651_s3 + $0x454] sm:$0xf0]  ;;  %v6066_v14 = vld [vmem:[%s9651_s3 + $0x7a4] sm:$0xf0] }
 0x27d   :  { %3682 = vmatpush.bf16.msrb.mxu3 %v5170_v11  ;;  %v4978_v2 = vor.u32 %v5960_v7, %v4977_v0  ;;  %v5305_v0 = vld [vmem:[%s9651_s3 + $0x6e0] sm:$0xf] }
 0x27e   :  { %v1289_v9 = vld [vmem:[#allocation3 + $0xa] sm:$0x3]  ;;  %v5369_v7 = vld [vmem:[%s9651_s3 + $0x760] sm:$0xf] }
 0x27f   :  { %v1290_v18 = vsel %vm1288_vm14, %v1284_v12, %v1289_v9  ;;  %vm819_vm14 = vcmask 189441   ;;  %v5974_v9 = vld [vmem:[%s9651_s3 + $0x4c4] sm:$0xf0] }
 0x280   :  { %1291 = vst [vmem:[#allocation3 + $0xa] sm:$0x3] %v1290_v18  ;;  %vm7600_vm10 = vmand %vm819_vm14, %vm390_vm9  ;;  %v5034_v18 = vor.u32 %v5974_v9, %v5033_v62  ;;  %v5984_v9 = vld [vmem:[%s9651_s3 + $0x514] sm:$0xf0] }
 0x281   :  { %vm821_vm3 = vmor %vm7600_vm10, %vm7588_vm13  ;;  %vm9689_vm13 = vcmask 852160   ;;  %vm9828_vm10 = vcmask 408576   ;;  %v5074_v16 = vor.u32 %v5984_v9, %v5073_v8 }
 0x282   :  { %v799_v22 = vld [vmem:[#allocation3 + $0xd] sm:$0x3]  ;;  %v1319_v4 = vsel %vm9828_vm10, %v1317_v29, %v1318_v54  ;;  %3657 = vmatpush.bf16.msrb.mxu1 %v5034_v18  ;;  %v6004_v29 = vld [vmem:[%s9651_s3 + $0x5b4] sm:$0xf0] }
 0x283   :  { %v800_v25 = vsel %vm798_vm2, %v792_v21, %v799_v22  ;;  %vm9824_vm2 = vcmask 793600   ;;  %v5161_v21 = vld [vmem:[%s9651_s3 + $0x5c0] sm:$0xf]  ;;  %v6006_v22 = vld [vmem:[%s9651_s3 + $0x5c4] sm:$0xf0]  ;;  %v5154_v36 = vor.u32 %v6004_v29, %v5153_v10 }
 0x284   :  { %801 = vst [vmem:[#allocation3 + $0xd] sm:$0x3] %v800_v25  ;;  %v1302_v35 = vsel %vm9824_vm2, %v1300_v15, %v1301_v56  ;;  %vm7669_vm2 = vmand %vm757_vm15, %vm995_vm0  ;;  %v5990_v15 = vld [vmem:[%s9651_s3 + $0x544] sm:$0xf0]  ;;  %v5162_v25 = vor.u32 %v6006_v22, %v5161_v21  ;;  %v6000_v18 = vld [vmem:[%s9651_s3 + $0x594] sm:$0xf0]  ;;  %v871_v56 = vpop.permute.xlu0 %870 }
 0x285   :  { %vm7689_vm15 = vmand %vm9689_vm13, %vm365_vm4  ;;  %v5098_v20 = vor.u32 %v5990_v15, %v5097_v13  ;;  %v5137_v13 = vld [vmem:[%s9651_s3 + $0x590] sm:$0xf]  ;;  %v5958_v21 = vld [vmem:[%s9651_s3 + $0x444] sm:$0xf0] }
 0x286   :  { %3683 = vmatpush.bf16.msrb.mxu3 %v5162_v25  ;;  %3658 = vmatpush.bf16.msrb.mxu1 %v5026_v24  ;;  %v5138_v25 = vor.u32 %v6000_v18, %v5137_v13  ;;  %v1367_v24 = vpop.permute.xlu2 %1366  ;;  %v5129_v10 = vld [vmem:[%s9651_s3 + $0x580] sm:$0xf]  ;;  %v6040_v22 = vld [vmem:[%s9651_s3 + $0x6d4] sm:$0xf0] }
 0x287   :  { %v1307_v39 = vld [vmem:[#allocation3 + $0xb] sm:$0x3]  ;;  %3670 = vmatpush.bf16.msrb.mxu2 %v5098_v20  ;;  %v4969_v20 = vld [vmem:[%s9651_s3 + $0x440] sm:$0xf] }
 0x288   :  { %v1308_v42 = vsel %vm1306_vm5, %v1302_v35, %v1307_v39  ;;  %vm9825_vm5 = vcmask 679960   ;;  %v1334_v35 = vrot.slane %v7637_v50, 7  ;;  %v4970_v26 = vor.u32 %v5958_v21, %v4969_v20 }
 0x289   :  { %1309 = vst [vmem:[#allocation3 + $0xb] sm:$0x3] %v1308_v42  ;;  %vm7653_vm6 = vmand %vm9825_vm5, %vm995_vm0  ;;  %v5988_v42 = vld [vmem:[%s9651_s3 + $0x534] sm:$0xf0] }
 0x28a   :  { %vm7701_vm5 = vmand %vm759_vm7, %vm1008_vm12  ;;  %vm9693_vm7 = vcmask 467969   ;;  %v5090_v43 = vor.u32 %v5988_v42, %v5089_v41  ;;  %3684 = vmatpush.bf16.msrb.mxu3 %v5154_v36  ;;  %3659 = vmatpush.bf16.msrb.mxu1 %v5018_v55  ;;  %v872_v42 = vrot.slane %v871_v56, 7 }
 0x28b   :  { %v822_v49 = vld [vmem:[#allocation3 + $0xe] sm:$0x3]  ;;  %vm1340_vm10 = vmor %vm7701_vm5, %vm7669_vm2  ;;  %vm9691_vm5 = vcmask 82945  }
 0x28c   :  { %v823_v23 = vsel %vm821_vm3, %v815_v48, %v822_v49  ;;  %vm1335_vm3 = vcmask 23552   ;;  %vm7753_vm13 = vmand %vm9693_vm7, %vm390_vm9  ;;  %v852_v48 = vrot.slane %v851_v40, 7  ;;  %v4986_v49 = vor.u32 %v5962_v47, %v4985_v46  ;;  %3671 = vmatpush.bf16.msrb.mxu2 %v5090_v43  ;;  %v5377_v47 = vld [vmem:[%s9651_s3 + $0x770] sm:$0xf] }
 0x28d   :  { %824 = vst [vmem:[#allocation3 + $0xe] sm:$0x3] %v823_v23  ;;  %v1336_v54 = vsel %vm1335_vm3, %v1334_v35, %v7637_v50  ;;  %v5145_v50 = vld [vmem:[%s9651_s3 + $0x5a0] sm:$0xf]  ;;  %vm9692_vm3 = vcmask 1040848   ;;  %vm1369_vm7 = vcmask 302080   ;;  %v5378_v51 = vor.u32 %v6060_v17, %v5377_v47 }
 0x28e   :  { %3642 = vmatpush.bf16.msrb.mxu0 %v4986_v49  ;;  %v5146_v1 = vor.u32 %v6002_v61, %v5145_v50  ;;  %v854_v11 = vsel %vm9690_vm1, %v852_v48, %v851_v40  ;;  %v5982_v35 = vld [vmem:[%s9651_s3 + $0x504] sm:$0xf0]  ;;  %v1368_v49 = vrot.slane %v1367_v24, 7  ;;  %v7910_v50 = vpop.permute.xlu1 %1384  ;;  %v7988_v40 = vpop.permute.xlu2 %1403  ;;  %v4937_v48 = vld [vmem:[%s9651_s3 + $0x400] sm:$0xf] }
 0x28f   :  { %v5066_v43 = vor.u32 %v5982_v35, %v5065_v19  ;;  %v4945_v35 = vld [vmem:[%s9651_s3 + $0x410] sm:$0xf]  ;;  %v6070_v17 = vld [vmem:[%s9651_s3 + $0x7c4] sm:$0xf0]  ;;  %v1405_v9 = vrot.slane %v7988_v40, 1 }
 0x290   :  { %v1322_v6 = vld [vmem:[#allocation3 + $0xc] sm:$0x1]  ;;  %3672 = vmatpush.bf16.msrb.mxu2 %v5082_v5  ;;  %3685 = vmatpush.bf16.msrb.mxu3 %v5146_v1  ;;  %v6042_v1 = vld [vmem:[%s9651_s3 + $0x6e4] sm:$0xf0]  ;;  %v1370_v18 = vsel %vm1369_vm7, %v1368_v49, %v1367_v24  ;;  %vm9698_vm7 = vcmask 361473  }
 0x291   :  { %v1323_v12 = vsel %vm7653_vm6, %v1319_v4, %v1322_v6  ;;  %vm856_vm6 = vcmask 1041224   ;;  %v5009_v4 = vld [vmem:[%s9651_s3 + $0x490] sm:$0xf]  ;;  %v5968_v6 = vld [vmem:[%s9651_s3 + $0x494] sm:$0xf0] }
 0x292   :  { %1324 = vst [vmem:[#allocation3 + $0xc] sm:$0x1] %v1323_v12  ;;  %v5010_v12 = vor.u32 %v5968_v6, %v5009_v4  ;;  %3643 = vmatpush.bf16.msrb.mxu0 %v4978_v2  ;;  %v5306_v2 = vor.u32 %v6042_v1, %v5305_v0  ;;  %v6058_v4 = vld [vmem:[%s9651_s3 + $0x764] sm:$0xf0]  ;;  %v5433_v6 = vld [vmem:[%s9651_s3 + $0x7e0] sm:$0xf] }
 0x294   :  { %v837_v32 = vld [vmem:[#allocation3 + $0xf] sm:$0x1]  ;;  %3660 = vmatpush.bf16.msrb.mxu1 %v5010_v12  ;;  %3673 = vmatpush.bf16.msrb.mxu2 %v5074_v16  ;;  %v4953_v12 = vld [vmem:[%s9651_s3 + $0x420] sm:$0xf]  ;;  %v5297_v16 = vld [vmem:[%s9651_s3 + $0x6d0] sm:$0xf] }
 0x295   :  { %v838_v39 = vsel %vm7689_vm15, %v833_v31, %v837_v32  ;;  %vm7741_vm15 = vmand %vm856_vm6, %vm365_vm4  ;;  %v5001_v31 = vld [vmem:[%s9651_s3 + $0x480] sm:$0xf]  ;;  %v5966_v32 = vld [vmem:[%s9651_s3 + $0x484] sm:$0xf0]  ;;  %3686 = vmatpush.bf16.msrb.mxu3 %v5138_v25 }
 0x296   :  { %839 = vst [vmem:[#allocation3 + $0xf] sm:$0x1] %v838_v39  ;;  %vm860_vm2 = vmor %vm7753_vm13, %vm7741_vm15  ;;  %v5002_v34 = vor.u32 %v5966_v32, %v5001_v31  ;;  %3644 = vmatpush.bf16.msrb.mxu0 %v4970_v26  ;;  %v5298_v26 = vor.u32 %v6040_v22, %v5297_v16  ;;  %v5425_v31 = vld [vmem:[%s9651_s3 + $0x7d0] sm:$0xf]  ;;  %v6072_v32 = vld [vmem:[%s9651_s3 + $0x7d4] sm:$0xf0]  ;;  %v908_v49 = vpop.permute.xlu1 %907 }
 0x297   :  { %vm7830_vm13 = vmand %vm9692_vm3, %vm365_vm4  ;;  %vm873_vm3 = vcmask 474112   ;;  %v5426_v19 = vor.u32 %v6072_v32, %v5425_v31  ;;  %v5273_v16 = vld [vmem:[%s9651_s3 + $0x6a0] sm:$0xf]  ;;  %v6050_v31 = vld [vmem:[%s9651_s3 + $0x724] sm:$0xf0] }
 0x298   :  { %vm7842_vm15 = vmand %vm9691_vm5, %vm390_vm9  ;;  %3661 = vmatpush.bf16.msrb.mxu1 %v5002_v34  ;;  %3674 = vmatpush.bf16.msrb.mxu2 %v5066_v43  ;;  %v5353_v43 = vld [vmem:[%s9651_s3 + $0x740] sm:$0xf] }
 0x299   :  { %v1341_v23 = vld [vmem:[#allocation3 + $0xc] sm:$0x3]  ;;  %v5401_v32 = vld [vmem:[%s9651_s3 + $0x7a0] sm:$0xf] }
 0x29a   :  { %v1342_v3 = vsel %vm1340_vm10, %v1336_v54, %v1341_v23  ;;  %vm9839_vm10 = vcmask 958760   ;;  %v6076_v54 = vld [vmem:[%s9651_s3 + $0x7f4] sm:$0xf0]  ;;  %v874_v23 = vsel %vm873_vm3, %v872_v42, %v871_v56  ;;  %v5361_v56 = vld [vmem:[%s9651_s3 + $0x750] sm:$0xf] }
 0x29b   :  { %1343 = vst [vmem:[#allocation3 + $0xc] sm:$0x3] %v1342_v3  ;;  %vm7824_vm1 = vmand %vm9839_vm10, %vm995_vm0  ;;  %vm9847_vm10 = vcmask 1041328   ;;  %v5442_v53 = vor.u32 %v6076_v54, %v5441_v52  ;;  %v5956_v3 = vld [vmem:[%s9651_s3 + $0x434] sm:$0xf0]  ;;  %v5362_v34 = vor.u32 %v6056_v28, %v5361_v56 }
 0x29c   :  { %vm7858_vm5 = vmand %vm9847_vm10, %vm995_vm0  ;;  %3719 = vmatpush.bf16.msra.mxu2 %v5378_v51  ;;  %v4962_v61 = vor.u32 %v5956_v3, %v4961_v57  ;;  %v6038_v42 = vld [vmem:[%s9651_s3 + $0x6c4] sm:$0xf0]  ;;  %v5321_v57 = vld [vmem:[%s9651_s3 + $0x700] sm:$0xf] }
 0x29d   :  { %v861_v62 = vld [vmem:[#allocation3 + $0xf] sm:$0x3]  ;;  %v5950_v52 = vld [vmem:[%s9651_s3 + $0x404] sm:$0xf0] }
 0x29e   :  { %v862_v15 = vsel %vm860_vm2, %v854_v11, %v861_v62  ;;  %vm9846_vm2 = vcmask 687104   ;;  %3645 = vmatpush.bf16.msrb.mxu0 %v4962_v61  ;;  %v5370_v11 = vor.u32 %v6058_v4, %v5369_v7  ;;  %v6074_v62 = vld [vmem:[%s9651_s3 + $0x7e4] sm:$0xf0]  ;;  %v6036_v61 = vld [vmem:[%s9651_s3 + $0x6b4] sm:$0xf0]  ;;  %v909_v7 = vrot.slane %v908_v49, 7 }
 0x29f   :  { %863 = vst [vmem:[#allocation3 + $0xf] sm:$0x3] %v862_v15  ;;  %v1353_v39 = vsel %vm9846_vm2, %v7711_v30, %v1352_v44  ;;  %v5998_v30 = vld [vmem:[%s9651_s3 + $0x584] sm:$0xf0]  ;;  %v5313_v44 = vld [vmem:[%s9651_s3 + $0x6f0] sm:$0xf]  ;;  %vm880_vm2 = vmor %vm7842_vm15, %vm7830_vm13  ;;  %v5434_v13 = vor.u32 %v6074_v62, %v5433_v6 }
 0x2a0   :  { %v5130_v36 = vor.u32 %v5998_v30, %v5129_v10  ;;  %v5314_v46 = vor.u32 %v6044_v45, %v5313_v44  ;;  %vm7933_vm15 = vmand %vm817_vm8, %vm995_vm0  ;;  %vm896_vm8 = vcmask 745560   ;;  %v5954_v15 = vld [vmem:[%s9651_s3 + $0x424] sm:$0xf0]  ;;  %3720 = vmatpush.bf16.msra.mxu2 %v5370_v11  ;;  %v894_v10 = vpop.permute.xlu0 %893  ;;  %v5417_v45 = vld [vmem:[%s9651_s3 + $0x7c0] sm:$0xf] }
 0x2a1   :  { %v4954_v21 = vor.u32 %v5954_v15, %v4953_v12  ;;  %v6054_v44 = vld [vmem:[%s9651_s3 + $0x744] sm:$0xf0]  ;;  %v5418_v51 = vor.u32 %v6070_v17, %v5417_v45  ;;  %v5345_v4 = vld [vmem:[%s9651_s3 + $0x730] sm:$0xf]  ;;  %v6068_v62 = vld [vmem:[%s9651_s3 + $0x7b4] sm:$0xf0] }
 0x2a2   :  { %v1356_v41 = vld [vmem:[#allocation3 + $0xd] sm:$0x1]  ;;  %3706 = vmatpush.bf16.msra.mxu1 %v5314_v46  ;;  %3687 = vmatpush.bf16.msrb.mxu3 %v5130_v36  ;;  %v1386_v36 = vrot.slane %v7910_v50, 1  ;;  %v5354_v47 = vor.u32 %v6054_v44, %v5353_v43  ;;  %v5409_v11 = vld [vmem:[%s9651_s3 + $0x7b0] sm:$0xf] }
 0x2a3   :  { %v1357_v29 = vsel %vm7824_vm1, %v1353_v39, %v1356_v41  ;;  %vm9850_vm1 = vcmask 574465   ;;  %3646 = vmatpush.bf16.msrb.mxu0 %v4954_v21  ;;  %v5952_v39 = vld [vmem:[%s9651_s3 + $0x414] sm:$0xf0]  ;;  %v5289_v41 = vld [vmem:[%s9651_s3 + $0x6c0] sm:$0xf] }
 0x2a4   :  { %1358 = vst [vmem:[#allocation3 + $0xd] sm:$0x1] %v1357_v29  ;;  %vm7888_vm10 = vmand %vm9850_vm1, %vm1008_vm12  ;;  %vm913_vm1 = vcmask 1041120   ;;  %v4946_v24 = vor.u32 %v5952_v39, %v4945_v35  ;;  %3721 = vmatpush.bf16.msra.mxu2 %v5362_v34  ;;  %v5290_v30 = vor.u32 %v6038_v42, %v5289_v41  ;;  %v1387_v0 = vsel %vm791_vm11, %v7910_v50, %v1386_v36  ;;  %v6052_v50 = vld [vmem:[%s9651_s3 + $0x734] sm:$0xf0] }
 0x2a5   :  { %vm1374_vm13 = vmor %vm7888_vm10, %vm7858_vm5  ;;  %v5346_v8 = vor.u32 %v6052_v50, %v5345_v4  ;;  %v5241_v12 = vld [vmem:[%s9651_s3 + $0x660] sm:$0xf]  ;;  %v6026_v15 = vld [vmem:[%s9651_s3 + $0x664] sm:$0xf0] }
 0x2a6   :  { %v881_v55 = vld [vmem:[#allocation3 + $0x10] sm:$0x3]  ;;  %3732 = vmatpush.bf16.msra.mxu3 %v5442_v53  ;;  %3707 = vmatpush.bf16.msra.mxu1 %v5306_v2  ;;  %vm8023_vm10 = vmand %vm913_vm1, %vm365_vm4  ;;  %v5242_v22 = vor.u32 %v6026_v15, %v5241_v12  ;;  %v6034_v56 = vld [vmem:[%s9651_s3 + $0x6a4] sm:$0xf0] }
 0x2a7   :  { %v882_v5 = vsel %vm880_vm2, %v874_v23, %v881_v55  ;;  %vm7945_vm2 = vmand %vm819_vm14, %vm1008_vm12  ;;  %3647 = vmatpush.bf16.msrb.mxu0 %v4946_v24  ;;  %v4938_v23 = vor.u32 %v5950_v52, %v4937_v48  ;;  %v5249_v55 = vld [vmem:[%s9651_s3 + $0x670] sm:$0xf]  ;;  %v6028_v53 = vld [vmem:[%s9651_s3 + $0x674] sm:$0xf0]  ;;  %v5274_v28 = vor.u32 %v6034_v56, %v5273_v16 }
 0x2a8   :  { %883 = vst [vmem:[#allocation3 + $0x10] sm:$0x3] %v882_v5  ;;  %vm7978_vm14 = vmand %vm896_vm8, %vm365_vm4  ;;  %3722 = vmatpush.bf16.msra.mxu2 %v5354_v47  ;;  %v5250_v3 = vor.u32 %v6028_v53, %v5249_v55  ;;  %v5281_v5 = vld [vmem:[%s9651_s3 + $0x6b0] sm:$0xf]  ;;  %v6024_v24 = vld [vmem:[%s9651_s3 + $0x654] sm:$0xf0] }
 0x2a9   :  { %vm1391_vm5 = vmor %vm7945_vm2, %vm7933_vm15  ;;  %v5282_v2 = vor.u32 %v6036_v61, %v5281_v5  ;;  %v5233_v35 = vld [vmem:[%s9651_s3 + $0x650] sm:$0xf]  ;;  %vm9863_vm15 = vcmask 852160   ;;  %v6032_v43 = vld [vmem:[%s9651_s3 + $0x694] sm:$0xf0] }
 0x2aa   :  { %3733 = vmatpush.bf16.msra.mxu3 %v5434_v13  ;;  %3708 = vmatpush.bf16.msra.mxu1 %v5298_v26  ;;  %v5410_v13 = vor.u32 %v6068_v62, %v5409_v11  ;;  %vm8106_vm2 = vmand %vm9863_vm15, %vm995_vm0  ;;  %v5265_v41 = vld [vmem:[%s9651_s3 + $0x690] sm:$0xf]  ;;  %v5234_v42 = vor.u32 %v6024_v24, %v5233_v35  ;;  %v6048_v36 = vld [vmem:[%s9651_s3 + $0x714] sm:$0xf0] }
 0x2ab   :  { %v1375_v20 = vld [vmem:[#allocation3 + $0xd] sm:$0x3]  ;;  %3648 = vmatpush.bf16.msrb.mxu0 %v4938_v23  ;;  %v5266_v45 = vor.u32 %v6032_v43, %v5265_v41  ;;  %v5393_v17 = vld [vmem:[%s9651_s3 + $0x790] sm:$0xf]  ;;  %v6064_v48 = vld [vmem:[%s9651_s3 + $0x794] sm:$0xf0] }
 0x2ac   :  { %v1376_v25 = vsel %vm1374_vm13, %v1370_v18, %v1375_v20  ;;  %vm8035_vm13 = vmand %vm9698_vm7, %vm390_vm9  ;;  %v8078_v18 = vpop.permute.xlu2 %1419  ;;  %3723 = vmatpush.bf16.msra.mxu2 %v5346_v8  ;;  %v5225_v52 = vld [vmem:[%s9651_s3 + $0x640] sm:$0xf]  ;;  %v6022_v54 = vld [vmem:[%s9651_s3 + $0x644] sm:$0xf0]  ;;  %v1439_v8 = vpop.permute.xlu0 %1438 }
 0x2ad   :  { %1377 = vst [vmem:[#allocation3 + $0xd] sm:$0x3] %v1376_v25  ;;  %vm917_vm11 = vmor %vm8035_vm13, %vm8023_vm10  ;;  %v5337_v25 = vld [vmem:[%s9651_s3 + $0x720] sm:$0xf]  ;;  %vm9866_vm10 = vcmask 580608   ;;  %v5226_v23 = vor.u32 %v6022_v54, %v5225_v52 }
 0x2ae   :  { %3734 = vmatpush.bf16.msra.mxu3 %v5426_v19  ;;  %3709 = vmatpush.bf16.msra.mxu1 %v5290_v30  ;;  %v5338_v34 = vor.u32 %v6050_v31, %v5337_v25  ;;  %v5402_v19 = vor.u32 %v6066_v14, %v5401_v32  ;;  %vm8126_vm13 = vmand %vm856_vm6, %vm995_vm0  ;;  %vm9696_vm6 = vcmask 1041392   ;;  %v5257_v55 = vld [vmem:[%s9651_s3 + $0x680] sm:$0xf]  ;;  %v6030_v53 = vld [vmem:[%s9651_s3 + $0x684] sm:$0xf0]  ;;  %v1440_v14 = vrot.slane %v1439_v8, 1 }
 0x2af   :  { %v898_v29 = vld [vmem:[#allocation3 + $0x11] sm:$0x1]  ;;  %3693 = vmatpush.bf16.msra.mxu0 %v5250_v3  ;;  %v931_v3 = vpop.permute.xlu1 %930  ;;  %v5258_v61 = vor.u32 %v6030_v53, %v5257_v55  ;;  %v6062_v50 = vld [vmem:[%s9651_s3 + $0x784] sm:$0xf0]  ;;  %v5217_v12 = vld [vmem:[%s9651_s3 + $0x630] sm:$0xf] }
 0x2b0   :  { %v899_v46 = vsel %vm7978_vm14, %v894_v10, %v898_v29  ;;  %vm9694_vm14 = vcmask 752640   ;;  %3724 = vmatpush.bf16.msra.mxu2 %v5338_v34  ;;  %v5329_v10 = vld [vmem:[%s9651_s3 + $0x710] sm:$0xf]  ;;  %v1406_v29 = vsel %vm9866_vm10, %v7988_v40, %v1405_v9  ;;  %v6018_v25 = vld [vmem:[%s9651_s3 + $0x624] sm:$0xf0] }
 0x2b1   :  { %900 = vst [vmem:[#allocation3 + $0x11] sm:$0x1] %v899_v46  ;;  %v911_v20 = vsel %vm9694_vm14, %v909_v7, %v908_v49  ;;  %v5330_v47 = vor.u32 %v6048_v36, %v5329_v10  ;;  %v1421_v7 = vrot.slane %v8078_v18, 7  ;;  %vm1422_vm14 = vcmask 195584   ;;  %v6016_v39 = vld [vmem:[%s9651_s3 + $0x614] sm:$0xf0] }
 0x2b2   :  { %3735 = vmatpush.bf16.msra.mxu3 %v5418_v51  ;;  %3710 = vmatpush.bf16.msra.mxu1 %v5282_v2  ;;  %v5394_v51 = vor.u32 %v6064_v48, %v5393_v17  ;;  %v5193_v36 = vld [vmem:[%s9651_s3 + $0x600] sm:$0xf]  ;;  %v6108_v17 = vld [vmem:[%s9651_s3 + $0x8f4] sm:$0xf0]  ;;  %v5633_v48 = vld [vmem:[%s9651_s3 + $0x970] sm:$0xf] }
 0x2b3   :  { %3694 = vmatpush.bf16.msra.mxu0 %v5242_v22  ;;  %v1423_v15 = vsel %vm1422_vm14, %v1421_v7, %v8078_v18  ;;  %v5209_v18 = vld [vmem:[%s9651_s3 + $0x620] sm:$0xf]  ;;  %v6124_v54 = vld [vmem:[%s9651_s3 + $0x974] sm:$0xf0]  ;;  %v5553_v56 = vld [vmem:[%s9651_s3 + $0x8d0] sm:$0xf] }
 0x2b4   :  { %v1392_v1 = vld [vmem:[#allocation3 + $0xe] sm:$0x3]  ;;  %3725 = vmatpush.bf16.msra.mxu2 %v5330_v47  ;;  %v945_v2 = vpop.permute.xlu2 %944  ;;  %v5569_v47 = vld [vmem:[%s9651_s3 + $0x8f0] sm:$0xf]  ;;  %v6140_v53 = vld [vmem:[%s9651_s3 + $0x9f4] sm:$0xf0]  ;;  %v5634_v7 = vor.u32 %v6124_v54, %v5633_v48 }
 0x2b5   :  { %v1393_v6 = vsel %vm1391_vm5, %v1387_v0, %v1392_v1  ;;  %vm9695_vm5 = vcmask 1024360   ;;  %v6046_v0 = vld [vmem:[%s9651_s3 + $0x704] sm:$0xf0]  ;;  %v5385_v1 = vld [vmem:[%s9651_s3 + $0x780] sm:$0xf]  ;;  %v946_v16 = vrot.slane %v945_v2, 7 }
 0x2b6   :  { %1394 = vst [vmem:[#allocation3 + $0xe] sm:$0x3] %v1393_v6  ;;  %3736 = vmatpush.bf16.msra.mxu3 %v5410_v13  ;;  %3711 = vmatpush.bf16.msra.mxu1 %v5274_v28  ;;  %vm8149_vm10 = vmand %vm9695_vm5, %vm365_vm4  ;;  %v5322_v6 = vor.u32 %v6046_v0, %v5321_v57  ;;  %v5386_v11 = vor.u32 %v6062_v50, %v5385_v1  ;;  %v6020_v13 = vld [vmem:[%s9651_s3 + $0x634] sm:$0xf0]  ;;  %v5505_v57 = vld [vmem:[%s9651_s3 + $0x870] sm:$0xf] }
 0x2b7   :  { %3695 = vmatpush.bf16.msra.mxu0 %v5234_v42  ;;  %v5210_v28 = vor.u32 %v6018_v25, %v5209_v18  ;;  %v1456_v42 = vpop.permute.xlu0 %1455  ;;  %v6106_v0 = vld [vmem:[%s9651_s3 + $0x8e4] sm:$0xf0]  ;;  %v5570_v1 = vor.u32 %v6108_v17, %v5569_v47  ;;  %v1472_v25 = vpop.permute.xlu1 %1471  ;;  %v5681_v24 = vld [vmem:[%s9651_s3 + $0x9d0] sm:$0xf]  ;;  %v5593_v18 = vld [vmem:[%s9651_s3 + $0x920] sm:$0xf] }
 0x2b8   :  { %v918_v21 = vld [vmem:[#allocation3 + $0x11] sm:$0x3]  ;;  %3726 = vmatpush.bf16.msra.mxu2 %v5322_v6  ;;  %v1457_v46 = vrot.slane %v1456_v42, 1  ;;  %v5689_v6 = vld [vmem:[%s9651_s3 + $0x9e0] sm:$0xf] }
 0x2b9   :  { %v919_v26 = vsel %vm917_vm11, %v911_v20, %v918_v21  ;;  %vm9869_vm11 = vcmask 467969   ;;  %v5218_v21 = vor.u32 %v6020_v13, %v5217_v12  ;;  %v6118_v47 = vld [vmem:[%s9651_s3 + $0x944] sm:$0xf0] }
 0x2ba   :  { %920 = vst [vmem:[#allocation3 + $0x11] sm:$0x3] %v919_v26  ;;  %3737 = vmatpush.bf16.msra.mxu3 %v5402_v19  ;;  %vm8135_vm15 = vmand %vm9869_vm11, %vm1008_vm12  ;;  %3712 = vmatpush.bf16.msra.mxu1 %v5266_v45  ;;  %v5201_v19 = vld [vmem:[%s9651_s3 + $0x610] sm:$0xf]  ;;  %v1458_v9 = vsel %vm873_vm3, %v1456_v42, %v1457_v46  ;;  %vm9893_vm3 = vcmask 361473   ;;  %v1473_v42 = vrot.slane %v1472_v25, 7 }
 0x2bb   :  { %3696 = vmatpush.bf16.msra.mxu0 %v5226_v23  ;;  %vm1427_vm11 = vmor %vm8135_vm15, %vm8126_vm13  ;;  %vm9881_vm13 = vcmask 82945   ;;  %v5202_v41 = vor.u32 %v6016_v39, %v5201_v19  ;;  %v5697_v23 = vld [vmem:[%s9651_s3 + $0x9f0] sm:$0xf]  ;;  %v6102_v46 = vld [vmem:[%s9651_s3 + $0x8c4] sm:$0xf0] }
 0x2bc   :  { %vm8226_vm15 = vmand %vm9881_vm13, %vm1008_vm12  ;;  %v968_v35 = vpop.permute.xlu2 %967  ;;  %vm970_vm13 = vcmask 646144   ;;  %v5698_v62 = vor.u32 %v6140_v53, %v5697_v23  ;;  %v5617_v19 = vld [vmem:[%s9651_s3 + $0x950] sm:$0xf] }
 0x2bd   :  { %v1409_v44 = vld [vmem:[#allocation3 + $0xf] sm:$0x1] }
 0x2be   :  { %v1410_v40 = vsel %vm8106_vm2, %v1406_v29, %v1409_v44  ;;  %3738 = vmatpush.bf16.msra.mxu3 %v5394_v51  ;;  %vm9697_vm2 = vcmask 640001   ;;  %3713 = vmatpush.bf16.msra.mxu1 %v5258_v61  ;;  %v969_v29 = vrot.slane %v968_v35, 7  ;;  %v5561_v61 = vld [vmem:[%s9651_s3 + $0x8e0] sm:$0xf] }
 0x2bf   :  { %1411 = vst [vmem:[#allocation3 + $0xf] sm:$0x1] %v1410_v40  ;;  %vm8195_vm5 = vmand %vm9697_vm2, %vm390_vm9  ;;  %vm9878_vm2 = vcmask 1040848   ;;  %3697 = vmatpush.bf16.msra.mxu0 %v5218_v21  ;;  %v6014_v40 = vld [vmem:[%s9651_s3 + $0x604] sm:$0xf0]  ;;  %v5562_v26 = vor.u32 %v6106_v0, %v5561_v61 }
 0x2c0   :  { %vm8210_vm7 = vmand %vm9878_vm2, %vm995_vm0  ;;  %vm973_vm2 = vcmask 1041016   ;;  %v5194_v49 = vor.u32 %v6014_v40, %v5193_v36  ;;  %v971_v51 = vsel %vm970_vm13, %v969_v29, %v968_v35  ;;  %v6120_v35 = vld [vmem:[%s9651_s3 + $0x954] sm:$0xf0]  ;;  %v5609_v40 = vld [vmem:[%s9651_s3 + $0x940] sm:$0xf] }
 0x2c1   :  { %v935_v5 = vld [vmem:[#allocation3 + $0x12] sm:$0x1]  ;;  %v5610_v61 = vor.u32 %v6118_v47, %v5609_v40  ;;  %v5521_v47 = vld [vmem:[%s9651_s3 + $0x890] sm:$0xf]  ;;  %v4603_v40 = vld [vmem:[%s9651_s3 + $0x168] sm:$0xf0] }
 0x2c2   :  { %v936_v4 = vsel %vm8149_vm10, %v931_v3, %v935_v5  ;;  %vm8186_vm10 = vmand %vm9696_vm6, %vm365_vm4  ;;  %3739 = vmatpush.bf16.msra.mxu3 %v5386_v11  ;;  %vm947_vm6 = vcmask 1031168   ;;  %v6092_v3 = vld [vmem:[%s9651_s3 + $0x874] sm:$0xf0] }
 0x2c3   :  { %937 = vst [vmem:[#allocation3 + $0x12] sm:$0x1] %v936_v4  ;;  %vm954_vm14 = vmor %vm8195_vm5, %vm8186_vm10  ;;  %v948_v31 = vsel %vm947_vm6, %v946_v16, %v945_v2  ;;  %3698 = vmatpush.bf16.msra.mxu0 %v5210_v28  ;;  %v5625_v2 = vld [vmem:[%s9651_s3 + $0x960] sm:$0xf]  ;;  %v6122_v4 = vld [vmem:[%s9651_s3 + $0x964] sm:$0xf0]  ;;  %v5506_v12 = vor.u32 %v6092_v3, %v5505_v57 }
 0x2c4   :  { %vm1445_vm5 = vmor %vm8226_vm15, %vm8210_vm7  ;;  %vm9888_vm7 = vcmask 859136   ;;  %v6138_v16 = vld [vmem:[%s9651_s3 + $0x9e4] sm:$0xf0]  ;;  %v5626_v28 = vor.u32 %v6122_v4, %v5625_v2  ;;  %v6088_v29 = vld [vmem:[%s9651_s3 + $0x854] sm:$0xf0] }
 0x2c5   :  { %vm8243_vm10 = vmand %vm973_vm2, %vm365_vm4  ;;  %v1441_v30 = vsel %vm9888_vm7, %v1439_v8, %v1440_v14  ;;  %v5690_v14 = vor.u32 %v6138_v16, %v5689_v6  ;;  %v5537_v57 = vld [vmem:[%s9651_s3 + $0x8b0] sm:$0xf]  ;;  %v6100_v0 = vld [vmem:[%s9651_s3 + $0x8b4] sm:$0xf0]  ;;  %vm9899_vm7 = vcmask 1041392  }
 0x2c6   :  { %v1428_v20 = vld [vmem:[#allocation3 + $0xf] sm:$0x3]  ;;  %vm8341_vm15 = vmand %vm9893_vm3, %vm1008_vm12  ;;  %vm1508_vm3 = vcmask 367616   ;;  %v5865_v16 = vld [vmem:[%s9651_s3 + $0x164] sm:$0xf] }
 0x2c7   :  { %v1429_v22 = vsel %vm1427_vm11, %v1423_v15, %v1428_v20  ;;  %vm975_vm11 = vcmask 254977   ;;  %3699 = vmatpush.bf16.msra.mxu0 %v5202_v41  ;;  %v6136_v41 = vld [vmem:[%s9651_s3 + $0x9d4] sm:$0xf0]  ;;  %vm8426_vm13 = vmand %vm9899_vm7, %vm995_vm0 }
 0x2c8   :  { %1430 = vst [vmem:[#allocation3 + $0xf] sm:$0x3] %v1429_v22  ;;  %v1861_v22 = vld [vmem:[%s9652_s4] sm:$0x3]  ;;  %v5682_v36 = vor.u32 %v6136_v41, %v5681_v24  ;;  %v6132_v21 = vld [vmem:[%s9651_s3 + $0x9b4] sm:$0xf0] }
 0x2c9   :  { %v1863_v43 = vperm.slane %v1861_v22, 0  ;;  %v5529_v22 = vld [vmem:[%s9651_s3 + $0x8a0] sm:$0xf] }
 0x2ca   :  { %v955_v32 = vld [vmem:[#allocation3 + $0x12] sm:$0x3] }
 0x2cb   :  { %v956_v34 = vsel %vm954_vm14, %v948_v31, %v955_v32  ;;  %vm8249_vm14 = vmand %vm975_vm11, %vm390_vm9  ;;  %3700 = vmatpush.bf16.msra.mxu0 %v5194_v49  ;;  %v5497_v31 = vld [vmem:[%s9651_s3 + $0x860] sm:$0xf]  ;;  %v6090_v32 = vld [vmem:[%s9651_s3 + $0x864] sm:$0xf0] }
 0x2cc   :  { %957 = vst [vmem:[#allocation3 + $0x12] sm:$0x3] %v956_v34  ;;  %vm977_vm4 = vmor %vm8249_vm14, %vm8243_vm10  ;;  %v6104_v34 = vld [vmem:[%s9651_s3 + $0x8d4] sm:$0xf0]  ;;  %v5498_v39 = vor.u32 %v6090_v32, %v5497_v31  ;;  %vm9896_vm10 = vcmask 1024360  }
 0x2cd   :  { %vm8290_vm9 = vmand %vm896_vm8, %vm995_vm0  ;;  %v6114_v32 = vld [vmem:[%s9651_s3 + $0x924] sm:$0xf0] }
 0x2ce   :  { %vm8327_vm8 = vmand %vm913_vm1, %vm995_vm0  ;;  %vm1474_vm1 = vcmask 89088  }
 0x2cf   :  { %v1535_v10 = vld [vmem:[#allocation3 + $0x8] sm:$0xff]  ;;  %v1446_v44 = vld [vmem:[#allocation3 + $0x10] sm:$0x3]  ;;  %v1475_v54 = vsel %vm1474_vm1, %v1473_v42, %v1472_v25  ;;  %vm8414_vm14 = vmand %vm9896_vm10, %vm995_vm0 }
 0x2d0   :  { %1878 = vst [vmem:[#allocation1] ss:$9 sm:$0xff] %v1535_v10  ;;  %v1447_v45 = vsel %vm1445_vm5, %v1441_v30, %v1446_v44  ;;  %v5489_v10 = vld [vmem:[%s9651_s3 + $0x850] sm:$0xf]  ;;  %vm1479_vm5 = vmor %vm8341_vm15, %vm8327_vm8  ;;  %v5554_v30 = vor.u32 %v6104_v34, %v5553_v56  ;;  %v5618_v44 = vor.u32 %v6120_v35, %v5617_v19  ;;  %v6098_v56 = vld [vmem:[%s9651_s3 + $0x8a4] sm:$0xf0] }
 0x2d1   :  { %1448 = vst [vmem:[#allocation3 + $0x10] sm:$0x3] %v1447_v45  ;;  %v5545_v45 = vld [vmem:[%s9651_s3 + $0x8c0] sm:$0xf]  ;;  %v5490_v17 = vor.u32 %v6088_v29, %v5489_v10  ;;  %v5473_v25 = vld [vmem:[%s9651_s3 + $0x830] sm:$0xf]  ;;  %vm8589_vm1 = vmand %vm973_vm2, %vm995_vm0 }
 0x2d2   :  { %v5546_v5 = vor.u32 %v6102_v46, %v5545_v45  ;;  %v6130_v34 = vld [vmem:[%s9651_s3 + $0x9a4] sm:$0xf0]  ;;  %v5465_v45 = vld [vmem:[%s9651_s3 + $0x820] sm:$0xf]  ;;  %vm3534_vm0 = vcmask 261120  }
 0x2d3   :  { %v978_v52 = vld [vmem:[#allocation3 + $0x13] sm:$0x3] }
 0x2d4   :  { %v979_v55 = vsel %vm977_vm4, %v971_v51, %v978_v52  ;;  %v5673_v51 = vld [vmem:[%s9651_s3 + $0x9c0] sm:$0xf]  ;;  %v6134_v52 = vld [vmem:[%s9651_s3 + $0x9c4] sm:$0xf0]  ;;  %vm9902_vm4 = vcmask 752640  }
 0x2d5   :  { %980 = vst [vmem:[#allocation3 + $0x13] sm:$0x3] %v979_v55  ;;  %v1490_v55 = vpop.permute.xlu0 %1489  ;;  %v5674_v6 = vor.u32 %v6134_v52, %v5673_v51  ;;  %v5530_v51 = vor.u32 %v6098_v56, %v5529_v22  ;;  %v5594_v52 = vor.u32 %v6114_v32, %v5593_v18  ;;  %v5641_v22 = vld [vmem:[%s9651_s3 + $0x980] sm:$0xf]  ;;  %v6126_v56 = vld [vmem:[%s9651_s3 + $0x984] sm:$0xf0] }
 0x2d6   :  { %v5851_v32 = vld [vmem:[%s9651_s3 + $0xf4] sm:$0xf] }
 0x2d7   :  { %v8309_v50 = vld [vmem:[#allocation1] sm:$0xff]  ;;  %v8311_v11 = vld [vmem:[#allocation1 + $0x9] sm:$0xff]  ;;  %v8313_v8 = vld [vmem:[#allocation1 + $0x12] sm:$0xff] }
 0x2d8   :  { %v1461_v13 = vld [vmem:[#allocation3 + $0x11] sm:$0x1]  ;;  %3649 = vmatmul.bf16.vlgmr.msrb.gmra.mxu0 %v8309_v50  ;;  %3662 = vmatmul.bf16.vlgmr.msrb.gmra.mxu1 %v8311_v11  ;;  %v8318_v15 = vld [vmem:[#allocation1 + $0x1b] sm:$0xff]  ;;  %v8462_v24 = vld [vmem:[#allocation1 + $0x2d] sm:$0xff] }
 0x2d9   :  { %v1462_v20 = vsel %vm8290_vm9, %v1458_v9, %v1461_v13  ;;  %3675 = vmatmul.bf16.vlgmr.msrb.gmra.mxu2 %v8313_v8  ;;  %3688 = vmatmul.bf16.vlgmr.msrb.gmra.mxu3 %v8318_v15  ;;  %v1491_v13 = vrot.slane %v1490_v55, 1  ;;  %v8464_v41 = vld [vmem:[#allocation1 + $0x36] sm:$0xff]  ;;  %vm9903_vm9 = vcmask 640001  }
 0x2da   :  { %1463 = vst [vmem:[#allocation3 + $0x11] sm:$0x1] %v1462_v20  ;;  %3758 = vmatpush.bf16.msrb.mxu1 %v5570_v1  ;;  %3771 = vmatpush.bf16.msrb.mxu2 %v5634_v7  ;;  %v5481_v1 = vld [vmem:[%s9651_s3 + $0x840] sm:$0xf]  ;;  %v6086_v7 = vld [vmem:[%s9651_s3 + $0x844] sm:$0xf0]  ;;  %vm8479_vm8 = vmand %vm9903_vm9, %vm1008_vm12 }
 0x2db   :  { %3784 = vmatpush.bf16.msrb.mxu3 %v5698_v62  ;;  %3745 = vmatpush.bf16.msrb.mxu0 %v5506_v12  ;;  %v5601_v62 = vld [vmem:[%s9651_s3 + $0x930] sm:$0xf]  ;;  %v6116_v12 = vld [vmem:[%s9651_s3 + $0x934] sm:$0xf0]  ;;  %v5482_v9 = vor.u32 %v6086_v7, %v5481_v1  ;;  %v1492_v46 = vsel %vm9902_vm4, %v1490_v55, %v1491_v13  ;;  %vm1513_vm15 = vmor %vm8479_vm8, %vm8426_vm13 }
 0x2dc   :  { %v5665_v20 = vld [vmem:[%s9651_s3 + $0x9b0] sm:$0xf]  ;;  %v5602_v31 = vor.u32 %v6116_v12, %v5601_v62  ;;  %v6080_v1 = vld [vmem:[%s9651_s3 + $0x814] sm:$0xf0]  ;;  %v6094_v62 = vld [vmem:[%s9651_s3 + $0x884] sm:$0xf0] }
 0x2dd   :  { %v5666_v42 = vor.u32 %v6132_v21, %v5665_v20  ;;  %v5577_v12 = vld [vmem:[%s9651_s3 + $0x900] sm:$0xf]  ;;  %v6110_v21 = vld [vmem:[%s9651_s3 + $0x904] sm:$0xf0] }
 0x2de   :  { %3759 = vmatpush.bf16.msrb.mxu1 %v5562_v26  ;;  %3772 = vmatpush.bf16.msrb.mxu2 %v5626_v28  ;;  %v6084_v26 = vld [vmem:[%s9651_s3 + $0x834] sm:$0xf0]  ;;  %v5538_v28 = vor.u32 %v6100_v0, %v5537_v57  ;;  %v5457_v0 = vld [vmem:[%s9651_s3 + $0x810] sm:$0xf] }
 0x2df   :  { %3785 = vmatpush.bf16.msrb.mxu3 %v5690_v14  ;;  %3746 = vmatpush.bf16.msrb.mxu0 %v5498_v39  ;;  %v5657_v14 = vld [vmem:[%s9651_s3 + $0x9a0] sm:$0xf]  ;;  %v8460_v39 = vld [vmem:[#allocation1 + $0x24] sm:$0xff]  ;;  %v6112_v57 = vld [vmem:[%s9651_s3 + $0x914] sm:$0xf0]  ;;  %v5458_v18 = vor.u32 %v6080_v1, %v5457_v0 }
 0x2e0   :  { %v3546_v48 = vpop.f32.mrf.mxu0  ;;  %v3559_v49 = vpop.f32.mrf.mxu1  ;;  %v4507_v1 = vld [vmem:[%s9651_s3 + $0xa8] sm:$0xf0] }
 0x2e1   :  { %v1480_v23 = vld [vmem:[#allocation3 + $0x11] sm:$0x3]  ;;  %v3547_v53 = vadd.f32 %v3546_v48, %v1863_v43  ;;  %v5474_v43 = vor.u32 %v6084_v26, %v5473_v25  ;;  %v1506_v48 = vpop.permute.xlu1 %1505 }
 0x2e2   :  { %v1481_v3 = vsel %vm1479_vm5, %v1475_v54, %v1480_v23  ;;  %3760 = vmatpush.bf16.msrb.mxu1 %v5554_v30  ;;  %3773 = vmatpush.bf16.msrb.mxu2 %v5618_v44  ;;  %v8468_v44 = vld [vmem:[#allocation1 + $0x3f] sm:$0xff]  ;;  %v6096_v54 = vld [vmem:[%s9651_s3 + $0x894] sm:$0xf0]  ;;  %v5585_v23 = vld [vmem:[%s9651_s3 + $0x910] sm:$0xf]  ;;  %v1507_v7 = vrot.slane %v1506_v48, 7 }
 0x2e3   :  { %1482 = vst [vmem:[#allocation3 + $0x11] sm:$0x3] %v1481_v3  ;;  %v3560_v4 = vadd.f32 %v3559_v49, %v3547_v53  ;;  %3786 = vmatpush.bf16.msrb.mxu3 %v5682_v36  ;;  %3747 = vmatpush.bf16.msrb.mxu0 %v5490_v17  ;;  %v6082_v36 = vld [vmem:[%s9651_s3 + $0x824] sm:$0xf0]  ;;  %v5658_v53 = vor.u32 %v6130_v34, %v5657_v14  ;;  %v5649_v3 = vld [vmem:[%s9651_s3 + $0x990] sm:$0xf]  ;;  %vm8595_vm5 = vmand %vm975_vm11, %vm1008_vm12 }
 0x2e4   :  { %v5522_v2 = vor.u32 %v6096_v54, %v5521_v47  ;;  %v4547_v34 = vld [vmem:[%s9651_s3 + $0xf8] sm:$0xf0]  ;;  %v5642_v47 = vor.u32 %v6126_v56, %v5641_v22  ;;  %v5831_v22 = vld [vmem:[%s9651_s3 + $0x54] sm:$0xf]  ;;  %vm1530_vm12 = vmor %vm8595_vm5, %vm8589_vm1 }
 0x2e5   :  { %v4550_v54 = vor.u32 %v5851_v32, %v4547_v34  ;;  %v4467_v56 = vld [vmem:[%s9651_s3 + $0x58] sm:$0xf0]  ;;  %v5829_v34 = vld [vmem:[%s9651_s3 + $0x44] sm:$0xf] }
 0x2e6   :  { %3761 = vmatpush.bf16.msrb.mxu1 %v5546_v5  ;;  %3774 = vmatpush.bf16.msrb.mxu2 %v5610_v61  ;;  %v6128_v5 = vld [vmem:[%s9651_s3 + $0x994] sm:$0xf0]  ;;  %v5466_v61 = vor.u32 %v6082_v36, %v5465_v45  ;;  %v6078_v45 = vld [vmem:[%s9651_s3 + $0x804] sm:$0xf0] }
 0x2e7   :  { %3787 = vmatpush.bf16.msrb.mxu3 %v5674_v6  ;;  %v3572_v19 = vpop.f32.mrf.mxu2  ;;  %v3585_v35 = vpop.f32.mrf.mxu3  ;;  %3748 = vmatpush.bf16.msrb.mxu0 %v5482_v9  ;;  %v5513_v6 = vld [vmem:[%s9651_s3 + $0x880] sm:$0xf]  ;;  %v5650_v20 = vor.u32 %v6128_v5, %v5649_v3 }
 0x2e8   :  { %v3573_v10 = vadd.f32 %v3572_v19, %v3560_v4  ;;  %v3548_v29 = vpop.f32.mrf.mxu0  ;;  %v3561_v30 = vpop.f32.mrf.mxu1  ;;  %3701 = vmatmul.bf16.vlgmr.msra.gmra.mxu0 %v8460_v39  ;;  %3714 = vmatmul.bf16.vlgmr.msra.gmra.mxu1 %v8462_v24  ;;  %v5586_v4 = vor.u32 %v6112_v57, %v5585_v23  ;;  %v5867_v19 = vld [vmem:[%s9651_s3 + $0x174] sm:$0xf]  ;;  %v4539_v57 = vld [vmem:[%s9651_s3 + $0xe8] sm:$0xf0] }
 0x2e9   :  { %3727 = vmatmul.bf16.vlgmr.msra.gmra.mxu2 %v8464_v41  ;;  %3740 = vmatmul.bf16.vlgmr.msra.gmra.mxu3 %v8468_v44  ;;  %v5833_v29 = vld [vmem:[%s9651_s3 + $0x64] sm:$0xf]  ;;  %v5449_v30 = vld [vmem:[%s9651_s3 + $0x800] sm:$0xf] }
 0x2ea   :  { %v1495_v17 = vld [vmem:[#allocation3 + $0x12] sm:$0x1]  ;;  %v3586_v49 = vadd.f32 %v3585_v35, %v3573_v10  ;;  %3762 = vmatpush.bf16.msrb.mxu1 %v5538_v28  ;;  %3775 = vmatpush.bf16.msrb.mxu2 %v5602_v31  ;;  %v5835_v28 = vld [vmem:[%s9651_s3 + $0x74] sm:$0xf]  ;;  %v4483_v31 = vld [vmem:[%s9651_s3 + $0x78] sm:$0xf0]  ;;  %v5578_v10 = vor.u32 %v6110_v21, %v5577_v12  ;;  %v5450_v3 = vor.u32 %v6078_v45, %v5449_v30 }
 0x2eb   :  { %v1496_v55 = vsel %vm8414_vm14, %v1492_v46, %v1495_v17  ;;  %3788 = vmatpush.bf16.msrb.mxu3 %v5666_v42  ;;  %3749 = vmatpush.bf16.msrb.mxu0 %v5474_v43  ;;  %v4611_v35 = vld [vmem:[%s9651_s3 + $0x178] sm:$0xf0]  ;;  %v1509_v42 = vsel %vm1508_vm3, %v1507_v7, %v1506_v48  ;;  %v5514_v43 = vor.u32 %v6094_v62, %v5513_v6  ;;  %v5713_v48 = vld [vmem:[%s9651_s3 + $0xa10] sm:$0xf]  ;;  %v5705_v6 = vld [vmem:[%s9651_s3 + $0xa00] sm:$0xf] }
 0x2ec   :  { %1497 = vst [vmem:[#allocation3 + $0x12] sm:$0x1] %v1496_v55  ;;  %v4486_v17 = vor.u32 %v5835_v28, %v4483_v31  ;;  %v4614_v23 = vor.u32 %v5867_v19, %v4611_v35  ;;  %v4475_v55 = vld [vmem:[%s9651_s3 + $0x68] sm:$0xf0]  ;;  %v6142_v62 = vld [vmem:[%s9651_s3 + $0xa04] sm:$0xf0]  ;;  %v4606_v21 = vor.u32 %v5865_v16, %v4603_v40 }
 0x2ed   :  { %v4595_v28 = vld [vmem:[%s9651_s3 + $0x158] sm:$0xf0]  ;;  %v5706_v32 = vor.u32 %v6142_v62, %v5705_v6  ;;  %v4523_v45 = vld [vmem:[%s9651_s3 + $0xc8] sm:$0xf0]  ;;  %v5825_v40 = vld [vmem:[%s9651_s3 + $0x24] sm:$0xf] }
 0x2ee   :  { %3763 = vmatpush.bf16.msrb.mxu1 %v5530_v51  ;;  %3776 = vmatpush.bf16.msrb.mxu2 %v5594_v52  ;;  %v1524_v51 = vpop.permute.xlu2 %1523  ;;  %v5823_v62 = vld [vmem:[%s9651_s3 + $0x14] sm:$0xf] }
 0x2ef   :  { %3789 = vmatpush.bf16.msrb.mxu3 %v5658_v53  ;;  %v3574_v9 = vpop.f32.mrf.mxu2  ;;  %v3587_v13 = vpop.f32.mrf.mxu3  ;;  %3750 = vmatpush.bf16.msrb.mxu0 %v5466_v61  ;;  %v5849_v53 = vld [vmem:[%s9651_s3 + $0xe4] sm:$0xf]  ;;  %v1525_v0 = vrot.slane %v1524_v51, 1 }
 0x2f0   :  { %v3598_v25 = vpop.f32.mrf.mxu0  ;;  %v3611_v26 = vpop.f32.mrf.mxu1 }
 0x2f1   :  { %v3599_v14 = vadd.f32 %v3598_v25, %v3586_v49  ;;  %v6144_v49 = vld [vmem:[%s9651_s3 + $0xa14] sm:$0xf0]  ;;  %v4531_v25 = vld [vmem:[%s9651_s3 + $0xd8] sm:$0xf0]  ;;  %v1526_v19 = vsel %vm947_vm6, %v1524_v51, %v1525_v0  ;;  %v5841_v0 = vld [vmem:[%s9651_s3 + $0xa4] sm:$0xf] }
 0x2f2   :  { %3764 = vmatpush.bf16.msrb.mxu1 %v5522_v2  ;;  %3777 = vmatpush.bf16.msrb.mxu2 %v5586_v4  ;;  %v5714_v61 = vor.u32 %v6144_v49, %v5713_v48  ;;  %v4478_v4 = vor.u32 %v5833_v29, %v4475_v55  ;;  %v5845_v29 = vld [vmem:[%s9651_s3 + $0xc4] sm:$0xf]  ;;  %v4515_v55 = vld [vmem:[%s9651_s3 + $0xb8] sm:$0xf0]  ;;  %vm4245_vm6 = vcmask 41984  }
 0x2f3   :  { %v1514_v36 = vld [vmem:[#allocation3 + $0x12] sm:$0x3]  ;;  %v3612_v46 = vadd.f32 %v3611_v26, %v3599_v14  ;;  %3790 = vmatpush.bf16.msrb.mxu3 %v5650_v20  ;;  %3751 = vmatpush.bf16.msrb.mxu0 %v5458_v18  ;;  %v4542_v20 = vor.u32 %v5849_v53, %v4539_v57  ;;  %v5847_v18 = vld [vmem:[%s9651_s3 + $0xd4] sm:$0xf]  ;;  %v4470_v14 = vor.u32 %v5831_v22, %v4467_v56  ;;  %v4579_v57 = vld [vmem:[%s9651_s3 + $0x138] sm:$0xf0] }
 0x2f4   :  { %v1515_v52 = vsel %vm1513_vm15, %v1509_v42, %v1514_v36  ;;  %v5863_v26 = vld [vmem:[%s9651_s3 + $0x154] sm:$0xf]  ;;  %v4534_v42 = vor.u32 %v5847_v18, %v4531_v25  ;;  %v5861_v36 = vld [vmem:[%s9651_s3 + $0x144] sm:$0xf]  ;;  %v4526_v49 = vor.u32 %v5845_v29, %v4523_v45  ;;  %v4563_v56 = vld [vmem:[%s9651_s3 + $0x118] sm:$0xf0] }
 0x2f5   :  { %1516 = vst [vmem:[#allocation3 + $0x12] sm:$0x3] %v1515_v52  ;;  %v5827_v52 = vld [vmem:[%s9651_s3 + $0x34] sm:$0xf]  ;;  %v4675_v25 = vld [vmem:[%s9651_s3 + $0x1f8] sm:$0xf0] }
 0x2f6   :  { %3765 = vmatpush.bf16.msrb.mxu1 %v5514_v43  ;;  %3778 = vmatpush.bf16.msrb.mxu2 %v5578_v10  ;;  %v4598_v43 = vor.u32 %v5863_v26, %v4595_v28  ;;  %v4459_v10 = vld [vmem:[%s9651_s3 + $0x48] sm:$0xf0]  ;;  %v5859_v53 = vld [vmem:[%s9651_s3 + $0x134] sm:$0xf]  ;;  %v5821_v26 = vld [vmem:[%s9651_s3 + $0x4] sm:$0xf] }
 0x2f7   :  { %3791 = vmatpush.bf16.msrb.mxu3 %v5642_v47  ;;  %v3624_v7 = vpop.f32.mrf.mxu2  ;;  %v3637_v2 = vpop.f32.mrf.mxu3  ;;  %3752 = vmatpush.bf16.msrb.mxu0 %v5450_v3  ;;  %v4462_v48 = vor.u32 %v5829_v34, %v4459_v10  ;;  %v4582_v5 = vor.u32 %v5859_v53, %v4579_v57  ;;  %v5855_v22 = vld [vmem:[%s9651_s3 + $0x114] sm:$0xf]  ;;  %v4427_v28 = vld [vmem:[%s9651_s3 + $0x8] sm:$0xf0]  ;;  %v5881_v10 = vld [vmem:[%s9651_s3 + $0x1e4] sm:$0xf] }
 0x2f8   :  { %v3625_v12 = vadd.f32 %v3624_v7, %v3612_v46  ;;  %v3600_v9 = vpop.f32.mrf.mxu0  ;;  %v3613_v13 = vpop.f32.mrf.mxu1  ;;  %v4587_v46 = vld [vmem:[%s9651_s3 + $0x148] sm:$0xf0]  ;;  %v5883_v18 = vld [vmem:[%s9651_s3 + $0x1f4] sm:$0xf] }
 0x2f9   :  { %v4590_v51 = vor.u32 %v5861_v36, %v4587_v46  ;;  %v4435_v13 = vld [vmem:[%s9651_s3 + $0x18] sm:$0xf0]  ;;  %v4491_v34 = vld [vmem:[%s9651_s3 + $0x88] sm:$0xf0] }
 0x2fa   :  { %3810 = vmatpush.bf16.msra.mxu1 %v4486_v17  ;;  %3823 = vmatpush.bf16.msra.mxu2 %v4550_v54  ;;  %v8627_v31 = vadd.f32 %v3637_v2, %v3625_v12  ;;  %v4451_v54 = vld [vmem:[%s9651_s3 + $0x38] sm:$0xf0]  ;;  %v5857_v2 = vld [vmem:[%s9651_s3 + $0x124] sm:$0xf]  ;;  %v4510_v12 = vor.u32 %v5841_v0, %v4507_v1  ;;  %v4667_v29 = vld [vmem:[%s9651_s3 + $0x1e8] sm:$0xf0] }
 0x2fb   :  { %3836 = vmatpush.bf16.msra.mxu3 %v4614_v23  ;;  %3803 = vmatpush.bf16.msra.mxu0 %v5714_v61  ;;  %v5843_v23 = vld [vmem:[%s9651_s3 + $0xb4] sm:$0xf]  ;;  %v4454_v16 = vor.u32 %v5827_v52, %v4451_v54  ;;  %v4443_v61 = vld [vmem:[%s9651_s3 + $0x28] sm:$0xf0]  ;;  %v4803_v52 = vld [vmem:[%s9651_s3 + $0x2f8] sm:$0xf0]  ;;  %v4670_v57 = vor.u32 %v5881_v10, %v4667_v29 }
 0x2fc   :  { %v1531_v35 = vld [vmem:[#allocation3 + $0x13] sm:$0x3]  ;;  %v4518_v3 = vor.u32 %v5843_v23, %v4515_v55  ;;  %v4446_v6 = vor.u32 %v5825_v40, %v4443_v61  ;;  %v5931_v54 = vld [vmem:[%s9651_s3 + $0x374] sm:$0xf]  ;;  %v5897_v0 = vld [vmem:[%s9651_s3 + $0x264] sm:$0xf] }
 0x2fd   :  { %v1532_v30 = vsel %vm1530_vm12, %v1526_v19, %v1531_v35  ;;  %v5853_v19 = vld [vmem:[%s9651_s3 + $0x104] sm:$0xf]  ;;  %v4555_v35 = vld [vmem:[%s9651_s3 + $0x108] sm:$0xf0]  ;;  %v4867_v23 = vld [vmem:[%s9651_s3 + $0x378] sm:$0xf0] }
 0x2fe   :  { %3811 = vmatpush.bf16.msra.mxu1 %v4478_v4  ;;  %3824 = vmatpush.bf16.msra.mxu2 %v4542_v20  ;;  %1533 = vst [vmem:[#allocation3 + $0x13] sm:$0x3] %v1532_v30  ;;  %v4571_v4 = vld [vmem:[%s9651_s3 + $0x128] sm:$0xf0]  ;;  %v5839_v20 = vld [vmem:[%s9651_s3 + $0x94] sm:$0xf]  ;;  %v4558_v53 = vor.u32 %v5853_v19, %v4555_v35  ;;  %v4870_v61 = vor.u32 %v5931_v54, %v4867_v23 }
 0x2ff   :  { %3837 = vmatpush.bf16.msra.mxu3 %v4606_v21  ;;  %3804 = vmatpush.bf16.msra.mxu0 %v5706_v32  ;;  %v3626_v47 = vpop.f32.mrf.mxu2  ;;  %v3639_v17 = vpop.f32.mrf.mxu3  ;;  %v4574_v9 = vor.u32 %v5857_v2, %v4571_v4  ;;  %v4499_v21 = vld [vmem:[%s9651_s3 + $0x98] sm:$0xf0]  ;;  %v4438_v32 = vor.u32 %v5823_v62, %v4435_v13  ;;  %v5899_v30 = vld [vmem:[%s9651_s3 + $0x274] sm:$0xf]  ;;  %v4731_v1 = vld [vmem:[%s9651_s3 + $0x268] sm:$0xf0] }
 0x300   :  { %v4678_v47 = vor.u32 %v5883_v18, %v4675_v25  ;;  %v5879_v40 = vld [vmem:[%s9651_s3 + $0x1d4] sm:$0xf]  ;;  %v4795_v2 = vld [vmem:[%s9651_s3 + $0x2e8] sm:$0xf0]  ;;  %v5929_v4 = vld [vmem:[%s9651_s3 + $0x364] sm:$0xf] }
 0x301   :  { %v4651_v13 = vld [vmem:[%s9651_s3 + $0x1c8] sm:$0xf0]  ;;  %v5911_v18 = vld [vmem:[%s9651_s3 + $0x2d4] sm:$0xf]  ;;  %v4787_v25 = vld [vmem:[%s9651_s3 + $0x2d8] sm:$0xf0] }
 0x302   :  { %3812 = vmatpush.bf16.msra.mxu1 %v4470_v14  ;;  %3825 = vmatpush.bf16.msra.mxu2 %v4534_v42  ;;  %v5837_v14 = vld [vmem:[%s9651_s3 + $0x84] sm:$0xf]  ;;  %v4502_v42 = vor.u32 %v5839_v20, %v4499_v21  ;;  %v5875_v35 = vld [vmem:[%s9651_s3 + $0x1b4] sm:$0xf]  ;;  %v4715_v10 = vld [vmem:[%s9651_s3 + $0x248] sm:$0xf0] }
 0x303   :  { %3838 = vmatpush.bf16.msra.mxu3 %v4598_v43  ;;  %v4566_v43 = vor.u32 %v5855_v22, %v4563_v56  ;;  %v4494_v55 = vor.u32 %v5837_v14, %v4491_v34  ;;  %v5895_v22 = vld [vmem:[%s9651_s3 + $0x254] sm:$0xf]  ;;  %v4723_v56 = vld [vmem:[%s9651_s3 + $0x258] sm:$0xf0]  ;;  %v4790_v34 = vor.u32 %v5911_v18, %v4787_v25  ;;  %v5909_v29 = vld [vmem:[%s9651_s3 + $0x2c4] sm:$0xf] }
 0x304   :  { %v4726_v14 = vor.u32 %v5895_v22, %v4723_v56  ;;  %v4707_v23 = vld [vmem:[%s9651_s3 + $0x238] sm:$0xf0]  ;;  %v5903_v56 = vld [vmem:[%s9651_s3 + $0x294] sm:$0xf] }
 0x305   :  { %v1536_v7 = vld [vmem:[#allocation3 + $0x10] sm:$0x1f]  ;;  %v5919_v25 = vld [vmem:[%s9651_s3 + $0x314] sm:$0xf] }
 0x306   :  { %3813 = vmatpush.bf16.msra.mxu1 %v4462_v48  ;;  %3826 = vmatpush.bf16.msra.mxu2 %v4526_v49  ;;  %1888 = vst [vmem:[#allocation1] ss:$9 sm:$0xff] %v1536_v7  ;;  %v4739_v48 = vld [vmem:[%s9651_s3 + $0x278] sm:$0xf0]  ;;  %v5915_v49 = vld [vmem:[%s9651_s3 + $0x2f4] sm:$0xf] }
 0x307   :  { %3839 = vmatpush.bf16.msra.mxu3 %v4590_v51  ;;  %v4430_v51 = vor.u32 %v5821_v26, %v4427_v28  ;;  %v5913_v7 = vld [vmem:[%s9651_s3 + $0x2e4] sm:$0xf]  ;;  %v5927_v26 = vld [vmem:[%s9651_s3 + $0x354] sm:$0xf]  ;;  %v4851_v28 = vld [vmem:[%s9651_s3 + $0x358] sm:$0xf0] }
 0x308   :  { %v4798_v20 = vor.u32 %v5913_v7, %v4795_v2  ;;  %v4854_v19 = vor.u32 %v5927_v26, %v4851_v28  ;;  %v4763_v7 = vld [vmem:[%s9651_s3 + $0x2a8] sm:$0xf0]  ;;  %v5921_v2 = vld [vmem:[%s9651_s3 + $0x324] sm:$0xf]  ;;  %v4755_v18 = vld [vmem:[%s9651_s3 + $0x298] sm:$0xf0] }
 0x309   :  { %v4819_v26 = vld [vmem:[%s9651_s3 + $0x318] sm:$0xf0]  ;;  %v5947_v28 = vld [vmem:[%s9651_s3 + $0x3f4] sm:$0xf] }
 0x30a   :  { %3814 = vmatpush.bf16.msra.mxu1 %v4454_v16  ;;  %3827 = vmatpush.bf16.msra.mxu2 %v4518_v3  ;;  %v4742_v16 = vor.u32 %v5899_v30, %v4739_v48  ;;  %v4659_v3 = vld [vmem:[%s9651_s3 + $0x1d8] sm:$0xf0]  ;;  %v4779_v30 = vld [vmem:[%s9651_s3 + $0x2c8] sm:$0xf0] }
 0x30b   :  { %3840 = vmatpush.bf16.msra.mxu3 %v4582_v5  ;;  %v4806_v5 = vor.u32 %v5915_v49, %v4803_v52  ;;  %v4662_v62 = vor.u32 %v5879_v40, %v4659_v3  ;;  %v4782_v49 = vor.u32 %v5909_v29, %v4779_v30  ;;  %v5891_v52 = vld [vmem:[%s9651_s3 + $0x234] sm:$0xf]  ;;  %v4747_v30 = vld [vmem:[%s9651_s3 + $0x288] sm:$0xf0] }
 0x30c   :  { %v4710_v40 = vor.u32 %v5891_v52, %v4707_v23  ;;  %v5995_v23 = vld [vmem:[%s9651_s3 + $0x574] sm:$0xf] }
 0x30d   :  { %v1889_v45 = vld [vmem:[#allocation1] sm:$0xff]  ;;  %v1890_v36 = vld [vmem:[#allocation1 + $0x9] sm:$0xff]  ;;  %v1891_v46 = vld [vmem:[#allocation1 + $0x12] sm:$0xff] }
 0x30e   :  { %3815 = vmatpush.bf16.msra.mxu1 %v4446_v6  ;;  %3828 = vmatpush.bf16.msra.mxu2 %v4510_v12  ;;  %v1892_v17 = vld [vmem:[#allocation1 + $0x1b] sm:$0xff]  ;;  %v4859_v6 = vld [vmem:[%s9651_s3 + $0x368] sm:$0xf0]  ;;  %v4734_v12 = vor.u32 %v5897_v0, %v4731_v1  ;;  %v5905_v1 = vld [vmem:[%s9651_s3 + $0x2a4] sm:$0xf] }
 0x30f   :  { %3841 = vmatpush.bf16.msra.mxu3 %v4574_v9  ;;  %3753 = vmatmul.bf16.vlgmr.msrb.gmra.mxu0 %v1889_v45  ;;  %v5877_v9 = vld [vmem:[%s9651_s3 + $0x1c4] sm:$0xf]  ;;  %v4862_v21 = vor.u32 %v5929_v4, %v4859_v6  ;;  %v4699_v0 = vld [vmem:[%s9651_s3 + $0x228] sm:$0xf0] }
 0x310   :  { %3766 = vmatmul.bf16.vlgmr.msrb.gmra.mxu1 %v1890_v36  ;;  %3779 = vmatmul.bf16.vlgmr.msrb.gmra.mxu2 %v1891_v46  ;;  %v5925_v45 = vld [vmem:[%s9651_s3 + $0x344] sm:$0xf]  ;;  %v4843_v36 = vld [vmem:[%s9651_s3 + $0x348] sm:$0xf0] }
 0x311   :  { %3792 = vmatmul.bf16.vlgmr.msrb.gmra.mxu3 %v1892_v17  ;;  %3849 = vmatpush.bf16.msrb.mxu0 %v4678_v47  ;;  %v5873_v47 = vld [vmem:[%s9651_s3 + $0x1a4] sm:$0xf]  ;;  %v4846_v54 = vor.u32 %v5925_v45, %v4843_v36  ;;  %v4827_v4 = vld [vmem:[%s9651_s3 + $0x328] sm:$0xf0] }
 0x312   :  { %3816 = vmatpush.bf16.msra.mxu1 %v4438_v32  ;;  %3829 = vmatpush.bf16.msra.mxu2 %v4502_v42  ;;  %v4654_v32 = vor.u32 %v5877_v9, %v4651_v13  ;;  %v4643_v42 = vld [vmem:[%s9651_s3 + $0x1b8] sm:$0xf0]  ;;  %v1893_v17 = vld [vmem:[#allocation1 + $0x24] sm:$0xff]  ;;  %v4766_v9 = vor.u32 %v5905_v1, %v4763_v7  ;;  %v4619_v13 = vld [vmem:[%s9651_s3 + $0x188] sm:$0xf0]  ;;  %v4830_v22 = vor.u32 %v5921_v2, %v4827_v4 }
 0x313   :  { %3842 = vmatpush.bf16.msra.mxu3 %v4566_v43  ;;  %v5893_v43 = vld [vmem:[%s9651_s3 + $0x244] sm:$0xf]  ;;  %v4646_v46 = vor.u32 %v5875_v35, %v4643_v42  ;;  %v4683_v42 = vld [vmem:[%s9651_s3 + $0x208] sm:$0xf0] }
 0x314   :  { %v4718_v48 = vor.u32 %v5893_v43, %v4715_v10  ;;  %v5885_v35 = vld [vmem:[%s9651_s3 + $0x204] sm:$0xf]  ;;  %v4822_v10 = vor.u32 %v5919_v25, %v4819_v26  ;;  %v4811_v36 = vld [vmem:[%s9651_s3 + $0x308] sm:$0xf0] }
 0x315   :  { %3850 = vmatpush.bf16.msrb.mxu0 %v4670_v57  ;;  %v5923_v57 = vld [vmem:[%s9651_s3 + $0x334] sm:$0xf]  ;;  %v5901_v43 = vld [vmem:[%s9651_s3 + $0x284] sm:$0xf]  ;;  %v4686_v52 = vor.u32 %v5885_v35, %v4683_v42  ;;  %v5115_v1 = vld [vmem:[%s9651_s3 + $0x568] sm:$0xf0] }
 0x316   :  { %3817 = vmatpush.bf16.msra.mxu1 %v4430_v51  ;;  %3830 = vmatpush.bf16.msra.mxu2 %v4494_v55  ;;  %v4635_v51 = vld [vmem:[%s9651_s3 + $0x1a8] sm:$0xf0]  ;;  %v5907_v55 = vld [vmem:[%s9651_s3 + $0x2b4] sm:$0xf]  ;;  %v5917_v45 = vld [vmem:[%s9651_s3 + $0x304] sm:$0xf] }
 0x317   :  { %3843 = vmatpush.bf16.msra.mxu3 %v4558_v53  ;;  %v4771_v53 = vld [vmem:[%s9651_s3 + $0x2b8] sm:$0xf0]  ;;  %v5957_v26 = vld [vmem:[%s9651_s3 + $0x444] sm:$0xf]  ;;  %v5099_v35 = vld [vmem:[%s9651_s3 + $0x548] sm:$0xf0] }
 0x318   :  { %v4774_v3 = vor.u32 %v5907_v55, %v4771_v53  ;;  %v5123_v55 = vld [vmem:[%s9651_s3 + $0x578] sm:$0xf0]  ;;  %v4814_v53 = vor.u32 %v5917_v45, %v4811_v36  ;;  %v5955_v45 = vld [vmem:[%s9651_s3 + $0x434] sm:$0xf] }
 0x319   :  { %3851 = vmatpush.bf16.msrb.mxu0 %v4662_v62  ;;  %v5869_v62 = vld [vmem:[%s9651_s3 + $0x184] sm:$0xf] }
 0x31a   :  { %3862 = vmatpush.bf16.msrb.mxu1 %v4742_v16  ;;  %3875 = vmatpush.bf16.msrb.mxu2 %v4806_v5  ;;  %v4638_v16 = vor.u32 %v5873_v47, %v4635_v51  ;;  %v4627_v5 = vld [vmem:[%s9651_s3 + $0x198] sm:$0xf0]  ;;  %v4923_v47 = vld [vmem:[%s9651_s3 + $0x3e8] sm:$0xf0] }
 0x31b   :  { %3888 = vmatpush.bf16.msrb.mxu3 %v4870_v61  ;;  %v5889_v61 = vld [vmem:[%s9651_s3 + $0x224] sm:$0xf]  ;;  %v5059_v51 = vld [vmem:[%s9651_s3 + $0x4f8] sm:$0xf0] }
 0x31d   :  { %3852 = vmatpush.bf16.msrb.mxu0 %v4654_v32  ;;  %v4931_v32 = vld [vmem:[%s9651_s3 + $0x3f8] sm:$0xf0] }
 0x31e   :  { %3863 = vmatpush.bf16.msrb.mxu1 %v4734_v12  ;;  %3876 = vmatpush.bf16.msrb.mxu2 %v4798_v20  ;;  %v4702_v12 = vor.u32 %v5889_v61, %v4699_v0  ;;  %v5887_v20 = vld [vmem:[%s9651_s3 + $0x214] sm:$0xf]  ;;  %v4934_v29 = vor.u32 %v5947_v28, %v4931_v32  ;;  %v4987_v61 = vld [vmem:[%s9651_s3 + $0x468] sm:$0xf0]  ;;  %v5993_v0 = vld [vmem:[%s9651_s3 + $0x564] sm:$0xf] }
 0x31f   :  { %3889 = vmatpush.bf16.msrb.mxu3 %v4862_v21  ;;  %5719 = vmatmul.msk.bf16.vlgmr.msra.gmra.mxu0 %vm3534_vm0, %v1893_v17  ;;  %v4691_v21 = vld [vmem:[%s9651_s3 + $0x218] sm:$0xf0]  ;;  %v5963_v17 = vld [vmem:[%s9651_s3 + $0x474] sm:$0xf]  ;;  %v4971_v32 = vld [vmem:[%s9651_s3 + $0x448] sm:$0xf0] }
 0x320   :  { %3818 = vmatmul.bf16.vlgmr.msra.gmra.mxu1 %v7466_v33  ;;  %3831 = vmatmul.bf16.vlgmr.msra.gmra.mxu2 %v7468_v63  ;;  %v4835_v33 = vld [vmem:[%s9651_s3 + $0x338] sm:$0xf0]  ;;  %v5871_v63 = vld [vmem:[%s9651_s3 + $0x194] sm:$0xf] }
 0x321   :  { %3844 = vmatmul.bf16.vlgmr.msra.gmra.mxu3 %v7473_v37  ;;  %3853 = vmatpush.bf16.msrb.mxu0 %v4646_v46  ;;  %v4838_v37 = vor.u32 %v5923_v57, %v4835_v33  ;;  %v4630_v6 = vor.u32 %v5871_v63, %v4627_v5  ;;  %v5945_v46 = vld [vmem:[%s9651_s3 + $0x3e4] sm:$0xf]  ;;  %v5126_v5 = vor.u32 %v5995_v23, %v5123_v55  ;;  %v5935_v23 = vld [vmem:[%s9651_s3 + $0x394] sm:$0xf]  ;;  %v4883_v55 = vld [vmem:[%s9651_s3 + $0x398] sm:$0xf0] }
 0x322   :  { %3864 = vmatpush.bf16.msrb.mxu1 %v4726_v14  ;;  %3877 = vmatpush.bf16.msrb.mxu2 %v4790_v34  ;;  %v4622_v14 = vor.u32 %v5869_v62, %v4619_v13  ;;  %v4694_v34 = vor.u32 %v5887_v20, %v4691_v21  ;;  %v4926_v57 = vor.u32 %v5945_v46, %v4923_v47  ;;  %v5961_v63 = vld [vmem:[%s9651_s3 + $0x464] sm:$0xf]  ;;  %v4907_v62 = vld [vmem:[%s9651_s3 + $0x3c8] sm:$0xf0]  ;;  %v4979_v13 = vld [vmem:[%s9651_s3 + $0x458] sm:$0xf0] }
 0x323   :  { %3890 = vmatpush.bf16.msrb.mxu3 %v4854_v19  ;;  %v4758_v19 = vor.u32 %v5903_v56, %v4755_v18  ;;  %v4990_v2 = vor.u32 %v5961_v63, %v4987_v61  ;;  %v5975_v20 = vld [vmem:[%s9651_s3 + $0x4d4] sm:$0xf]  ;;  %v5043_v21 = vld [vmem:[%s9651_s3 + $0x4d8] sm:$0xf0]  ;;  %v5083_v63 = vld [vmem:[%s9651_s3 + $0x528] sm:$0xf0] }
 0x324   :  { %v5046_v25 = vor.u32 %v5975_v20, %v5043_v21  ;;  %v4963_v46 = vld [vmem:[%s9651_s3 + $0x438] sm:$0xf0]  ;;  %v5971_v47 = vld [vmem:[%s9651_s3 + $0x4b4] sm:$0xf]  ;;  %v5933_v61 = vld [vmem:[%s9651_s3 + $0x384] sm:$0xf] }
 0x325   :  { %3854 = vmatpush.bf16.msrb.mxu0 %v4638_v16 }
 0x326   :  { %3865 = vmatpush.bf16.msrb.mxu1 %v4718_v48  ;;  %3878 = vmatpush.bf16.msrb.mxu2 %v4782_v49  ;;  %v4995_v48 = vld [vmem:[%s9651_s3 + $0x478] sm:$0xf0]  ;;  %v5979_v49 = vld [vmem:[%s9651_s3 + $0x4f4] sm:$0xf] }
 0x327   :  { %3891 = vmatpush.bf16.msrb.mxu3 %v4846_v54  ;;  %v4750_v54 = vor.u32 %v5901_v43, %v4747_v30  ;;  %v4998_v33 = vor.u32 %v5963_v17, %v4995_v48  ;;  %v5062_v16 = vor.u32 %v5979_v49, %v5059_v51  ;;  %v4974_v43 = vor.u32 %v5957_v26, %v4971_v32  ;;  %v4891_v30 = vld [vmem:[%s9651_s3 + $0x3a8] sm:$0xf0]  ;;  %v5027_v17 = vld [vmem:[%s9651_s3 + $0x4b8] sm:$0xf0]  ;;  %v5987_v48 = vld [vmem:[%s9651_s3 + $0x534] sm:$0xf] }
 0x328   :  { %v5091_v49 = vld [vmem:[%s9651_s3 + $0x538] sm:$0xf0]  ;;  %v5981_v26 = vld [vmem:[%s9651_s3 + $0x504] sm:$0xf] }
 0x329   :  { %3855 = vmatpush.bf16.msrb.mxu0 %v4630_v6  ;;  %v5941_v6 = vld [vmem:[%s9651_s3 + $0x3c4] sm:$0xf] }
 0x32a   :  { %3866 = vmatpush.bf16.msrb.mxu1 %v4710_v40  ;;  %3879 = vmatpush.bf16.msrb.mxu2 %v4774_v3  ;;  %v5943_v40 = vld [vmem:[%s9651_s3 + $0x3d4] sm:$0xf]  ;;  %v4915_v3 = vld [vmem:[%s9651_s3 + $0x3d8] sm:$0xf0]  ;;  %v4910_v56 = vor.u32 %v5941_v6, %v4907_v62  ;;  %v6009_v32 = vld [vmem:[%s9651_s3 + $0x5e4] sm:$0xf] }
 0x32b   :  { %3892 = vmatpush.bf16.msrb.mxu3 %v4838_v37  ;;  %v5051_v37 = vld [vmem:[%s9651_s3 + $0x4e8] sm:$0xf0]  ;;  %v4918_v7 = vor.u32 %v5943_v40, %v4915_v3  ;;  %v5985_v3 = vld [vmem:[%s9651_s3 + $0x524] sm:$0xf]  ;;  %v5011_v6 = vld [vmem:[%s9651_s3 + $0x498] sm:$0xf0] }
 0x32c   :  { %v5019_v40 = vld [vmem:[%s9651_s3 + $0x4a8] sm:$0xf0]  ;;  %v5983_v62 = vld [vmem:[%s9651_s3 + $0x514] sm:$0xf] }
 0x32d   :  { %3856 = vmatpush.bf16.msrb.mxu0 %v4622_v14  ;;  %v5973_v14 = vld [vmem:[%s9651_s3 + $0x4c4] sm:$0xf] }
 0x32e   :  { %3867 = vmatpush.bf16.msrb.mxu1 %v4702_v12  ;;  %3880 = vmatpush.bf16.msrb.mxu2 %v4766_v9  ;;  %v5959_v12 = vld [vmem:[%s9651_s3 + $0x454] sm:$0xf]  ;;  %v5118_v9 = vor.u32 %v5993_v0, %v5115_v1  ;;  %v4875_v0 = vld [vmem:[%s9651_s3 + $0x388] sm:$0xf0] }
 0x32f   :  { %3893 = vmatpush.bf16.msrb.mxu3 %v4830_v22  ;;  %v5107_v22 = vld [vmem:[%s9651_s3 + $0x558] sm:$0xf0]  ;;  %v4982_v18 = vor.u32 %v5959_v12, %v4979_v13  ;;  %v5951_v1 = vld [vmem:[%s9651_s3 + $0x414] sm:$0xf]  ;;  %v4878_v20 = vor.u32 %v5933_v61, %v4875_v0 }
 0x330   :  { %3857 = vmatmul.bf16.vlgmr.msrb.gmra.mxu0 %v7475_v38  ;;  %v5977_v38 = vld [vmem:[%s9651_s3 + $0x4e4] sm:$0xf]  ;;  %v5075_v12 = vld [vmem:[%s9651_s3 + $0x518] sm:$0xf0]  ;;  %v6039_v61 = vld [vmem:[%s9651_s3 + $0x6d4] sm:$0xf] }
 0x331   :  { %3901 = vmatpush.bf16.msra.mxu0 %v4934_v29  ;;  %v5054_v4 = vor.u32 %v5977_v38, %v5051_v37  ;;  %v5937_v29 = vld [vmem:[%s9651_s3 + $0x3a4] sm:$0xf]  ;;  %v5187_v13 = vld [vmem:[%s9651_s3 + $0x5f8] sm:$0xf0] }
 0x332   :  { %3868 = vmatpush.bf16.msrb.mxu1 %v4694_v34  ;;  %3881 = vmatpush.bf16.msrb.mxu2 %v4758_v19  ;;  %v5035_v34 = vld [vmem:[%s9651_s3 + $0x4c8] sm:$0xf0]  ;;  %v5989_v19 = vld [vmem:[%s9651_s3 + $0x544] sm:$0xf]  ;;  %v4894_v51 = vor.u32 %v5937_v29, %v4891_v30  ;;  %v6059_v29 = vld [vmem:[%s9651_s3 + $0x774] sm:$0xf] }
 0x333   :  { %3894 = vmatpush.bf16.msrb.mxu3 %v4822_v10  ;;  %v5038_v10 = vor.u32 %v5973_v14, %v5035_v34  ;;  %v5102_v36 = vor.u32 %v5989_v19, %v5099_v35  ;;  %v5179_v14 = vld [vmem:[%s9651_s3 + $0x5e8] sm:$0xf0]  ;;  %v6027_v34 = vld [vmem:[%s9651_s3 + $0x674] sm:$0xf]  ;;  %v5251_v19 = vld [vmem:[%s9651_s3 + $0x678] sm:$0xf0] }
 0x334   :  { %v6043_v35 = vld [vmem:[%s9651_s3 + $0x6f4] sm:$0xf]  ;;  %v5379_v30 = vld [vmem:[%s9651_s3 + $0x778] sm:$0xf0] }
 0x335   :  { %3902 = vmatpush.bf16.msra.mxu0 %v4926_v57  ;;  %v5094_v57 = vor.u32 %v5987_v48, %v5091_v49  ;;  %v5171_v48 = vld [vmem:[%s9651_s3 + $0x5d8] sm:$0xf0]  ;;  %v6025_v49 = vld [vmem:[%s9651_s3 + $0x664] sm:$0xf] }
 0x336   :  { %3869 = vmatpush.bf16.msrb.mxu1 %v4686_v52  ;;  %3882 = vmatpush.bf16.msrb.mxu2 %v4750_v54  ;;  %v4966_v52 = vor.u32 %v5955_v45, %v4963_v46  ;;  %v5030_v54 = vor.u32 %v5971_v47, %v5027_v17  ;;  %v5254_v46 = vor.u32 %v6027_v34, %v5251_v19  ;;  %v6007_v17 = vld [vmem:[%s9651_s3 + $0x5d4] sm:$0xf] }
 0x337   :  { %3895 = vmatpush.bf16.msrb.mxu3 %v4814_v53  ;;  %v5953_v53 = vld [vmem:[%s9651_s3 + $0x424] sm:$0xf]  ;;  %v6051_v19 = vld [vmem:[%s9651_s3 + $0x734] sm:$0xf] }
 0x339   :  { %3870 = vmatmul.bf16.vlgmr.msrb.gmra.mxu1 %v7520_v27  ;;  %3883 = vmatmul.bf16.vlgmr.msrb.gmra.mxu2 %v7522_v58  ;;  %v5991_v27 = vld [vmem:[%s9651_s3 + $0x554] sm:$0xf] }
 0x33a   :  { %3914 = vmatpush.bf16.msra.mxu1 %v4998_v33  ;;  %3927 = vmatpush.bf16.msra.mxu2 %v5062_v16  ;;  %v5939_v58 = vld [vmem:[%s9651_s3 + $0x3b4] sm:$0xf]  ;;  %v5110_v28 = vor.u32 %v5991_v27, %v5107_v22  ;;  %v4955_v33 = vld [vmem:[%s9651_s3 + $0x428] sm:$0xf0]  ;;  %v5969_v16 = vld [vmem:[%s9651_s3 + $0x4a4] sm:$0xf] }
 0x33b   :  { %3940 = vmatpush.bf16.msra.mxu3 %v5126_v5  ;;  %3903 = vmatpush.bf16.msra.mxu0 %v4918_v7  ;;  %v4886_v5 = vor.u32 %v5935_v23, %v4883_v55  ;;  %v4958_v38 = vor.u32 %v5953_v53, %v4955_v33  ;;  %v5022_v37 = vor.u32 %v5969_v16, %v5019_v40  ;;  %v4947_v7 = vld [vmem:[%s9651_s3 + $0x418] sm:$0xf0]  ;;  %v5949_v22 = vld [vmem:[%s9651_s3 + $0x404] sm:$0xf]  ;;  %v5371_v55 = vld [vmem:[%s9651_s3 + $0x768] sm:$0xf0] }
 0x33c   :  { %3896 = vmatmul.bf16.vlgmr.msrb.gmra.mxu3 %v7528_v59  ;;  %v4899_v59 = vld [vmem:[%s9651_s3 + $0x3b8] sm:$0xf0]  ;;  %v4950_v21 = vor.u32 %v5951_v1, %v4947_v7  ;;  %v6057_v23 = vld [vmem:[%s9651_s3 + $0x764] sm:$0xf]  ;;  %v5174_v53 = vor.u32 %v6007_v17, %v5171_v48  ;;  %v5163_v40 = vld [vmem:[%s9651_s3 + $0x5c8] sm:$0xf0] }
 0x33d   :  { %v4902_v42 = vor.u32 %v5939_v58, %v4899_v59  ;;  %v5003_v59 = vld [vmem:[%s9651_s3 + $0x488] sm:$0xf0]  ;;  %v6005_v16 = vld [vmem:[%s9651_s3 + $0x5c4] sm:$0xf] }
 0x33e   :  { %3915 = vmatpush.bf16.msra.mxu1 %v4990_v2  ;;  %3928 = vmatpush.bf16.msra.mxu2 %v5054_v4  ;;  %v5086_v2 = vor.u32 %v5985_v3, %v5083_v63  ;;  %v5967_v4 = vld [vmem:[%s9651_s3 + $0x494] sm:$0xf]  ;;  %v5374_v63 = vor.u32 %v6057_v23, %v5371_v55  ;;  %v5166_v0 = vor.u32 %v6005_v16, %v5163_v40  ;;  %v5211_v17 = vld [vmem:[%s9651_s3 + $0x628] sm:$0xf0]  ;;  %v6033_v48 = vld [vmem:[%s9651_s3 + $0x6a4] sm:$0xf] }
 0x33f   :  { %3941 = vmatpush.bf16.msra.mxu3 %v5118_v9  ;;  %3904 = vmatpush.bf16.msra.mxu0 %v4910_v56  ;;  %v6011_v9 = vld [vmem:[%s9651_s3 + $0x5f4] sm:$0xf]  ;;  %v5014_v27 = vor.u32 %v5967_v4, %v5011_v6  ;;  %v4939_v56 = vld [vmem:[%s9651_s3 + $0x408] sm:$0xf0]  ;;  %v5155_v4 = vld [vmem:[%s9651_s3 + $0x5b8] sm:$0xf0] }
 0x340   :  { %v5190_v58 = vor.u32 %v6011_v9, %v5187_v13  ;;  %v6023_v3 = vld [vmem:[%s9651_s3 + $0x654] sm:$0xf]  ;;  %v6021_v6 = vld [vmem:[%s9651_s3 + $0x644] sm:$0xf]  ;;  %v5291_v13 = vld [vmem:[%s9651_s3 + $0x6c8] sm:$0xf0] }
 0x341   :  { %v6037_v9 = vld [vmem:[%s9651_s3 + $0x6c4] sm:$0xf]  ;;  %v6031_v40 = vld [vmem:[%s9651_s3 + $0x694] sm:$0xf] }
 0x342   :  { %3916 = vmatpush.bf16.msra.mxu1 %v4982_v18  ;;  %3929 = vmatpush.bf16.msra.mxu2 %v5046_v25  ;;  %v5965_v18 = vld [vmem:[%s9651_s3 + $0x484] sm:$0xf]  ;;  %v5078_v25 = vor.u32 %v5983_v62, %v5075_v12  ;;  %v5227_v12 = vld [vmem:[%s9651_s3 + $0x648] sm:$0xf0] }
 0x343   :  { %3942 = vmatpush.bf16.msra.mxu3 %v5110_v28  ;;  %3905 = vmatpush.bf16.msra.mxu0 %v4902_v42  ;;  %v5067_v28 = vld [vmem:[%s9651_s3 + $0x508] sm:$0xf0]  ;;  %v5315_v42 = vld [vmem:[%s9651_s3 + $0x6f8] sm:$0xf0] }
 0x344   :  { %v5070_v45 = vor.u32 %v5981_v26, %v5067_v28  ;;  %v5318_v47 = vor.u32 %v6043_v35, %v5315_v42  ;;  %v5219_v26 = vld [vmem:[%s9651_s3 + $0x638] sm:$0xf0]  ;;  %v6035_v28 = vld [vmem:[%s9651_s3 + $0x6b4] sm:$0xf] }
 0x345   :  { %v5347_v35 = vld [vmem:[%s9651_s3 + $0x738] sm:$0xf0] }
 0x346   :  { %3917 = vmatpush.bf16.msra.mxu1 %v4974_v43  ;;  %3930 = vmatpush.bf16.msra.mxu2 %v5038_v10  ;;  %v4942_v43 = vor.u32 %v5949_v22, %v4939_v56  ;;  %v5006_v10 = vor.u32 %v5965_v18, %v5003_v59  ;;  %v5230_v22 = vor.u32 %v6021_v6, %v5227_v12  ;;  %v6001_v18 = vld [vmem:[%s9651_s3 + $0x5a4] sm:$0xf] }
 0x347   :  { %3943 = vmatpush.bf16.msra.mxu3 %v5102_v36  ;;  %3906 = vmatpush.bf16.msra.mxu0 %v4894_v51  ;;  %v5182_v36 = vor.u32 %v6009_v32, %v5179_v14  ;;  %v5382_v51 = vor.u32 %v6059_v29, %v5379_v30  ;;  %v5294_v56 = vor.u32 %v6037_v9, %v5291_v13  ;;  %v5283_v32 = vld [vmem:[%s9651_s3 + $0x6b8] sm:$0xf0]  ;;  %v6013_v6 = vld [vmem:[%s9651_s3 + $0x604] sm:$0xf] }
 0x348   :  { %v5286_v30 = vor.u32 %v6035_v28, %v5283_v32  ;;  %v6029_v12 = vld [vmem:[%s9651_s3 + $0x684] sm:$0xf]  ;;  %v6123_v32 = vld [vmem:[%s9651_s3 + $0x974] sm:$0xf] }
 0x34a   :  { %3918 = vmatpush.bf16.msra.mxu1 %v4966_v52  ;;  %3931 = vmatpush.bf16.msra.mxu2 %v5030_v54  ;;  %v5243_v52 = vld [vmem:[%s9651_s3 + $0x668] sm:$0xf0] }
 0x34b   :  { %3944 = vmatpush.bf16.msra.mxu3 %v5094_v57  ;;  %3907 = vmatpush.bf16.msra.mxu0 %v4886_v5  ;;  %v5307_v54 = vld [vmem:[%s9651_s3 + $0x6e8] sm:$0xf0]  ;;  %v5246_v57 = vor.u32 %v6025_v49, %v5243_v52  ;;  %v5235_v5 = vld [vmem:[%s9651_s3 + $0x658] sm:$0xf0] }
 0x34c   :  { %v5275_v49 = vld [vmem:[%s9651_s3 + $0x6a8] sm:$0xf0] }
 0x34d   :  { %v5339_v52 = vld [vmem:[%s9651_s3 + $0x728] sm:$0xf0]  ;;  %v5278_v55 = vor.u32 %v6033_v48, %v5275_v49  ;;  %v6105_v49 = vld [vmem:[%s9651_s3 + $0x8e4] sm:$0xf] }
 0x34e   :  { %3919 = vmatpush.bf16.msra.mxu1 %v4958_v38  ;;  %3932 = vmatpush.bf16.msra.mxu2 %v5022_v37  ;;  %v5299_v38 = vld [vmem:[%s9651_s3 + $0x6d8] sm:$0xf0]  ;;  %v5499_v48 = vld [vmem:[%s9651_s3 + $0x868] sm:$0xf0] }
 0x34f   :  { %3945 = vmatpush.bf16.msra.mxu3 %v5086_v2  ;;  %3908 = vmatpush.bf16.msra.mxu0 %v4878_v20  ;;  %v5363_v37 = vld [vmem:[%s9651_s3 + $0x758] sm:$0xf0]  ;;  %v5238_v2 = vor.u32 %v6023_v3, %v5235_v5  ;;  %v6053_v20 = vld [vmem:[%s9651_s3 + $0x744] sm:$0xf] }
 0x350   :  { %v5267_v3 = vld [vmem:[%s9651_s3 + $0x698] sm:$0xf0] }
 0x352   :  { %3920 = vmatpush.bf16.msra.mxu1 %v4950_v21  ;;  %3933 = vmatpush.bf16.msra.mxu2 %v5014_v27  ;;  %v5355_v21 = vld [vmem:[%s9651_s3 + $0x748] sm:$0xf0] }
 0x353   :  { %3946 = vmatpush.bf16.msra.mxu3 %v5078_v25  ;;  %3953 = vmatpush.bf16.msrb.mxu0 %v5190_v58  ;;  %v5147_v25 = vld [vmem:[%s9651_s3 + $0x5a8] sm:$0xf0]  ;;  %v6019_v58 = vld [vmem:[%s9651_s3 + $0x634] sm:$0xf]  ;;  %v5358_v59 = vor.u32 %v6053_v20, %v5355_v21  ;;  %v6045_v21 = vld [vmem:[%s9651_s3 + $0x704] sm:$0xf] }
 0x354   :  { %3909 = vmatmul.bf16.vlgmr.msra.gmra.mxu0 %v7530_v60  ;;  %v6041_v60 = vld [vmem:[%s9651_s3 + $0x6e4] sm:$0xf]  ;;  %v5150_v42 = vor.u32 %v6001_v18, %v5147_v25  ;;  %v5222_v29 = vor.u32 %v6019_v58, %v5219_v26  ;;  %v5259_v20 = vld [vmem:[%s9651_s3 + $0x688] sm:$0xf0]  ;;  %v6091_v18 = vld [vmem:[%s9651_s3 + $0x874] sm:$0xf] }
 0x355   :  { %v5310_v33 = vor.u32 %v6041_v60, %v5307_v54  ;;  %v9194_v1 = vpop.f32.mrf.mxu0  ;;  %v9196_v7 = vpop.f32.mrf.mxu1  ;;  %v5997_v54 = vld [vmem:[%s9651_s3 + $0x584] sm:$0xf]  ;;  %v5507_v25 = vld [vmem:[%s9651_s3 + $0x878] sm:$0xf0]  ;;  %v6107_v58 = vld [vmem:[%s9651_s3 + $0x8f4] sm:$0xf]  ;;  %v5262_v28 = vor.u32 %v6029_v12, %v5259_v20 }
 0x356   :  { %3921 = vmatpush.bf16.msra.mxu1 %v4942_v43  ;;  %3934 = vmatpush.bf16.msra.mxu2 %v5006_v10  ;;  %v5547_v12 = vld [vmem:[%s9651_s3 + $0x8c8] sm:$0xf0] }
 0x357   :  { %3947 = vmatpush.bf16.msra.mxu3 %v5070_v45  ;;  %3954 = vmatpush.bf16.msrb.mxu0 %v5182_v36  ;;  %v5999_v45 = vld [vmem:[%s9651_s3 + $0x594] sm:$0xf]  ;;  %v5139_v36 = vld [vmem:[%s9651_s3 + $0x598] sm:$0xf0] }
 0x358   :  { %v5142_v60 = vor.u32 %v5999_v45, %v5139_v36  ;;  %v6071_v45 = vld [vmem:[%s9651_s3 + $0x7d4] sm:$0xf]  ;;  %v5427_v36 = vld [vmem:[%s9651_s3 + $0x7d8] sm:$0xf0] }
 0x359   :  { %3922 = vmatmul.bf16.vlgmr.msra.gmra.mxu1 %v8309_v50  ;;  %3935 = vmatmul.bf16.vlgmr.msra.gmra.mxu2 %v8311_v11  ;;  %v6055_v50 = vld [vmem:[%s9651_s3 + $0x754] sm:$0xf]  ;;  %v5302_v11 = vor.u32 %v6039_v61, %v5299_v38  ;;  %v5331_v38 = vld [vmem:[%s9651_s3 + $0x718] sm:$0xf0] }
 0x35a   :  { %3966 = vmatpush.bf16.msrb.mxu1 %v5254_v46  ;;  %3979 = vmatpush.bf16.msrb.mxu2 %v5318_v47  ;;  %v5366_v62 = vor.u32 %v6055_v50, %v5363_v37  ;;  %v6017_v46 = vld [vmem:[%s9651_s3 + $0x624] sm:$0xf]  ;;  %v5350_v47 = vor.u32 %v6051_v19, %v5347_v35  ;;  %v6075_v50 = vld [vmem:[%s9651_s3 + $0x7f4] sm:$0xf]  ;;  %v5443_v37 = vld [vmem:[%s9651_s3 + $0x7f8] sm:$0xf0] }
 0x35b   :  { %3992 = vmatpush.bf16.msrb.mxu3 %v5382_v51  ;;  %3955 = vmatpush.bf16.msrb.mxu0 %v5174_v53  ;;  %v6049_v51 = vld [vmem:[%s9651_s3 + $0x724] sm:$0xf]  ;;  %v5214_v23 = vor.u32 %v6017_v46, %v5211_v17  ;;  %v5131_v53 = vld [vmem:[%s9651_s3 + $0x588] sm:$0xf0]  ;;  %v5446_v13 = vor.u32 %v6075_v50, %v5443_v37  ;;  %v5635_v19 = vld [vmem:[%s9651_s3 + $0x978] sm:$0xf0] }
 0x35c   :  { %3948 = vmatmul.bf16.vlgmr.msra.gmra.mxu3 %v8313_v8  ;;  %v6003_v8 = vld [vmem:[%s9651_s3 + $0x5b4] sm:$0xf]  ;;  %v9240_v14 = vpop.f32.mrf.mxu2  ;;  %v9242_v34 = vpop.f32.mrf.mxu3  ;;  %v5342_v16 = vor.u32 %v6049_v51, %v5339_v52  ;;  %v6089_v46 = vld [vmem:[%s9651_s3 + $0x864] sm:$0xf]  ;;  %v5563_v51 = vld [vmem:[%s9651_s3 + $0x8e8] sm:$0xf0] }
 0x35d   :  { %v5158_v27 = vor.u32 %v6003_v8, %v5155_v4  ;;  %v3652_v43 = vpop.f32.mrf.mxu0  ;;  %v3665_v10 = vpop.f32.mrf.mxu1  ;;  %v5270_v4 = vor.u32 %v6031_v40, %v5267_v3  ;;  %v6121_v52 = vld [vmem:[%s9651_s3 + $0x964] sm:$0xf]  ;;  %v5491_v40 = vld [vmem:[%s9651_s3 + $0x858] sm:$0xf0]  ;;  %v6103_v3 = vld [vmem:[%s9651_s3 + $0x8d4] sm:$0xf] }
 0x35e   :  { %3967 = vmatpush.bf16.msrb.mxu1 %v5246_v57  ;;  %3980 = vmatpush.bf16.msrb.mxu2 %v5310_v33  ;;  %v6015_v57 = vld [vmem:[%s9651_s3 + $0x614] sm:$0xf]  ;;  %v5203_v33 = vld [vmem:[%s9651_s3 + $0x618] sm:$0xf0]  ;;  %v5510_v43 = vor.u32 %v6091_v18, %v5507_v25 }
 0x35f   :  { %3993 = vmatpush.bf16.msrb.mxu3 %v5374_v63  ;;  %3956 = vmatpush.bf16.msrb.mxu0 %v5166_v0  ;;  %v6047_v63 = vld [vmem:[%s9651_s3 + $0x714] sm:$0xf]  ;;  %v5134_v0 = vor.u32 %v5997_v54, %v5131_v53  ;;  %v5206_v8 = vor.u32 %v6015_v57, %v5203_v33  ;;  %v5430_v54 = vor.u32 %v6071_v45, %v5427_v36  ;;  %v6069_v53 = vld [vmem:[%s9651_s3 + $0x7c4] sm:$0xf]  ;;  %v5419_v57 = vld [vmem:[%s9651_s3 + $0x7c8] sm:$0xf0] }
 0x360   :  { %v5334_v9 = vor.u32 %v6047_v63, %v5331_v38  ;;  %v6087_v33 = vld [vmem:[%s9651_s3 + $0x854] sm:$0xf]  ;;  %v5555_v63 = vld [vmem:[%s9651_s3 + $0x8d8] sm:$0xf0]  ;;  %v6081_v45 = vld [vmem:[%s9651_s3 + $0x824] sm:$0xf] }
 0x361   :  { %v5494_v38 = vor.u32 %v6087_v33, %v5491_v40  ;;  %v5558_v50 = vor.u32 %v6103_v3, %v5555_v63  ;;  %v6083_v18 = vld [vmem:[%s9651_s3 + $0x834] sm:$0xf]  ;;  %v5699_v3 = vld [vmem:[%s9651_s3 + $0x9f8] sm:$0xf0] }
 0x362   :  { %3968 = vmatpush.bf16.msrb.mxu1 %v5238_v2  ;;  %3981 = vmatpush.bf16.msrb.mxu2 %v5302_v11  ;;  %v6111_v33 = vld [vmem:[%s9651_s3 + $0x914] sm:$0xf] }
 0x363   :  { %3994 = vmatpush.bf16.msrb.mxu3 %v5366_v62  ;;  %3957 = vmatpush.bf16.msrb.mxu0 %v5158_v27  ;;  %v5195_v62 = vld [vmem:[%s9651_s3 + $0x608] sm:$0xf0]  ;;  %v6139_v40 = vld [vmem:[%s9651_s3 + $0x9f4] sm:$0xf] }
 0x364   :  { %v3678_v5 = vpop.f32.mrf.mxu2  ;;  %v3691_v61 = vpop.f32.mrf.mxu3  ;;  %v5323_v27 = vld [vmem:[%s9651_s3 + $0x708] sm:$0xf0]  ;;  %v5198_v26 = vor.u32 %v6013_v6, %v5195_v62  ;;  %v6101_v62 = vld [vmem:[%s9651_s3 + $0x8c4] sm:$0xf] }
 0x365   :  { %v9304_v2 = vpop.f32.mrf.mxu0  ;;  %v9306_v11 = vpop.f32.mrf.mxu1  ;;  %v5326_v35 = vor.u32 %v6045_v21, %v5323_v27  ;;  %v5619_v5 = vld [vmem:[%s9651_s3 + $0x958] sm:$0xf0]  ;;  %v5422_v61 = vor.u32 %v6069_v53, %v5419_v57  ;;  %v5483_v6 = vld [vmem:[%s9651_s3 + $0x848] sm:$0xf0]  ;;  %v5550_v27 = vor.u32 %v6101_v62, %v5547_v12  ;;  %v6095_v53 = vld [vmem:[%s9651_s3 + $0x894] sm:$0xf] }
 0x366   :  { %3969 = vmatpush.bf16.msrb.mxu1 %v5230_v22  ;;  %3982 = vmatpush.bf16.msrb.mxu2 %v5294_v56  ;;  %v6073_v22 = vld [vmem:[%s9651_s3 + $0x7e4] sm:$0xf]  ;;  %v5435_v56 = vld [vmem:[%s9651_s3 + $0x7e8] sm:$0xf0]  ;;  %v5523_v57 = vld [vmem:[%s9651_s3 + $0x898] sm:$0xf0] }
 0x367   :  { %3995 = vmatpush.bf16.msrb.mxu3 %v5358_v59  ;;  %3958 = vmatpush.bf16.msrb.mxu0 %v5150_v42  ;;  %v5571_v59 = vld [vmem:[%s9651_s3 + $0x8f8] sm:$0xf0]  ;;  %v5438_v42 = vor.u32 %v6073_v22, %v5435_v56  ;;  %v6065_v22 = vld [vmem:[%s9651_s3 + $0x7a4] sm:$0xf]  ;;  %v5403_v56 = vld [vmem:[%s9651_s3 + $0x7a8] sm:$0xf0] }
 0x368   :  { %v5574_v10 = vor.u32 %v6107_v58, %v5571_v59  ;;  %v5475_v58 = vld [vmem:[%s9651_s3 + $0x838] sm:$0xf0]  ;;  %v6099_v59 = vld [vmem:[%s9651_s3 + $0x8b4] sm:$0xf] }
 0x369   :  { %v6143_v62 = vld [vmem:[%s9651_s3 + $0xa14] sm:$0xf]  ;;  %v5715_v12 = vld [vmem:[%s9651_s3 + $0xa18] sm:$0xf0] }
 0x36a   :  { %3970 = vmatpush.bf16.msrb.mxu1 %v5222_v29  ;;  %3983 = vmatpush.bf16.msrb.mxu2 %v5286_v30 }
 0x36b   :  { %3996 = vmatpush.bf16.msrb.mxu3 %v5350_v47  ;;  %3959 = vmatpush.bf16.msrb.mxu0 %v5142_v60  ;;  %v5638_v47 = vor.u32 %v6123_v32, %v5635_v19  ;;  %v5627_v60 = vld [vmem:[%s9651_s3 + $0x968] sm:$0xf0]  ;;  %v5603_v32 = vld [vmem:[%s9651_s3 + $0x938] sm:$0xf0]  ;;  %v5406_v19 = vor.u32 %v6065_v22, %v5403_v56  ;;  %v6135_v56 = vld [vmem:[%s9651_s3 + $0x9d4] sm:$0xf] }
 0x36c   :  { %v9351_v29 = vpop.f32.mrf.mxu2  ;;  %v9353_v30 = vpop.f32.mrf.mxu3  ;;  %v6152_v22 = vld [vmem:[%s9653_s5 + $0x38] sm:$0xff] }
 0x36d   :  { %v3717_v17 = vpop.f32.mrf.mxu1 }
 0x36e   :  { %3971 = vmatpush.bf16.msrb.mxu1 %v5214_v23  ;;  %3984 = vmatpush.bf16.msrb.mxu2 %v5278_v55  ;;  %v5502_v23 = vor.u32 %v6089_v46, %v5499_v48  ;;  %v5566_v55 = vor.u32 %v6105_v49, %v5563_v51  ;;  %v5467_v46 = vld [vmem:[%s9651_s3 + $0x828] sm:$0xf0]  ;;  %v6113_v17 = vld [vmem:[%s9651_s3 + $0x924] sm:$0xf]  ;;  %v3651_v49 = vadd.f32 %v9194_v1, %v8627_v31  ;;  %v5459_v31 = vld [vmem:[%s9651_s3 + $0x818] sm:$0xf0] }
 0x36f   :  { %3997 = vmatpush.bf16.msrb.mxu3 %v5342_v16  ;;  %3960 = vmatpush.bf16.msrb.mxu0 %v5134_v0  ;;  %v5630_v16 = vor.u32 %v6121_v52, %v5627_v60  ;;  %v5595_v48 = vld [vmem:[%s9651_s3 + $0x928] sm:$0xf0]  ;;  %v6061_v52 = vld [vmem:[%s9651_s3 + $0x784] sm:$0xf]  ;;  %v5470_v60 = vor.u32 %v6081_v45, %v5467_v46  ;;  %v6200_v45 = vld [vmem:[#allocation1 + $0x12] sm:$0xff] }
 0x370   :  { %v5598_v1 = vor.u32 %v6113_v17, %v5595_v48  ;;  %v3664_v63 = vadd.f32 %v9196_v7, %v3651_v49  ;;  %v6093_v7 = vld [vmem:[%s9651_s3 + $0x884] sm:$0xf]  ;;  %v5667_v17 = vld [vmem:[%s9651_s3 + $0x9b8] sm:$0xf0] }
 0x372   :  { %3972 = vmatpush.bf16.msrb.mxu1 %v5206_v8  ;;  %3985 = vmatpush.bf16.msrb.mxu2 %v5270_v4  ;;  %v6085_v8 = vld [vmem:[%s9651_s3 + $0x844] sm:$0xf] }
 0x373   :  { %3998 = vmatpush.bf16.msrb.mxu3 %v5334_v9  ;;  %4005 = vmatpush.bf16.msra.mxu0 %v5446_v13  ;;  %v6117_v9 = vld [vmem:[%s9651_s3 + $0x944] sm:$0xf]  ;;  %v5611_v13 = vld [vmem:[%s9651_s3 + $0x948] sm:$0xf0]  ;;  %v5486_v21 = vor.u32 %v6085_v8, %v5483_v6 }
 0x374   :  { %3961 = vmatmul.bf16.vlgmr.msrb.gmra.mxu0 %v8318_v15  ;;  %v3704_v15 = vpop.f32.mrf.mxu0  ;;  %v3730_v37 = vpop.f32.mrf.mxu2  ;;  %v5614_v25 = vor.u32 %v6117_v9, %v5611_v13  ;;  %v6109_v8 = vld [vmem:[%s9651_s3 + $0x904] sm:$0xf]  ;;  %v5691_v6 = vld [vmem:[%s9651_s3 + $0x9e8] sm:$0xf0] }
 0x375   :  { %v3743_v0 = vpop.f32.mrf.mxu3  ;;  %v5531_v15 = vld [vmem:[%s9651_s3 + $0x8a8] sm:$0xf0]  ;;  %v3677_v37 = vadd.f32 %v9240_v14, %v3664_v63  ;;  %v6137_v14 = vld [vmem:[%s9651_s3 + $0x9e4] sm:$0xf] }
 0x376   :  { %3973 = vmatpush.bf16.msrb.mxu1 %v5198_v26  ;;  %3986 = vmatpush.bf16.msrb.mxu2 %v5262_v28  ;;  %v5539_v26 = vld [vmem:[%s9651_s3 + $0x8b8] sm:$0xf0]  ;;  %v6115_v28 = vld [vmem:[%s9651_s3 + $0x934] sm:$0xf] }
 0x377   :  { %3999 = vmatpush.bf16.msrb.mxu3 %v5326_v35  ;;  %4006 = vmatpush.bf16.msra.mxu0 %v5438_v42  ;;  %v5478_v35 = vor.u32 %v6083_v18, %v5475_v58  ;;  %v5542_v42 = vor.u32 %v6099_v59, %v5539_v26  ;;  %v5606_v36 = vor.u32 %v6115_v28, %v5603_v32  ;;  %v5683_v18 = vld [vmem:[%s9651_s3 + $0x9d8] sm:$0xf0]  ;;  %v5707_v26 = vld [vmem:[%s9651_s3 + $0xa08] sm:$0xf0]  ;;  %v6133_v32 = vld [vmem:[%s9651_s3 + $0x9c4] sm:$0xf] }
 0x378   :  { %v5686_v28 = vor.u32 %v6135_v56, %v5683_v18 }
 0x379   :  { %3974 = vmatmul.bf16.vlgmr.msrb.gmra.mxu1 %v8460_v39  ;;  %3987 = vmatmul.bf16.vlgmr.msrb.gmra.mxu2 %v8462_v24  ;;  %v6119_v39 = vld [vmem:[%s9651_s3 + $0x954] sm:$0xf] }
 0x37a   :  { %4018 = vmatpush.bf16.msra.mxu1 %v5510_v43  ;;  %4031 = vmatpush.bf16.msra.mxu2 %v5574_v10  ;;  %v6067_v24 = vld [vmem:[%s9651_s3 + $0x7b4] sm:$0xf]  ;;  %v5622_v4 = vor.u32 %v6119_v39, %v5619_v5  ;;  %v5395_v10 = vld [vmem:[%s9651_s3 + $0x798] sm:$0xf0] }
 0x37b   :  { %4044 = vmatpush.bf16.msra.mxu3 %v5638_v47  ;;  %4007 = vmatpush.bf16.msra.mxu0 %v5430_v54  ;;  %v6063_v43 = vld [vmem:[%s9651_s3 + $0x794] sm:$0xf]  ;;  %v6097_v47 = vld [vmem:[%s9651_s3 + $0x8a4] sm:$0xf] }
 0x37c   :  { %4000 = vmatmul.bf16.vlgmr.msrb.gmra.mxu3 %v8464_v41  ;;  %v5411_v41 = vld [vmem:[%s9651_s3 + $0x7b8] sm:$0xf0]  ;;  %v5398_v51 = vor.u32 %v6063_v43, %v5395_v10  ;;  %v5534_v54 = vor.u32 %v6097_v47, %v5531_v15  ;;  %v6198_v43 = vld [vmem:[#allocation1] sm:$0xff]  ;;  %v6199_v10 = vld [vmem:[#allocation1 + $0x9] sm:$0xff] }
 0x37d   :  { %v5414_v20 = vor.u32 %v6067_v24, %v5411_v41  ;;  %v5702_v24 = vor.u32 %v6139_v40, %v5699_v3  ;;  %v5515_v41 = vld [vmem:[%s9651_s3 + $0x888] sm:$0xf0] }
 0x37e   :  { %4019 = vmatpush.bf16.msra.mxu1 %v5502_v23  ;;  %4032 = vmatpush.bf16.msra.mxu2 %v5566_v55  ;;  %v5387_v23 = vld [vmem:[%s9651_s3 + $0x788] sm:$0xf0]  ;;  %v6079_v55 = vld [vmem:[%s9651_s3 + $0x814] sm:$0xf]  ;;  %v5518_v13 = vor.u32 %v6093_v7, %v5515_v41 }
 0x37f   :  { %4045 = vmatpush.bf16.msra.mxu3 %v5630_v16  ;;  %4008 = vmatpush.bf16.msra.mxu0 %v5422_v61  ;;  %v5587_v16 = vld [vmem:[%s9651_s3 + $0x918] sm:$0xf0]  ;;  %v5390_v39 = vor.u32 %v6061_v52, %v5387_v23  ;;  %v5462_v5 = vor.u32 %v6079_v55, %v5459_v31  ;;  %v5526_v61 = vor.u32 %v6095_v53, %v5523_v57  ;;  %v6150_v47 = vld [vmem:[%s9653_s5 + $0x28] sm:$0xff]  ;;  %v6127_v53 = vld [vmem:[%s9651_s3 + $0x994] sm:$0xf] }
 0x380   :  { %v5590_v0 = vor.u32 %v6111_v33, %v5587_v16  ;;  %v5659_v23 = vld [vmem:[%s9651_s3 + $0x9a8] sm:$0xf0]  ;;  %v5651_v57 = vld [vmem:[%s9651_s3 + $0x998] sm:$0xf0] }
 0x381   :  { %v5654_v63 = vor.u32 %v6127_v53, %v5651_v57  ;;  %v6156_v53 = vld [vmem:[%s9653_s5 + $0x58] sm:$0xff]  ;;  %v6155_v57 = vld [vmem:[%s9653_s5 + $0x50] sm:$0xff] }
 0x382   :  { %4020 = vmatpush.bf16.msra.mxu1 %v5494_v38  ;;  %4033 = vmatpush.bf16.msra.mxu2 %v5558_v50  ;;  %v6077_v38 = vld [vmem:[%s9651_s3 + $0x804] sm:$0xf]  ;;  %v5451_v50 = vld [vmem:[%s9651_s3 + $0x808] sm:$0xf0] }
 0x383   :  { %4046 = vmatpush.bf16.msra.mxu3 %v5622_v4  ;;  %4009 = vmatpush.bf16.msra.mxu0 %v5414_v20  ;;  %v5579_v4 = vld [vmem:[%s9651_s3 + $0x908] sm:$0xf0]  ;;  %v5454_v9 = vor.u32 %v6077_v38, %v5451_v50  ;;  %v3690_v20 = vadd.f32 %v9242_v34, %v3677_v37  ;;  %v6125_v50 = vld [vmem:[%s9651_s3 + $0x984] sm:$0xf] }
 0x384   :  { %v5643_v37 = vld [vmem:[%s9651_s3 + $0x988] sm:$0xf0] }
 0x385   :  { %v3703_v34 = vadd.f32 %v9304_v2, %v3690_v20  ;;  %v6151_v2 = vld [vmem:[%s9653_s5 + $0x30] sm:$0xff]  ;;  %v5646_v7 = vor.u32 %v6125_v50, %v5643_v37  ;;  %v6145_v20 = vld [vmem:[%s9653_s5] sm:$0xff] }
 0x386   :  { %4021 = vmatpush.bf16.msra.mxu1 %v5486_v21  ;;  %4034 = vmatpush.bf16.msra.mxu2 %v5550_v27  ;;  %v5582_v21 = vor.u32 %v6109_v8, %v5579_v4  ;;  %v5694_v27 = vor.u32 %v6137_v14, %v5691_v6  ;;  %v6146_v8 = vld [vmem:[%s9653_s5 + $0x8] sm:$0xff] }
 0x387   :  { %4047 = vmatpush.bf16.msra.mxu3 %v5614_v25  ;;  %4010 = vmatpush.bf16.msra.mxu0 %v5406_v19  ;;  %v5718_v25 = vor.u32 %v6143_v62, %v5715_v12  ;;  %v5675_v19 = vld [vmem:[%s9651_s3 + $0x9c8] sm:$0xf0] }
 0x388   :  { %v5678_v46 = vor.u32 %v6133_v32, %v5675_v19 }
 0x38a   :  { %4022 = vmatpush.bf16.msra.mxu1 %v5478_v35  ;;  %4035 = vmatpush.bf16.msra.mxu2 %v5542_v42  ;;  %v3716_v42 = vadd.f32 %v9306_v11, %v3703_v34  ;;  %v6131_v11 = vld [vmem:[%s9651_s3 + $0x9b4] sm:$0xf] }
 0x38b   :  { %4048 = vmatpush.bf16.msra.mxu3 %v5606_v36  ;;  %4011 = vmatpush.bf16.msra.mxu0 %v5398_v51  ;;  %v5670_v52 = vor.u32 %v6131_v11, %v5667_v17 }
 0x38c   :  { %v3754_v58 = vpop.f32.mrf.mxu0  ;;  %v3729_v36 = vadd.f32 %v9351_v29, %v3716_v42 }
 0x38d   :  { %v3767_v59 = vpop.f32.mrf.mxu1 }
 0x38e   :  { %4023 = vmatpush.bf16.msra.mxu1 %v5470_v60  ;;  %4036 = vmatpush.bf16.msra.mxu2 %v5534_v54  ;;  %v3742_v51 = vadd.f32 %v9353_v30, %v3729_v36  ;;  %v6149_v60 = vld [vmem:[%s9653_s5 + $0x20] sm:$0xff]  ;;  %v6148_v30 = vld [vmem:[%s9653_s5 + $0x18] sm:$0xff] }
 0x38f   :  { %4049 = vmatpush.bf16.msra.mxu3 %v5598_v1  ;;  %4012 = vmatpush.bf16.msra.mxu0 %v5390_v39  ;;  %v6129_v54 = vld [vmem:[%s9651_s3 + $0x9a4] sm:$0xf] }
 0x390   :  { %v3755_v55 = vadd.f32 %v3754_v58, %v3742_v51  ;;  %v5662_v31 = vor.u32 %v6129_v54, %v5659_v23  ;;  %v6158_v23 = vld [vmem:[%s9653_s5 + $0x68] sm:$0xff] }
 0x392   :  { %4024 = vmatpush.bf16.msra.mxu1 %v5462_v5  ;;  %4037 = vmatpush.bf16.msra.mxu2 %v5526_v61  ;;  %v3768_v33 = vadd.f32 %v3767_v59, %v3755_v55  ;;  %v6147_v5 = vld [vmem:[%s9653_s5 + $0x10] sm:$0xff]  ;;  %v6201_v61 = vld [vmem:[%s9652_s4] sm:$0x3] }
 0x393   :  { %4050 = vmatpush.bf16.msra.mxu3 %v5590_v0  ;;  %4057 = vmatpush.bf16.msrb.mxu0 %v5702_v24  ;;  %v3780_v15 = vpop.f32.mrf.mxu2  ;;  %v1864_v38 = vperm.slane %v6201_v61, 1  ;;  %v6202_v0 = vld [vmem:[#allocation1 + $0x24] sm:$0xff] }
 0x394   :  { %4013 = vmatmul.bf16.vlgmr.msra.gmra.mxu0 %v8468_v44  ;;  %v6141_v44 = vld [vmem:[%s9651_s3 + $0xa04] sm:$0xf]  ;;  %v3756_v48 = vpop.f32.mrf.mxu0  ;;  %v3793_v29 = vpop.f32.mrf.mxu3  ;;  %v3781_v3 = vadd.f32 %v3780_v15, %v3768_v33 }
 0x395   :  { %v5710_v35 = vor.u32 %v6141_v44, %v5707_v26  ;;  %v3769_v49 = vpop.f32.mrf.mxu1 }
 0x396   :  { %4025 = vmatpush.bf16.msra.mxu1 %v5454_v9  ;;  %4038 = vmatpush.bf16.msra.mxu2 %v5518_v13  ;;  %v3794_v24 = vadd.f32 %v3793_v29, %v3781_v3  ;;  %v6160_v49 = vld [vmem:[%s9653_s5 + $0x78] sm:$0xff]  ;;  %v6153_v3 = vld [vmem:[%s9653_s5 + $0x40] sm:$0xff] }
 0x397   :  { %4051 = vmatpush.bf16.msra.mxu3 %v5582_v21  ;;  %4058 = vmatpush.bf16.msrb.mxu0 %v5694_v27  ;;  %v6203_v27 = vld [vmem:[#allocation1 + $0x1b] sm:$0xff] }
 0x399   :  { %4026 = vmatmul.bf16.vlgmr.msra.gmra.mxu1 %v6198_v43  ;;  %4039 = vmatmul.bf16.vlgmr.msra.gmra.mxu2 %v6199_v10 }
 0x39a   :  { %4219 = vmatpush.bf16.msrb.mxu2 %v6152_v22  ;;  %4076 = vmatpush.bf16.msrb.mxu1 %v5718_v25 }
 0x39b   :  { %4052 = vmatmul.bf16.vlgmr.msra.gmra.mxu3 %v6200_v45  ;;  %4059 = vmatpush.bf16.msrb.mxu0 %v5686_v28  ;;  %v3782_v1 = vpop.f32.mrf.mxu2 }
 0x39c   :  { %v3795_v16 = vpop.f32.mrf.mxu3  ;;  %v3806_v40 = vpop.f32.mrf.mxu0  ;;  %4232 = vmatpush.bf16.msrb.mxu3 %v6160_v49 }
 0x39d   :  { %v3819_v39 = vpop.f32.mrf.mxu1  ;;  %v3807_v4 = vadd.f32 %v3806_v40, %v3794_v24  ;;  %v6154_v16 = vld [vmem:[%s9653_s5 + $0x48] sm:$0xff] }
 0x39e   :  { %4220 = vmatpush.bf16.msrb.mxu2 %v6151_v2  ;;  %4077 = vmatpush.bf16.msrb.mxu1 %v5710_v35  ;;  %v3820_v41 = vadd.f32 %v3819_v39, %v1864_v38 }
 0x39f   :  { %4060 = vmatpush.bf16.msrb.mxu0 %v5678_v46  ;;  %v4083_v21 = vmax.f32 %v3807_v4, 0.0 }
 0x3a1   :  { %v4085_v22 = vpack.c.bf16 %v4083_v21, %v4083_v21 }
 0x3a2   :  { %4221 = vmatpush.bf16.msrb.mxu2 %v6150_v47 }
 0x3a3   :  { %4061 = vmatpush.bf16.msrb.mxu0 %v5670_v52  ;;  %v3832_v14 = vpop.f32.mrf.mxu2  ;;  %v6159_v52 = vld [vmem:[%s9653_s5 + $0x70] sm:$0xff] }
 0x3a4   :  { %v3833_v6 = vadd.f32 %v3832_v14, %v3820_v41  ;;  %v3845_v62 = vpop.f32.mrf.mxu3  ;;  %v3808_v12 = vpop.f32.mrf.mxu0  ;;  %4233 = vmatpush.bf16.msrb.mxu3 %v6159_v52 }
 0x3a5   :  { %v3821_v9 = vpop.f32.mrf.mxu1 }
 0x3a6   :  { %4222 = vmatpush.bf16.msrb.mxu2 %v6149_v60  ;;  %v3846_v13 = vadd.f32 %v3845_v62, %v3833_v6 }
 0x3a7   :  { %4062 = vmatpush.bf16.msrb.mxu0 %v5662_v31  ;;  %v6157_v31 = vld [vmem:[%s9653_s5 + $0x60] sm:$0xff] }
 0x3a8   :  { %4234 = vmatpush.bf16.msrb.mxu3 %v6158_v23 }
 0x3a9   :  { %5720 = vmatmul.msk.bf16.vlgmr.msrb.gmra.mxu1 %vm3534_vm0, %v6202_v0 }
 0x3aa   :  { %4223 = vmatpush.bf16.msrb.mxu2 %v6148_v30 }
 0x3ab   :  { %4063 = vmatpush.bf16.msrb.mxu0 %v5654_v63  ;;  %v3834_v56 = vpop.f32.mrf.mxu2 }
 0x3ac   :  { %v3847_v18 = vpop.f32.mrf.mxu3  ;;  %4235 = vmatpush.bf16.msrb.mxu3 %v6157_v31 }
 0x3ad   :  { %v3858_v25 = vpop.f32.mrf.mxu0 }
 0x3ae   :  { %4224 = vmatpush.bf16.msrb.mxu2 %v6147_v5  ;;  %v3859_v34 = vadd.f32 %v3858_v25, %v3846_v13 }
 0x3af   :  { %4064 = vmatpush.bf16.msrb.mxu0 %v5646_v7 }
 0x3b0   :  { %4236 = vmatpush.bf16.msrb.mxu3 %v6156_v53 }
 0x3b2   :  { %4225 = vmatpush.bf16.msrb.mxu2 %v6146_v8  ;;  %4065 = vmatmul.bf16.vlgmr.msrb.gmra.mxu0 %v6203_v27 }
 0x3b4   :  { %4237 = vmatpush.bf16.msrb.mxu3 %v6155_v57 }
 0x3b5   :  { %v3860_v44 = vpop.f32.mrf.mxu0 }
 0x3b6   :  { %4226 = vmatpush.bf16.msrb.mxu2 %v6145_v20  ;;  %v3871_v58 = vpop.f32.mrf.mxu1 }
 0x3b7   :  { %v3872_v59 = vadd.f32 %v3871_v58, %v3859_v34  ;;  %v6197_v58 = vld [vmem:[%s9654_s6] ss:$0 sm:$0xff] }
 0x3b8   :  { %4238 = vmatpush.bf16.msrb.mxu3 %v6154_v16 }
 0x3b9   :  { %4227 = vmatmul.bf16.vlgmr.msrb.gmra.mxu2 %v4085_v22 }
 0x3bc   :  { %v3884_v26 = vpop.f32.mrf.mxu2  ;;  %4239 = vmatpush.bf16.msrb.mxu3 %v6153_v3 }
 0x3bd   :  { %v3885_v2 = vadd.f32 %v3884_v26, %v3872_v59 }
 0x3be   :  { %v3873_v32 = vpop.f32.mrf.mxu1 }
 0x3bf   :  { %v3897_v28 = vpop.f32.mrf.mxu3 }
 0x3c0   :  { %v3898_v19 = vadd.f32 %v3897_v28, %v3885_v2 }
 0x3c4   :  { %v3886_v35 = vpop.f32.mrf.mxu2 }
 0x3c7   :  { %v3899_v42 = vpop.f32.mrf.mxu3 }
 0x3d1   :  { %v3910_v43 = vpop.f32.mrf.mxu0 }
 0x3d2   :  { %v3911_v10 = vadd.f32 %v3910_v43, %v3898_v19 }
 0x3d6   :  { %v3923_v45 = vpop.f32.mrf.mxu1 }
 0x3d7   :  { %v3924_v40 = vadd.f32 %v3923_v45, %v3911_v10 }
 0x3d9   :  { %v3912_v36 = vpop.f32.mrf.mxu0 }
 0x3dc   :  { %v3936_v46 = vpop.f32.mrf.mxu2 }
 0x3dd   :  { %v3937_v63 = vadd.f32 %v3936_v46, %v3924_v40 }
 0x3de   :  { %v3925_v15 = vpop.f32.mrf.mxu1 }
 0x3df   :  { %v3949_v47 = vpop.f32.mrf.mxu3 }
 0x3e0   :  { %v3950_v61 = vadd.f32 %v3949_v47, %v3937_v63 }
 0x3e4   :  { %v3938_v11 = vpop.f32.mrf.mxu2 }
 0x3e7   :  { %v3951_v17 = vpop.f32.mrf.mxu3 }
 0x3f1   :  { %v3962_v48 = vpop.f32.mrf.mxu0 }
 0x3f2   :  { %v3963_v38 = vadd.f32 %v3962_v48, %v3950_v61 }
 0x3f6   :  { %v3975_v29 = vpop.f32.mrf.mxu1 }
 0x3f7   :  { %v3976_v0 = vadd.f32 %v3975_v29, %v3963_v38 }
 0x3f9   :  { %v3964_v51 = vpop.f32.mrf.mxu0 }
 0x3fc   :  { %v3988_v60 = vpop.f32.mrf.mxu2 }
 0x3fd   :  { %v3989_v7 = vadd.f32 %v3988_v60, %v3976_v0 }
 0x3fe   :  { %v3977_v55 = vpop.f32.mrf.mxu1 }
 0x3ff   :  { %v4001_v54 = vpop.f32.mrf.mxu3 }
 0x400   :  { %v4002_v41 = vadd.f32 %v4001_v54, %v3989_v7 }
 0x404   :  { %v3990_v30 = vpop.f32.mrf.mxu2 }
 0x407   :  { %v4003_v1 = vpop.f32.mrf.mxu3 }
 0x411   :  { %v4014_v33 = vpop.f32.mrf.mxu0 }
 0x412   :  { %v4015_v14 = vadd.f32 %v4014_v33, %v4002_v41 }
 0x416   :  { %v4027_v39 = vpop.f32.mrf.mxu1 }
 0x417   :  { %v4028_v62 = vadd.f32 %v4027_v39, %v4015_v14 }
 0x419   :  { %v4016_v5 = vpop.f32.mrf.mxu0 }
 0x41c   :  { %v4040_v50 = vpop.f32.mrf.mxu2 }
 0x41d   :  { %v4041_v12 = vadd.f32 %v4040_v50, %v4028_v62 }
 0x41e   :  { %v4053_v37 = vpop.f32.mrf.mxu3  ;;  %v4029_v24 = vpop.f32.mrf.mxu1 }
 0x41f   :  { %v4054_v9 = vadd.f32 %v4053_v37, %v4041_v12 }
 0x424   :  { %v4042_v8 = vpop.f32.mrf.mxu2 }
 0x426   :  { %v4055_v4 = vpop.f32.mrf.mxu3  ;;  %v4079_v6 = vpop.f32.mrf.mxu1 }
 0x42e   :  { %v4081_v13 = vpop.f32.mrf.mxu1 }
 0x42f   :  { %v4066_v20 = vpop.f32.mrf.mxu0 }
 0x430   :  { %v4067_v21 = vadd.f32 %v4066_v20, %v4054_v9 }
 0x432   :  { %v4080_v27 = vadd.f32 %v4079_v6, %v4067_v21 }
 0x434   :  { %v4084_v22 = vmax.f32 %v4080_v27, 0.0 }
 0x436   :  { %v4086_v56 = vpack.c.bf16 %v4084_v22, %v4084_v22 }
 0x437   :  { %v4068_v18 = vpop.f32.mrf.mxu0 }
 0x438   :  { %4240 = vmatmul.bf16.vlgmr.msrb.gmra.mxu3 %v4086_v56 }
 0x43c   :  { %v4228_v25 = vpop.f32.mrf.mxu2 }
 0x43d   :  { %v4229_v59 = vadd.f32 %v6197_v58, %v4228_v25 }
 0x444   :  { %v4230_v34 = vpop.f32.mrf.mxu2 }
 0x4bb   :  { %v4241_v44 = vpop.f32.mrf.mxu3 }
 0x4bc   :  { %v4242_v26 = vadd.f32 %v4241_v44, %v4229_v59 }
 0x4be   :  { %4246 = vst.msk [vmem:[#allocation4] sm:$0x3] %vm4245_vm6, %v4242_v26 }
 0x4bf   :  { %4257 = dma.vmem_to_hbm [thread:$0]  %s4253_s29, 32, %s4255_s9, [#allocation5]  }
 0x4c3   :  { %v4243_v28 = vpop.f32.mrf.mxu3 }
 0x4c4   :  { %6228 = dma.done.wait [#allocation5], 32  }
 0x4c5   :  { %6229 = vsyncadd [#allocation5], 4294967264 }
 0x4c6   :  { %4262 = vsyncpa [#allocation5], 1 }

</bundles_post_ra>
